<compile_context>
chip_gen: v6e
topology: v6e:2x2x1
jax: 0.10.0
libtpu: 0.0.40
codegen_flags: <defaults>
</compile_context>

<pallas_src>
import functools

import jax
import jax.numpy as jnp
from jax import lax
from jax.experimental import pallas as pl
from jax.experimental.pallas import tpu as pltpu


def _ca_bottleneck_kernel(add, nb, H, W,
                          x_ref, w1_ref, b1_ref, w2_ref, b2_ref,
                          wc1_ref, bc1_ref, wh_ref, bh_ref, ww_ref, bw_ref,
                          o_ref, pad_ref, col_ref, cat_ref):
    Cin = x_ref.shape[1]
    C1 = w1_ref.shape[0]
    C2 = w2_ref.shape[0]
    HW = H * W

    # Zero only the padded border; the interior is fully overwritten for every image.
    # Done every grid step (cheap) so it does not depend on grid order ("parallel" safe).
    pad_ref[:, 0:1, :] = jnp.zeros((C1, 1, W + 2), jnp.float32)
    pad_ref[:, H + 1:H + 2, :] = jnp.zeros((C1, 1, W + 2), jnp.float32)
    pad_ref[:, :, 0:1] = jnp.zeros((C1, H + 2, 1), jnp.float32)
    pad_ref[:, :, W + 1:W + 2] = jnp.zeros((C1, H + 2, 1), jnp.float32)

    # Grid-invariant operands, loaded once per step.
    w1 = w1_ref[...]
    w2 = w2_ref[...]
    wc1 = wc1_ref[...]
    wh = wh_ref[...]
    ww = ww_ref[...]
    b1 = b1_ref[...]
    b2 = b2_ref[...]
    bc1 = bc1_ref[...]
    bh = bh_ref[...]
    bw = bw_ref[...]

    for i in range(nb):                                   # static unroll over images
        x_img = x_ref[i].astype(jnp.float32)              # (Cin, HW), lane-dense

        # ---- cv1: 1x1 conv (BN folded) + SiLU ----------------------------------------
        t = jnp.dot(w1, x_img, preferred_element_type=jnp.float32) + b1
        t = t * jax.nn.sigmoid(t)                         # (C1, HW)

        # ---- cv2: 3x3 conv (BN folded) + SiLU as ONE im2col matmul -------------------
        pad_ref[:, 1:H + 1, 1:W + 1] = t.reshape(C1, H, W)
        for dy in range(3):
            for dx in range(3):
                k = dy * 3 + dx
                col_ref[k * C1:(k + 1) * C1, :] = (
                    pad_ref[:, dy:dy + H, dx:dx + W].reshape(C1, HW))
        x1 = jnp.dot(w2, col_ref[...], preferred_element_type=jnp.float32) + b2
        x1 = x1 * jax.nn.sigmoid(x1)                      # (C2, HW), lane-dense

        # ---- coordinate attention ----------------------------------------------------
        x1_hw = x1.reshape(C2, H, W)
        cat_ref[:, 0:H] = jnp.mean(x1_hw, axis=2)         # pool over W -> (C2, H)
        cat_ref[:, H:H + W] = jnp.mean(x1_hw, axis=1)     # pool over H -> (C2, W)

        # fused squeeze conv1 + bn1 (folded) + h_swish on the concatenated operand
        z = jnp.dot(wc1, cat_ref[...], preferred_element_type=jnp.float32) + bc1
        z = (jnp.clip(z + 3.0, 0.0, 6.0) / 6.0) * z       # h_swish, (mip, H+W)

        a_h = jax.nn.sigmoid(
            jnp.dot(wh, z[:, 0:H], preferred_element_type=jnp.float32) + bh)   # (C2, H)
        a_w = jax.nn.sigmoid(
            jnp.dot(ww, z[:, H:H + W], preferred_element_type=jnp.float32) + bw)  # (C2, W)

        attn = (a_h[:, :, None] * a_w[:, None, :]).reshape(C2, HW)
        out = x1 * attn                                    # lane-dense elementwise
        if add:                                            # shortcut (Cin == C2)
            out = out + x_img
        o_ref[i] = out.astype(o_ref.dtype)


def _pick_images_per_step(n):
    for nb in (8, 4, 2):
        if n % nb == 0:
            return nb
    return 1


def ca_bottleneck_pruned(x_nchw, params, add, *, images_per_step=None):
    """x_nchw: (N, Cin, H, W) float32. Returns (N, cv2out, H, W)."""
    (w1, b1, w2col, b2, wc1, bc1, wh, bh, ww, bw) = params
    N, Cin, H, W = x_nchw.shape
    C1 = w1.shape[0]
    C2 = w2col.shape[0]
    mip = wc1.shape[0]
    HW = H * W

    # Channel-major, spatially flattened: free reshape, no transpose glue.
    x = x_nchw.reshape(N, Cin, HW).astype(jnp.float32)

    nb = images_per_step if images_per_step is not None else _pick_images_per_step(N)
    assert N % nb == 0, "batch must be divisible by images_per_step"
    grid = (N // nb,)

    kernel = functools.partial(_ca_bottleneck_kernel, bool(add), nb, H, W)

    out_flat = pl.pallas_call(
        kernel,
        out_shape=jax.ShapeDtypeStruct((N, C2, HW), jnp.float32),
        grid_spec=pltpu.PrefetchScalarGridSpec(
            num_scalar_prefetch=0,
            grid=grid,
            in_specs=[
                pl.BlockSpec((nb, Cin, HW), lambda n: (n, 0, 0)),
                pl.BlockSpec((C1, Cin), lambda n: (0, 0)),
                pl.BlockSpec((C1, 1), lambda n: (0, 0)),
                pl.BlockSpec((C2, 9 * C1), lambda n: (0, 0)),
                pl.BlockSpec((C2, 1), lambda n: (0, 0)),
                pl.BlockSpec((mip, wc1.shape[1]), lambda n: (0, 0)),
                pl.BlockSpec((mip, 1), lambda n: (0, 0)),
                pl.BlockSpec((C2, mip), lambda n: (0, 0)),
                pl.BlockSpec((C2, 1), lambda n: (0, 0)),
                pl.BlockSpec((C2, mip), lambda n: (0, 0)),
                pl.BlockSpec((C2, 1), lambda n: (0, 0)),
            ],
            out_specs=pl.BlockSpec((nb, C2, HW), lambda n: (n, 0, 0)),
            scratch_shapes=[
                pltpu.VMEM((C1, H + 2, W + 2), jnp.float32),   # zero-padded cv1 output
                pltpu.VMEM((9 * C1, HW), jnp.float32),         # im2col buffer
                pltpu.VMEM((C2, H + W), jnp.float32),          # [x_h ; x_w] concat
            ],
        ),
        compiler_params=pltpu.CompilerParams(
            dimension_semantics=("parallel",),                 # independent per batch block
        ),
    )(x, w1, b1, w2col, b2, wc1, bc1, wh, bh, ww, bw)

    return out_flat.reshape(N, C2, H, W)                       # free reshape back to NCHW


def init_params(key, cv1in, cv1out, cv2out, ratio=32):
    """Deterministic synthetic parameters; BatchNorms folded into channel-major weights."""
    mip = max(8, cv1in // ratio)
    ks = jax.random.split(key, 20)

    def conv_w(k, shape, fan_in):
        bound = 1.0 / (fan_in ** 0.5)
        return jax.random.uniform(k, shape, jnp.float32, -bound, bound)

    def bn(k0, k1, k2, k3, c):
        gamma = jax.random.uniform(k0, (c,), jnp.float32, 0.5, 1.5)
        beta = 0.1 * jax.random.normal(k1, (c,), jnp.float32)
        mean = 0.1 * jax.random.normal(k2, (c,), jnp.float32)
        var = jax.random.uniform(k3, (c,), jnp.float32, 0.5, 1.5)
        return gamma, beta, mean, var

    # cv1 = Conv(cv1in, cv1out, 1): Conv2d(bias=False) + BN(eps=1e-3) + SiLU
    w_cv1 = conv_w(ks[0], (cv1out, cv1in, 1, 1), cv1in)
    g, b, m, v = bn(ks[1], ks[2], ks[3], ks[4], cv1out)
    s = g / jnp.sqrt(v + 1e-3)
    w1 = w_cv1[:, :, 0, 0] * s[:, None]                           # (cv1out, cv1in)
    b1 = (b - m * s).reshape(cv1out, 1)

    # cv2 = Conv(cv1out, cv2out, 3): Conv2d(bias=False) + BN(eps=1e-3) + SiLU
    w_cv2 = conv_w(ks[5], (cv2out, cv1out, 3, 3), cv1out * 9)
    g, b, m, v = bn(ks[6], ks[7], ks[8], ks[9], cv2out)
    s = g / jnp.sqrt(v + 1e-3)
    w2f = w_cv2 * s[:, None, None, None]                          # (cv2out, cv1out, 3, 3)
    w2_hwio = jnp.transpose(w2f, (2, 3, 1, 0))                    # (3,3,cv1out,cv2out) for ref
    # im2col ordering: col row = (dy*3 + dx) * C1 + c1
    w2col = jnp.transpose(w2f, (0, 2, 3, 1)).reshape(cv2out, 9 * cv1out)
    b2 = (b - m * s).reshape(cv2out, 1)

    # conv1 (1x1, bias=True) + bn1 (eps=1e-5)
    w_c1 = conv_w(ks[10], (mip, cv1in, 1, 1), cv1in)
    bias_c1 = conv_w(ks[11], (mip,), cv1in)
    g, b, m, v = bn(ks[12], ks[13], ks[14], ks[15], mip)
    s = g / jnp.sqrt(v + 1e-5)
    wc1 = w_c1[:, :, 0, 0] * s[:, None]                           # (mip, cv1in)
    bc1 = ((bias_c1 - m) * s + b).reshape(mip, 1)

    # conv_h / conv_w (1x1, bias=True), no BN
    w_h = conv_w(ks[16], (cv2out, mip, 1, 1), mip)
    b_h = conv_w(ks[17], (cv2out,), mip)
    w_w = conv_w(ks[18], (cv2out, mip, 1, 1), mip)
    b_w = conv_w(ks[19], (cv2out,), mip)
    wh = w_h[:, :, 0, 0]                                          # (cv2out, mip)
    bh = b_h.reshape(cv2out, 1)
    ww = w_w[:, :, 0, 0]
    bw = b_w.reshape(cv2out, 1)

    add = (cv1in == cv2out)                                       # shortcut=True default
    params = (w1, b1, w2col, b2, wc1, bc1, wh, bh, ww, bw)
    return params, w2_hwio, add


def reference(x_nchw, params, w2_hwio, add):
    """Pure-JAX (XLA) reference of the same folded forward, for a sanity check."""
    w1, b1, w2col, b2, wc1, bc1, wh, bh, ww, bw = params
    N, Cin, H, W = x_nchw.shape
    x = x_nchw.astype(jnp.float32)

    t = jnp.einsum('oc,nchw->nohw', w1, x) + b1[None, :, :, None]
    t = t * jax.nn.sigmoid(t)
    x1 = lax.conv_general_dilated(t, w2_hwio, (1, 1), 'SAME',
                                  dimension_numbers=('NCHW', 'HWIO', 'NCHW'))
    x1 = x1 + b2[None, :, :, None]
    x1 = x1 * jax.nn.sigmoid(x1)

    x_h = jnp.mean(x1, axis=3)                                    # (N, C2, H)
    x_w = jnp.mean(x1, axis=2)                                    # (N, C2, W)
    y = jnp.concatenate([x_h, x_w], axis=2)                       # (N, C2, H+W)
    z = jnp.einsum('mc,ncp->nmp', wc1, y) + bc1[None]
    z = (jnp.clip(z + 3.0, 0.0, 6.0) / 6.0) * z                   # h_swish
    a_h = jax.nn.sigmoid(jnp.einsum('om,nmp->nop', wh, z[:, :, :H]) + bh[None])
    a_w = jax.nn.sigmoid(jnp.einsum('om,nmp->nop', ww, z[:, :, H:]) + bw[None])

    out = x1 * a_w[:, :, None, :] * a_h[:, :, :, None]
    if add:
        out = out + x
    return out


if __name__ == "__main__":
    key = jax.random.PRNGKey(0)
    kx, kp = jax.random.split(key)

    N, Cin, H, W = 2, 4, 16, 16
    cv1out, cv2out = 4, 4

    x = jax.random.normal(kx, (N, Cin, H, W), jnp.float32)
    params, w2_hwio, add = init_params(kp, Cin, cv1out, cv2out)

    out = ca_bottleneck_pruned(x, params, add)
    out = jax.block_until_ready(out)
    assert out.shape == (N, cv2out, H, W)

    ref = reference(x, params, w2_hwio, add)
    if not jnp.allclose(out, ref, atol=5e-2, rtol=5e-2):
        err = float(jnp.max(jnp.abs(out - ref)))
        raise AssertionError(f"Pallas kernel disagrees with JAX reference (max abs err {err})")

    print("KERNEL_OK")
</pallas_src>

<mosaic_0001>
module attributes {stable_mosaic.version = 11 : i64} {
  func.func @_ca_bottleneck_kernel(%arg0: i32, %arg1: memref<2x4x256xf32, #tpu.memory_space<vmem>>, %arg2: memref<4x4xf32, #tpu.memory_space<vmem>>, %arg3: memref<4x1xf32, #tpu.memory_space<vmem>>, %arg4: memref<4x36xf32, #tpu.memory_space<vmem>>, %arg5: memref<4x1xf32, #tpu.memory_space<vmem>>, %arg6: memref<8x4xf32, #tpu.memory_space<vmem>>, %arg7: memref<8x1xf32, #tpu.memory_space<vmem>>, %arg8: memref<4x8xf32, #tpu.memory_space<vmem>>, %arg9: memref<4x1xf32, #tpu.memory_space<vmem>>, %arg10: memref<4x8xf32, #tpu.memory_space<vmem>>, %arg11: memref<4x1xf32, #tpu.memory_space<vmem>>, %arg12: memref<2x4x256xf32, #tpu.memory_space<vmem>>, %arg13: memref<4x18x18xf32, #tpu.memory_space<vmem>>, %arg14: memref<36x256xf32, #tpu.memory_space<vmem>>, %arg15: memref<4x32xf32, #tpu.memory_space<vmem>>) attributes {dimension_semantics = [#tpu.dimension_semantics<parallel>], iteration_bounds = array<i64: 1>, scalar_prefetch = 0 : i64, scratch_operands = 3 : i64, tpu.core_type = #tpu.core_type<tc>, window_params = [{transform_indices = @transform_0, window_bounds = array<i64: 2, 4, 256>}, {pipeline_mode = #tpu.pipeline_mode<synchronous>, transform_indices = @transform_1, window_bounds = array<i64: 4, 4>}, {pipeline_mode = #tpu.pipeline_mode<synchronous>, transform_indices = @transform_2, window_bounds = array<i64: 4, 1>}, {pipeline_mode = #tpu.pipeline_mode<synchronous>, transform_indices = @transform_3, window_bounds = array<i64: 4, 36>}, {pipeline_mode = #tpu.pipeline_mode<synchronous>, transform_indices = @transform_4, window_bounds = array<i64: 4, 1>}, {pipeline_mode = #tpu.pipeline_mode<synchronous>, transform_indices = @transform_5, window_bounds = array<i64: 8, 4>}, {pipeline_mode = #tpu.pipeline_mode<synchronous>, transform_indices = @transform_6, window_bounds = array<i64: 8, 1>}, {pipeline_mode = #tpu.pipeline_mode<synchronous>, transform_indices = @transform_7, window_bounds = array<i64: 4, 8>}, {pipeline_mode = #tpu.pipeline_mode<synchronous>, transform_indices = @transform_8, window_bounds = array<i64: 4, 1>}, {pipeline_mode = #tpu.pipeline_mode<synchronous>, transform_indices = @transform_9, window_bounds = array<i64: 4, 8>}, {pipeline_mode = #tpu.pipeline_mode<synchronous>, transform_indices = @transform_10, window_bounds = array<i64: 4, 1>}, {transform_indices = @transform_11, window_bounds = array<i64: 2, 4, 256>}]} {
    %cst = arith.constant 0.000000e+00 : f32
    %0 = vector.broadcast %cst : f32 to vector<4x1x18xf32>
    %c0 = arith.constant 0 : index
    %c0_0 = arith.constant 0 : index
    %c0_1 = arith.constant 0 : index
    %1 = vector.load %arg13[%c0, %c0_0, %c0_1] : memref<4x18x18xf32, #tpu.memory_space<vmem>>, vector<4x1x18xf32>
    tpu.vector_store %arg13[%c0, %c0_0, %c0_1], %0 {strides = array<i32>} : memref<4x18x18xf32, #tpu.memory_space<vmem>>, vector<4x1x18xf32>,
    %cst_2 = arith.constant 0.000000e+00 : f32
    %2 = vector.broadcast %cst_2 : f32 to vector<4x1x18xf32>
    %c0_3 = arith.constant 0 : index
    %c17 = arith.constant 17 : index
    %c0_4 = arith.constant 0 : index
    %3 = vector.load %arg13[%c0_3, %c17, %c0_4] : memref<4x18x18xf32, #tpu.memory_space<vmem>>, vector<4x1x18xf32>
    tpu.vector_store %arg13[%c0_3, %c17, %c0_4], %2 {strides = array<i32>} : memref<4x18x18xf32, #tpu.memory_space<vmem>>, vector<4x1x18xf32>,
    %cst_5 = arith.constant 0.000000e+00 : f32
    %4 = vector.broadcast %cst_5 : f32 to vector<4x18x1xf32>
    %c0_6 = arith.constant 0 : index
    %c0_7 = arith.constant 0 : index
    %c0_8 = arith.constant 0 : index
    %5 = vector.load %arg13[%c0_6, %c0_7, %c0_8] : memref<4x18x18xf32, #tpu.memory_space<vmem>>, vector<4x18x1xf32>
    tpu.vector_store %arg13[%c0_6, %c0_7, %c0_8], %4 {strides = array<i32>} : memref<4x18x18xf32, #tpu.memory_space<vmem>>, vector<4x18x1xf32>,
    %cst_9 = arith.constant 0.000000e+00 : f32
    %6 = vector.broadcast %cst_9 : f32 to vector<4x18x1xf32>
    %c0_10 = arith.constant 0 : index
    %c0_11 = arith.constant 0 : index
    %c17_12 = arith.constant 17 : index
    %7 = vector.load %arg13[%c0_10, %c0_11, %c17_12] : memref<4x18x18xf32, #tpu.memory_space<vmem>>, vector<4x18x1xf32>
    tpu.vector_store %arg13[%c0_10, %c0_11, %c17_12], %6 {strides = array<i32>} : memref<4x18x18xf32, #tpu.memory_space<vmem>>, vector<4x18x1xf32>,
    %c0_13 = arith.constant 0 : index
    %c0_14 = arith.constant 0 : index
    %8 = vector.load %arg2[%c0_13, %c0_14] : memref<4x4xf32, #tpu.memory_space<vmem>>, vector<4x4xf32>
    %c0_15 = arith.constant 0 : index
    %c0_16 = arith.constant 0 : index
    %9 = vector.load %arg4[%c0_15, %c0_16] : memref<4x36xf32, #tpu.memory_space<vmem>>, vector<4x36xf32>
    %c0_17 = arith.constant 0 : index
    %c0_18 = arith.constant 0 : index
    %10 = vector.load %arg6[%c0_17, %c0_18] : memref<8x4xf32, #tpu.memory_space<vmem>>, vector<8x4xf32>
    %c0_19 = arith.constant 0 : index
    %c0_20 = arith.constant 0 : index
    %11 = vector.load %arg8[%c0_19, %c0_20] : memref<4x8xf32, #tpu.memory_space<vmem>>, vector<4x8xf32>
    %c0_21 = arith.constant 0 : index
    %c0_22 = arith.constant 0 : index
    %12 = vector.load %arg10[%c0_21, %c0_22] : memref<4x8xf32, #tpu.memory_space<vmem>>, vector<4x8xf32>
    %c0_23 = arith.constant 0 : index
    %c0_24 = arith.constant 0 : index
    %13 = vector.load %arg3[%c0_23, %c0_24] : memref<4x1xf32, #tpu.memory_space<vmem>>, vector<4x1xf32>
    %c0_25 = arith.constant 0 : index
    %c0_26 = arith.constant 0 : index
    %14 = vector.load %arg5[%c0_25, %c0_26] : memref<4x1xf32, #tpu.memory_space<vmem>>, vector<4x1xf32>
    %c0_27 = arith.constant 0 : index
    %c0_28 = arith.constant 0 : index
    %15 = vector.load %arg7[%c0_27, %c0_28] : memref<8x1xf32, #tpu.memory_space<vmem>>, vector<8x1xf32>
    %c0_29 = arith.constant 0 : index
    %c0_30 = arith.constant 0 : index
    %16 = vector.load %arg9[%c0_29, %c0_30] : memref<4x1xf32, #tpu.memory_space<vmem>>, vector<4x1xf32>
    %c0_31 = arith.constant 0 : index
    %c0_32 = arith.constant 0 : index
    %17 = vector.load %arg11[%c0_31, %c0_32] : memref<4x1xf32, #tpu.memory_space<vmem>>, vector<4x1xf32>
    %c0_33 = arith.constant 0 : index
    %c0_34 = arith.constant 0 : index
    %c0_35 = arith.constant 0 : index
    %18 = vector.load %arg1[%c0_33, %c0_34, %c0_35] : memref<2x4x256xf32, #tpu.memory_space<vmem>>, vector<1x4x256xf32>
    %19 = vector.shape_cast %18 : vector<1x4x256xf32> to vector<4x256xf32>
    %cst_36 = arith.constant dense<0.000000e+00> : vector<4x256xf32>
    %20 = tpu.matmul %8, %19, %cst_36 {dimension_numbers = #tpu.dot_dimension_numbers<[1], [0], [0], [1], [0, 0, 1, 1], [], []>} : vector<4x4xf32>, vector<4x256xf32>, vector<4x256xf32> -> vector<4x256xf32>
    %21 = vector.broadcast %13 : vector<4x1xf32> to vector<4x256xf32>
    %22 = arith.addf %20, %21 : vector<4x256xf32>
    %23 = arith.negf %22 : vector<4x256xf32>
    %24 = math.exp %23 : vector<4x256xf32>
    %cst_37 = arith.constant 1.000000e+00 : f32
    %25 = vector.broadcast %cst_37 : f32 to vector<4x256xf32>
    %26 = arith.addf %25, %24 : vector<4x256xf32>
    %27 = arith.divf %25, %26 : vector<4x256xf32>
    %28 = arith.mulf %22, %27 : vector<4x256xf32>
    %29 = vector.shape_cast %28 : vector<4x256xf32> to vector<4x16x16xf32>
    %c0_38 = arith.constant 0 : index
    %c1 = arith.constant 1 : index
    %c1_39 = arith.constant 1 : index
    %30 = vector.load %arg13[%c0_38, %c1, %c1_39] : memref<4x18x18xf32, #tpu.memory_space<vmem>>, vector<4x16x16xf32>
    tpu.vector_store %arg13[%c0_38, %c1, %c1_39], %29 {strides = array<i32>} : memref<4x18x18xf32, #tpu.memory_space<vmem>>, vector<4x16x16xf32>,
    %c0_40 = arith.constant 0 : index
    %c0_41 = arith.constant 0 : index
    %c0_42 = arith.constant 0 : index
    %31 = vector.load %arg13[%c0_40, %c0_41, %c0_42] : memref<4x18x18xf32, #tpu.memory_space<vmem>>, vector<4x16x16xf32>
    %32 = vector.shape_cast %31 : vector<4x16x16xf32> to vector<4x256xf32>
    %c0_43 = arith.constant 0 : index
    %c0_44 = arith.constant 0 : index
    %33 = vector.load %arg14[%c0_43, %c0_44] : memref<36x256xf32, #tpu.memory_space<vmem>>, vector<4x256xf32>
    tpu.vector_store %arg14[%c0_43, %c0_44], %32 {strides = array<i32>} : memref<36x256xf32, #tpu.memory_space<vmem>>, vector<4x256xf32>,
    %c0_45 = arith.constant 0 : index
    %c0_46 = arith.constant 0 : index
    %c1_47 = arith.constant 1 : index
    %34 = vector.load %arg13[%c0_45, %c0_46, %c1_47] : memref<4x18x18xf32, #tpu.memory_space<vmem>>, vector<4x16x16xf32>
    %35 = vector.shape_cast %34 : vector<4x16x16xf32> to vector<4x256xf32>
    %c4 = arith.constant 4 : index
    %c0_48 = arith.constant 0 : index
    %36 = vector.load %arg14[%c4, %c0_48] : memref<36x256xf32, #tpu.memory_space<vmem>>, vector<4x256xf32>
    tpu.vector_store %arg14[%c4, %c0_48], %35 {strides = array<i32>} : memref<36x256xf32, #tpu.memory_space<vmem>>, vector<4x256xf32>,
    %c0_49 = arith.constant 0 : index
    %c0_50 = arith.constant 0 : index
    %c2 = arith.constant 2 : index
    %37 = vector.load %arg13[%c0_49, %c0_50, %c2] : memref<4x18x18xf32, #tpu.memory_space<vmem>>, vector<4x16x16xf32>
    %38 = vector.shape_cast %37 : vector<4x16x16xf32> to vector<4x256xf32>
    %c8 = arith.constant 8 : index
    %c0_51 = arith.constant 0 : index
    %39 = vector.load %arg14[%c8, %c0_51] : memref<36x256xf32, #tpu.memory_space<vmem>>, vector<4x256xf32>
    tpu.vector_store %arg14[%c8, %c0_51], %38 {strides = array<i32>} : memref<36x256xf32, #tpu.memory_space<vmem>>, vector<4x256xf32>,
    %c0_52 = arith.constant 0 : index
    %c1_53 = arith.constant 1 : index
    %c0_54 = arith.constant 0 : index
    %40 = vector.load %arg13[%c0_52, %c1_53, %c0_54] : memref<4x18x18xf32, #tpu.memory_space<vmem>>, vector<4x16x16xf32>
    %41 = vector.shape_cast %40 : vector<4x16x16xf32> to vector<4x256xf32>
    %c12 = arith.constant 12 : index
    %c0_55 = arith.constant 0 : index
    %42 = vector.load %arg14[%c12, %c0_55] : memref<36x256xf32, #tpu.memory_space<vmem>>, vector<4x256xf32>
    tpu.vector_store %arg14[%c12, %c0_55], %41 {strides = array<i32>} : memref<36x256xf32, #tpu.memory_space<vmem>>, vector<4x256xf32>,
    %c0_56 = arith.constant 0 : index
    %c1_57 = arith.constant 1 : index
    %c1_58 = arith.constant 1 : index
    %43 = vector.load %arg13[%c0_56, %c1_57, %c1_58] : memref<4x18x18xf32, #tpu.memory_space<vmem>>, vector<4x16x16xf32>
    %44 = vector.shape_cast %43 : vector<4x16x16xf32> to vector<4x256xf32>
    %c16 = arith.constant 16 : index
    %c0_59 = arith.constant 0 : index
    %45 = vector.load %arg14[%c16, %c0_59] : memref<36x256xf32, #tpu.memory_space<vmem>>, vector<4x256xf32>
    tpu.vector_store %arg14[%c16, %c0_59], %44 {strides = array<i32>} : memref<36x256xf32, #tpu.memory_space<vmem>>, vector<4x256xf32>,
    %c0_60 = arith.constant 0 : index
    %c1_61 = arith.constant 1 : index
    %c2_62 = arith.constant 2 : index
    %46 = vector.load %arg13[%c0_60, %c1_61, %c2_62] : memref<4x18x18xf32, #tpu.memory_space<vmem>>, vector<4x16x16xf32>
    %47 = vector.shape_cast %46 : vector<4x16x16xf32> to vector<4x256xf32>
    %c20 = arith.constant 20 : index
    %c0_63 = arith.constant 0 : index
    %48 = vector.load %arg14[%c20, %c0_63] : memref<36x256xf32, #tpu.memory_space<vmem>>, vector<4x256xf32>
    tpu.vector_store %arg14[%c20, %c0_63], %47 {strides = array<i32>} : memref<36x256xf32, #tpu.memory_space<vmem>>, vector<4x256xf32>,
    %c0_64 = arith.constant 0 : index
    %c2_65 = arith.constant 2 : index
    %c0_66 = arith.constant 0 : index
    %49 = vector.load %arg13[%c0_64, %c2_65, %c0_66] : memref<4x18x18xf32, #tpu.memory_space<vmem>>, vector<4x16x16xf32>
    %50 = vector.shape_cast %49 : vector<4x16x16xf32> to vector<4x256xf32>
    %c24 = arith.constant 24 : index
    %c0_67 = arith.constant 0 : index
    %51 = vector.load %arg14[%c24, %c0_67] : memref<36x256xf32, #tpu.memory_space<vmem>>, vector<4x256xf32>
    tpu.vector_store %arg14[%c24, %c0_67], %50 {strides = array<i32>} : memref<36x256xf32, #tpu.memory_space<vmem>>, vector<4x256xf32>,
    %c0_68 = arith.constant 0 : index
    %c2_69 = arith.constant 2 : index
    %c1_70 = arith.constant 1 : index
    %52 = vector.load %arg13[%c0_68, %c2_69, %c1_70] : memref<4x18x18xf32, #tpu.memory_space<vmem>>, vector<4x16x16xf32>
    %53 = vector.shape_cast %52 : vector<4x16x16xf32> to vector<4x256xf32>
    %c28 = arith.constant 28 : index
    %c0_71 = arith.constant 0 : index
    %54 = vector.load %arg14[%c28, %c0_71] : memref<36x256xf32, #tpu.memory_space<vmem>>, vector<4x256xf32>
    tpu.vector_store %arg14[%c28, %c0_71], %53 {strides = array<i32>} : memref<36x256xf32, #tpu.memory_space<vmem>>, vector<4x256xf32>,
    %c0_72 = arith.constant 0 : index
    %c2_73 = arith.constant 2 : index
    %c2_74 = arith.constant 2 : index
    %55 = vector.load %arg13[%c0_72, %c2_73, %c2_74] : memref<4x18x18xf32, #tpu.memory_space<vmem>>, vector<4x16x16xf32>
    %56 = vector.shape_cast %55 : vector<4x16x16xf32> to vector<4x256xf32>
    %c32 = arith.constant 32 : index
    %c0_75 = arith.constant 0 : index
    %57 = vector.load %arg14[%c32, %c0_75] : memref<36x256xf32, #tpu.memory_space<vmem>>, vector<4x256xf32>
    tpu.vector_store %arg14[%c32, %c0_75], %56 {strides = array<i32>} : memref<36x256xf32, #tpu.memory_space<vmem>>, vector<4x256xf32>,
    %c0_76 = arith.constant 0 : index
    %c0_77 = arith.constant 0 : index
    %58 = vector.load %arg14[%c0_76, %c0_77] : memref<36x256xf32, #tpu.memory_space<vmem>>, vector<36x256xf32>
    %cst_78 = arith.constant dense<0.000000e+00> : vector<4x256xf32>
    %59 = tpu.matmul %9, %58, %cst_78 {dimension_numbers = #tpu.dot_dimension_numbers<[1], [0], [0], [1], [0, 0, 1, 1], [], []>} : vector<4x36xf32>, vector<36x256xf32>, vector<4x256xf32> -> vector<4x256xf32>
    %60 = vector.broadcast %14 : vector<4x1xf32> to vector<4x256xf32>
    %61 = arith.addf %59, %60 : vector<4x256xf32>
    %62 = arith.negf %61 : vector<4x256xf32>
    %63 = math.exp %62 : vector<4x256xf32>
    %cst_79 = arith.constant 1.000000e+00 : f32
    %64 = vector.broadcast %cst_79 : f32 to vector<4x256xf32>
    %65 = arith.addf %64, %63 : vector<4x256xf32>
    %66 = arith.divf %64, %65 : vector<4x256xf32>
    %67 = arith.mulf %61, %66 : vector<4x256xf32>
    %68 = vector.shape_cast %67 : vector<4x256xf32> to vector<4x16x16xf32>
    %cst_80 = arith.constant dense<0.000000e+00> : vector<4x16xf32>
    %69 = vector.multi_reduction <add>, %68, %cst_80 [2] : vector<4x16x16xf32> to vector<4x16xf32>
    %cst_81 = arith.constant 1.600000e+01 : f32
    %70 = vector.broadcast %cst_81 : f32 to vector<4x16xf32>
    %71 = arith.divf %69, %70 : vector<4x16xf32>
    %c0_82 = arith.constant 0 : index
    %c0_83 = arith.constant 0 : index
    %72 = vector.load %arg15[%c0_82, %c0_83] : memref<4x32xf32, #tpu.memory_space<vmem>>, vector<4x16xf32>
    tpu.vector_store %arg15[%c0_82, %c0_83], %71 {strides = array<i32>} : memref<4x32xf32, #tpu.memory_space<vmem>>, vector<4x16xf32>,
    %cst_84 = arith.constant dense<0.000000e+00> : vector<4x16xf32>
    %73 = vector.multi_reduction <add>, %68, %cst_84 [1] : vector<4x16x16xf32> to vector<4x16xf32>
    %cst_85 = arith.constant 1.600000e+01 : f32
    %74 = vector.broadcast %cst_85 : f32 to vector<4x16xf32>
    %75 = arith.divf %73, %74 : vector<4x16xf32>
    %c0_86 = arith.constant 0 : index
    %c16_87 = arith.constant 16 : index
    %76 = vector.load %arg15[%c0_86, %c16_87] : memref<4x32xf32, #tpu.memory_space<vmem>>, vector<4x16xf32>
    tpu.vector_store %arg15[%c0_86, %c16_87], %75 {strides = array<i32>} : memref<4x32xf32, #tpu.memory_space<vmem>>, vector<4x16xf32>,
    %c0_88 = arith.constant 0 : index
    %c0_89 = arith.constant 0 : index
    %77 = vector.load %arg15[%c0_88, %c0_89] : memref<4x32xf32, #tpu.memory_space<vmem>>, vector<4x32xf32>
    %cst_90 = arith.constant dense<0.000000e+00> : vector<8x32xf32>
    %78 = tpu.matmul %10, %77, %cst_90 {dimension_numbers = #tpu.dot_dimension_numbers<[1], [0], [0], [1], [0, 0, 1, 1], [], []>} : vector<8x4xf32>, vector<4x32xf32>, vector<8x32xf32> -> vector<8x32xf32>
    %79 = vector.broadcast %15 : vector<8x1xf32> to vector<8x32xf32>
    %80 = arith.addf %78, %79 : vector<8x32xf32>
    %cst_91 = arith.constant 3.000000e+00 : f32
    %81 = vector.broadcast %cst_91 : f32 to vector<8x32xf32>
    %82 = arith.addf %80, %81 : vector<8x32xf32>
    %cst_92 = arith.constant 0.000000e+00 : f32
    %cst_93 = arith.constant 6.000000e+00 : f32
    %83 = vector.broadcast %cst_92 : f32 to vector<8x32xf32>
    %84 = arith.maximumf %83, %82 : vector<8x32xf32>
    %85 = vector.broadcast %cst_93 : f32 to vector<8x32xf32>
    %86 = arith.minimumf %85, %84 : vector<8x32xf32>
    %cst_94 = arith.constant 6.000000e+00 : f32
    %87 = vector.broadcast %cst_94 : f32 to vector<8x32xf32>
    %88 = arith.divf %86, %87 : vector<8x32xf32>
    %89 = arith.mulf %88, %80 : vector<8x32xf32>
    %90 = vector.extract_strided_slice %89 {offsets = [0, 0], sizes = [8, 16], strides = [1, 1]} : vector<8x32xf32> to vector<8x16xf32>
    %cst_95 = arith.constant dense<0.000000e+00> : vector<4x16xf32>
    %91 = tpu.matmul %11, %90, %cst_95 {dimension_numbers = #tpu.dot_dimension_numbers<[1], [0], [0], [1], [0, 0, 1, 1], [], []>} : vector<4x8xf32>, vector<8x16xf32>, vector<4x16xf32> -> vector<4x16xf32>
    %92 = vector.broadcast %16 : vector<4x1xf32> to vector<4x16xf32>
    %93 = arith.addf %91, %92 : vector<4x16xf32>
    %94 = arith.negf %93 : vector<4x16xf32>
    %95 = math.exp %94 : vector<4x16xf32>
    %cst_96 = arith.constant 1.000000e+00 : f32
    %96 = vector.broadcast %cst_96 : f32 to vector<4x16xf32>
    %97 = arith.addf %96, %95 : vector<4x16xf32>
    %98 = arith.divf %96, %97 : vector<4x16xf32>
    %99 = vector.extract_strided_slice %89 {offsets = [0, 16], sizes = [8, 16], strides = [1, 1]} : vector<8x32xf32> to vector<8x16xf32>
    %cst_97 = arith.constant dense<0.000000e+00> : vector<4x16xf32>
    %100 = tpu.matmul %12, %99, %cst_97 {dimension_numbers = #tpu.dot_dimension_numbers<[1], [0], [0], [1], [0, 0, 1, 1], [], []>} : vector<4x8xf32>, vector<8x16xf32>, vector<4x16xf32> -> vector<4x16xf32>
    %101 = vector.broadcast %17 : vector<4x1xf32> to vector<4x16xf32>
    %102 = arith.addf %100, %101 : vector<4x16xf32>
    %103 = arith.negf %102 : vector<4x16xf32>
    %104 = math.exp %103 : vector<4x16xf32>
    %cst_98 = arith.constant 1.000000e+00 : f32
    %105 = vector.broadcast %cst_98 : f32 to vector<4x16xf32>
    %106 = arith.addf %105, %104 : vector<4x16xf32>
    %107 = arith.divf %105, %106 : vector<4x16xf32>
    %108 = vector.shape_cast %98 : vector<4x16xf32> to vector<4x16x1xf32>
    %109 = vector.shape_cast %107 : vector<4x16xf32> to vector<4x1x16xf32>
    %110 = vector.broadcast %108 : vector<4x16x1xf32> to vector<4x16x16xf32>
    %111 = vector.broadcast %109 : vector<4x1x16xf32> to vector<4x16x16xf32>
    %112 = arith.mulf %110, %111 : vector<4x16x16xf32>
    %113 = vector.shape_cast %112 : vector<4x16x16xf32> to vector<4x256xf32>
    %114 = arith.mulf %67, %113 : vector<4x256xf32>
    %115 = arith.addf %114, %19 : vector<4x256xf32>
    %c0_99 = arith.constant 0 : index
    %c0_100 = arith.constant 0 : index
    %c0_101 = arith.constant 0 : index
    %116 = vector.load %arg12[%c0_99, %c0_100, %c0_101] : memref<2x4x256xf32, #tpu.memory_space<vmem>>, vector<1x4x256xf32>
    %117 = vector.shape_cast %116 : vector<1x4x256xf32> to vector<4x256xf32>
    %118 = vector.shape_cast %115 : vector<4x256xf32> to vector<1x4x256xf32>
    tpu.vector_store %arg12[%c0_99, %c0_100, %c0_101], %118 {strides = array<i32>} : memref<2x4x256xf32, #tpu.memory_space<vmem>>, vector<1x4x256xf32>,
    %c1_102 = arith.constant 1 : index
    %c0_103 = arith.constant 0 : index
    %c0_104 = arith.constant 0 : index
    %119 = vector.load %arg1[%c1_102, %c0_103, %c0_104] : memref<2x4x256xf32, #tpu.memory_space<vmem>>, vector<1x4x256xf32>
    %120 = vector.shape_cast %119 : vector<1x4x256xf32> to vector<4x256xf32>
    %cst_105 = arith.constant dense<0.000000e+00> : vector<4x256xf32>
    %121 = tpu.matmul %8, %120, %cst_105 {dimension_numbers = #tpu.dot_dimension_numbers<[1], [0], [0], [1], [0, 0, 1, 1], [], []>} : vector<4x4xf32>, vector<4x256xf32>, vector<4x256xf32> -> vector<4x256xf32>
    %122 = vector.broadcast %13 : vector<4x1xf32> to vector<4x256xf32>
    %123 = arith.addf %121, %122 : vector<4x256xf32>
    %124 = arith.negf %123 : vector<4x256xf32>
    %125 = math.exp %124 : vector<4x256xf32>
    %cst_106 = arith.constant 1.000000e+00 : f32
    %126 = vector.broadcast %cst_106 : f32 to vector<4x256xf32>
    %127 = arith.addf %126, %125 : vector<4x256xf32>
    %128 = arith.divf %126, %127 : vector<4x256xf32>
    %129 = arith.mulf %123, %128 : vector<4x256xf32>
    %130 = vector.shape_cast %129 : vector<4x256xf32> to vector<4x16x16xf32>
    %c0_107 = arith.constant 0 : index
    %c1_108 = arith.constant 1 : index
    %c1_109 = arith.constant 1 : index
    %131 = vector.load %arg13[%c0_107, %c1_108, %c1_109] : memref<4x18x18xf32, #tpu.memory_space<vmem>>, vector<4x16x16xf32>
    tpu.vector_store %arg13[%c0_107, %c1_108, %c1_109], %130 {strides = array<i32>} : memref<4x18x18xf32, #tpu.memory_space<vmem>>, vector<4x16x16xf32>,
    %c0_110 = arith.constant 0 : index
    %c0_111 = arith.constant 0 : index
    %c0_112 = arith.constant 0 : index
    %132 = vector.load %arg13[%c0_110, %c0_111, %c0_112] : memref<4x18x18xf32, #tpu.memory_space<vmem>>, vector<4x16x16xf32>
    %133 = vector.shape_cast %132 : vector<4x16x16xf32> to vector<4x256xf32>
    %c0_113 = arith.constant 0 : index
    %c0_114 = arith.constant 0 : index
    %134 = vector.load %arg14[%c0_113, %c0_114] : memref<36x256xf32, #tpu.memory_space<vmem>>, vector<4x256xf32>
    tpu.vector_store %arg14[%c0_113, %c0_114], %133 {strides = array<i32>} : memref<36x256xf32, #tpu.memory_space<vmem>>, vector<4x256xf32>,
    %c0_115 = arith.constant 0 : index
    %c0_116 = arith.constant 0 : index
    %c1_117 = arith.constant 1 : index
    %135 = vector.load %arg13[%c0_115, %c0_116, %c1_117] : memref<4x18x18xf32, #tpu.memory_space<vmem>>, vector<4x16x16xf32>
    %136 = vector.shape_cast %135 : vector<4x16x16xf32> to vector<4x256xf32>
    %c4_118 = arith.constant 4 : index
    %c0_119 = arith.constant 0 : index
    %137 = vector.load %arg14[%c4_118, %c0_119] : memref<36x256xf32, #tpu.memory_space<vmem>>, vector<4x256xf32>
    tpu.vector_store %arg14[%c4_118, %c0_119], %136 {strides = array<i32>} : memref<36x256xf32, #tpu.memory_space<vmem>>, vector<4x256xf32>,
    %c0_120 = arith.constant 0 : index
    %c0_121 = arith.constant 0 : index
    %c2_122 = arith.constant 2 : index
    %138 = vector.load %arg13[%c0_120, %c0_121, %c2_122] : memref<4x18x18xf32, #tpu.memory_space<vmem>>, vector<4x16x16xf32>
    %139 = vector.shape_cast %138 : vector<4x16x16xf32> to vector<4x256xf32>
    %c8_123 = arith.constant 8 : index
    %c0_124 = arith.constant 0 : index
    %140 = vector.load %arg14[%c8_123, %c0_124] : memref<36x256xf32, #tpu.memory_space<vmem>>, vector<4x256xf32>
    tpu.vector_store %arg14[%c8_123, %c0_124], %139 {strides = array<i32>} : memref<36x256xf32, #tpu.memory_space<vmem>>, vector<4x256xf32>,
    %c0_125 = arith.constant 0 : index
    %c1_126 = arith.constant 1 : index
    %c0_127 = arith.constant 0 : index
    %141 = vector.load %arg13[%c0_125, %c1_126, %c0_127] : memref<4x18x18xf32, #tpu.memory_space<vmem>>, vector<4x16x16xf32>
    %142 = vector.shape_cast %141 : vector<4x16x16xf32> to vector<4x256xf32>
    %c12_128 = arith.constant 12 : index
    %c0_129 = arith.constant 0 : index
    %143 = vector.load %arg14[%c12_128, %c0_129] : memref<36x256xf32, #tpu.memory_space<vmem>>, vector<4x256xf32>
    tpu.vector_store %arg14[%c12_128, %c0_129], %142 {strides = array<i32>} : memref<36x256xf32, #tpu.memory_space<vmem>>, vector<4x256xf32>,
    %c0_130 = arith.constant 0 : index
    %c1_131 = arith.constant 1 : index
    %c1_132 = arith.constant 1 : index
    %144 = vector.load %arg13[%c0_130, %c1_131, %c1_132] : memref<4x18x18xf32, #tpu.memory_space<vmem>>, vector<4x16x16xf32>
    %145 = vector.shape_cast %144 : vector<4x16x16xf32> to vector<4x256xf32>
    %c16_133 = arith.constant 16 : index
    %c0_134 = arith.constant 0 : index
    %146 = vector.load %arg14[%c16_133, %c0_134] : memref<36x256xf32, #tpu.memory_space<vmem>>, vector<4x256xf32>
    tpu.vector_store %arg14[%c16_133, %c0_134], %145 {strides = array<i32>} : memref<36x256xf32, #tpu.memory_space<vmem>>, vector<4x256xf32>,
    %c0_135 = arith.constant 0 : index
    %c1_136 = arith.constant 1 : index
    %c2_137 = arith.constant 2 : index
    %147 = vector.load %arg13[%c0_135, %c1_136, %c2_137] : memref<4x18x18xf32, #tpu.memory_space<vmem>>, vector<4x16x16xf32>
    %148 = vector.shape_cast %147 : vector<4x16x16xf32> to vector<4x256xf32>
    %c20_138 = arith.constant 20 : index
    %c0_139 = arith.constant 0 : index
    %149 = vector.load %arg14[%c20_138, %c0_139] : memref<36x256xf32, #tpu.memory_space<vmem>>, vector<4x256xf32>
    tpu.vector_store %arg14[%c20_138, %c0_139], %148 {strides = array<i32>} : memref<36x256xf32, #tpu.memory_space<vmem>>, vector<4x256xf32>,
    %c0_140 = arith.constant 0 : index
    %c2_141 = arith.constant 2 : index
    %c0_142 = arith.constant 0 : index
    %150 = vector.load %arg13[%c0_140, %c2_141, %c0_142] : memref<4x18x18xf32, #tpu.memory_space<vmem>>, vector<4x16x16xf32>
    %151 = vector.shape_cast %150 : vector<4x16x16xf32> to vector<4x256xf32>
    %c24_143 = arith.constant 24 : index
    %c0_144 = arith.constant 0 : index
    %152 = vector.load %arg14[%c24_143, %c0_144] : memref<36x256xf32, #tpu.memory_space<vmem>>, vector<4x256xf32>
    tpu.vector_store %arg14[%c24_143, %c0_144], %151 {strides = array<i32>} : memref<36x256xf32, #tpu.memory_space<vmem>>, vector<4x256xf32>,
    %c0_145 = arith.constant 0 : index
    %c2_146 = arith.constant 2 : index
    %c1_147 = arith.constant 1 : index
    %153 = vector.load %arg13[%c0_145, %c2_146, %c1_147] : memref<4x18x18xf32, #tpu.memory_space<vmem>>, vector<4x16x16xf32>
    %154 = vector.shape_cast %153 : vector<4x16x16xf32> to vector<4x256xf32>
    %c28_148 = arith.constant 28 : index
    %c0_149 = arith.constant 0 : index
    %155 = vector.load %arg14[%c28_148, %c0_149] : memref<36x256xf32, #tpu.memory_space<vmem>>, vector<4x256xf32>
    tpu.vector_store %arg14[%c28_148, %c0_149], %154 {strides = array<i32>} : memref<36x256xf32, #tpu.memory_space<vmem>>, vector<4x256xf32>,
    %c0_150 = arith.constant 0 : index
    %c2_151 = arith.constant 2 : index
    %c2_152 = arith.constant 2 : index
    %156 = vector.load %arg13[%c0_150, %c2_151, %c2_152] : memref<4x18x18xf32, #tpu.memory_space<vmem>>, vector<4x16x16xf32>
    %157 = vector.shape_cast %156 : vector<4x16x16xf32> to vector<4x256xf32>
    %c32_153 = arith.constant 32 : index
    %c0_154 = arith.constant 0 : index
    %158 = vector.load %arg14[%c32_153, %c0_154] : memref<36x256xf32, #tpu.memory_space<vmem>>, vector<4x256xf32>
    tpu.vector_store %arg14[%c32_153, %c0_154], %157 {strides = array<i32>} : memref<36x256xf32, #tpu.memory_space<vmem>>, vector<4x256xf32>,
    %c0_155 = arith.constant 0 : index
    %c0_156 = arith.constant 0 : index
    %159 = vector.load %arg14[%c0_155, %c0_156] : memref<36x256xf32, #tpu.memory_space<vmem>>, vector<36x256xf32>
    %cst_157 = arith.constant dense<0.000000e+00> : vector<4x256xf32>
    %160 = tpu.matmul %9, %159, %cst_157 {dimension_numbers = #tpu.dot_dimension_numbers<[1], [0], [0], [1], [0, 0, 1, 1], [], []>} : vector<4x36xf32>, vector<36x256xf32>, vector<4x256xf32> -> vector<4x256xf32>
    %161 = vector.broadcast %14 : vector<4x1xf32> to vector<4x256xf32>
    %162 = arith.addf %160, %161 : vector<4x256xf32>
    %163 = arith.negf %162 : vector<4x256xf32>
    %164 = math.exp %163 : vector<4x256xf32>
    %cst_158 = arith.constant 1.000000e+00 : f32
    %165 = vector.broadcast %cst_158 : f32 to vector<4x256xf32>
    %166 = arith.addf %165, %164 : vector<4x256xf32>
    %167 = arith.divf %165, %166 : vector<4x256xf32>
    %168 = arith.mulf %162, %167 : vector<4x256xf32>
    %169 = vector.shape_cast %168 : vector<4x256xf32> to vector<4x16x16xf32>
    %cst_159 = arith.constant dense<0.000000e+00> : vector<4x16xf32>
    %170 = vector.multi_reduction <add>, %169, %cst_159 [2] : vector<4x16x16xf32> to vector<4x16xf32>
    %cst_160 = arith.constant 1.600000e+01 : f32
    %171 = vector.broadcast %cst_160 : f32 to vector<4x16xf32>
    %172 = arith.divf %170, %171 : vector<4x16xf32>
    %c0_161 = arith.constant 0 : index
    %c0_162 = arith.constant 0 : index
    %173 = vector.load %arg15[%c0_161, %c0_162] : memref<4x32xf32, #tpu.memory_space<vmem>>, vector<4x16xf32>
    tpu.vector_store %arg15[%c0_161, %c0_162], %172 {strides = array<i32>} : memref<4x32xf32, #tpu.memory_space<vmem>>, vector<4x16xf32>,
    %cst_163 = arith.constant dense<0.000000e+00> : vector<4x16xf32>
    %174 = vector.multi_reduction <add>, %169, %cst_163 [1] : vector<4x16x16xf32> to vector<4x16xf32>
    %cst_164 = arith.constant 1.600000e+01 : f32
    %175 = vector.broadcast %cst_164 : f32 to vector<4x16xf32>
    %176 = arith.divf %174, %175 : vector<4x16xf32>
    %c0_165 = arith.constant 0 : index
    %c16_166 = arith.constant 16 : index
    %177 = vector.load %arg15[%c0_165, %c16_166] : memref<4x32xf32, #tpu.memory_space<vmem>>, vector<4x16xf32>
    tpu.vector_store %arg15[%c0_165, %c16_166], %176 {strides = array<i32>} : memref<4x32xf32, #tpu.memory_space<vmem>>, vector<4x16xf32>,
    %c0_167 = arith.constant 0 : index
    %c0_168 = arith.constant 0 : index
    %178 = vector.load %arg15[%c0_167, %c0_168] : memref<4x32xf32, #tpu.memory_space<vmem>>, vector<4x32xf32>
    %cst_169 = arith.constant dense<0.000000e+00> : vector<8x32xf32>
    %179 = tpu.matmul %10, %178, %cst_169 {dimension_numbers = #tpu.dot_dimension_numbers<[1], [0], [0], [1], [0, 0, 1, 1], [], []>} : vector<8x4xf32>, vector<4x32xf32>, vector<8x32xf32> -> vector<8x32xf32>
    %180 = vector.broadcast %15 : vector<8x1xf32> to vector<8x32xf32>
    %181 = arith.addf %179, %180 : vector<8x32xf32>
    %cst_170 = arith.constant 3.000000e+00 : f32
    %182 = vector.broadcast %cst_170 : f32 to vector<8x32xf32>
    %183 = arith.addf %181, %182 : vector<8x32xf32>
    %cst_171 = arith.constant 0.000000e+00 : f32
    %cst_172 = arith.constant 6.000000e+00 : f32
    %184 = vector.broadcast %cst_171 : f32 to vector<8x32xf32>
    %185 = arith.maximumf %184, %183 : vector<8x32xf32>
    %186 = vector.broadcast %cst_172 : f32 to vector<8x32xf32>
    %187 = arith.minimumf %186, %185 : vector<8x32xf32>
    %cst_173 = arith.constant 6.000000e+00 : f32
    %188 = vector.broadcast %cst_173 : f32 to vector<8x32xf32>
    %189 = arith.divf %187, %188 : vector<8x32xf32>
    %190 = arith.mulf %189, %181 : vector<8x32xf32>
    %191 = vector.extract_strided_slice %190 {offsets = [0, 0], sizes = [8, 16], strides = [1, 1]} : vector<8x32xf32> to vector<8x16xf32>
    %cst_174 = arith.constant dense<0.000000e+00> : vector<4x16xf32>
    %192 = tpu.matmul %11, %191, %cst_174 {dimension_numbers = #tpu.dot_dimension_numbers<[1], [0], [0], [1], [0, 0, 1, 1], [], []>} : vector<4x8xf32>, vector<8x16xf32>, vector<4x16xf32> -> vector<4x16xf32>
    %193 = vector.broadcast %16 : vector<4x1xf32> to vector<4x16xf32>
    %194 = arith.addf %192, %193 : vector<4x16xf32>
    %195 = arith.negf %194 : vector<4x16xf32>
    %196 = math.exp %195 : vector<4x16xf32>
    %cst_175 = arith.constant 1.000000e+00 : f32
    %197 = vector.broadcast %cst_175 : f32 to vector<4x16xf32>
    %198 = arith.addf %197, %196 : vector<4x16xf32>
    %199 = arith.divf %197, %198 : vector<4x16xf32>
    %200 = vector.extract_strided_slice %190 {offsets = [0, 16], sizes = [8, 16], strides = [1, 1]} : vector<8x32xf32> to vector<8x16xf32>
    %cst_176 = arith.constant dense<0.000000e+00> : vector<4x16xf32>
    %201 = tpu.matmul %12, %200, %cst_176 {dimension_numbers = #tpu.dot_dimension_numbers<[1], [0], [0], [1], [0, 0, 1, 1], [], []>} : vector<4x8xf32>, vector<8x16xf32>, vector<4x16xf32> -> vector<4x16xf32>
    %202 = vector.broadcast %17 : vector<4x1xf32> to vector<4x16xf32>
    %203 = arith.addf %201, %202 : vector<4x16xf32>
    %204 = arith.negf %203 : vector<4x16xf32>
    %205 = math.exp %204 : vector<4x16xf32>
    %cst_177 = arith.constant 1.000000e+00 : f32
    %206 = vector.broadcast %cst_177 : f32 to vector<4x16xf32>
    %207 = arith.addf %206, %205 : vector<4x16xf32>
    %208 = arith.divf %206, %207 : vector<4x16xf32>
    %209 = vector.shape_cast %199 : vector<4x16xf32> to vector<4x16x1xf32>
    %210 = vector.shape_cast %208 : vector<4x16xf32> to vector<4x1x16xf32>
    %211 = vector.broadcast %209 : vector<4x16x1xf32> to vector<4x16x16xf32>
    %212 = vector.broadcast %210 : vector<4x1x16xf32> to vector<4x16x16xf32>
    %213 = arith.mulf %211, %212 : vector<4x16x16xf32>
    %214 = vector.shape_cast %213 : vector<4x16x16xf32> to vector<4x256xf32>
    %215 = arith.mulf %168, %214 : vector<4x256xf32>
    %216 = arith.addf %215, %120 : vector<4x256xf32>
    %c1_178 = arith.constant 1 : index
    %c0_179 = arith.constant 0 : index
    %c0_180 = arith.constant 0 : index
    %217 = vector.load %arg12[%c1_178, %c0_179, %c0_180] : memref<2x4x256xf32, #tpu.memory_space<vmem>>, vector<1x4x256xf32>
    %218 = vector.shape_cast %217 : vector<1x4x256xf32> to vector<4x256xf32>
    %219 = vector.shape_cast %216 : vector<4x256xf32> to vector<1x4x256xf32>
    tpu.vector_store %arg12[%c1_178, %c0_179, %c0_180], %219 {strides = array<i32>} : memref<2x4x256xf32, #tpu.memory_space<vmem>>, vector<1x4x256xf32>,
    return
  }
  func.func @transform_0(%arg0: i32) -> (i32, i32, i32) {
    %c0_i32 = arith.constant 0 : i32
    %c0_i32_0 = arith.constant 0 : i32
    %c0_i32_1 = arith.constant 0 : i32
    return %arg0, %c0_i32, %c0_i32_0 : i32, i32, i32
  }
  func.func @transform_1(%arg0: i32) -> (i32, i32) {
    %c0_i32 = arith.constant 0 : i32
    %c0_i32_0 = arith.constant 0 : i32
    %c0_i32_1 = arith.constant 0 : i32
    return %c0_i32, %c0_i32_0 : i32, i32
  }
  func.func @transform_2(%arg0: i32) -> (i32, i32) {
    %c0_i32 = arith.constant 0 : i32
    %c0_i32_0 = arith.constant 0 : i32
    %c0_i32_1 = arith.constant 0 : i32
    return %c0_i32, %c0_i32_0 : i32, i32
  }
  func.func @transform_3(%arg0: i32) -> (i32, i32) {
    %c0_i32 = arith.constant 0 : i32
    %c0_i32_0 = arith.constant 0 : i32
    %c0_i32_1 = arith.constant 0 : i32
    return %c0_i32, %c0_i32_0 : i32, i32
  }
  func.func @transform_4(%arg0: i32) -> (i32, i32) {
    %c0_i32 = arith.constant 0 : i32
    %c0_i32_0 = arith.constant 0 : i32
    %c0_i32_1 = arith.constant 0 : i32
    return %c0_i32, %c0_i32_0 : i32, i32
  }
  func.func @transform_5(%arg0: i32) -> (i32, i32) {
    %c0_i32 = arith.constant 0 : i32
    %c0_i32_0 = arith.constant 0 : i32
    %c0_i32_1 = arith.constant 0 : i32
    return %c0_i32, %c0_i32_0 : i32, i32
  }
  func.func @transform_6(%arg0: i32) -> (i32, i32) {
    %c0_i32 = arith.constant 0 : i32
    %c0_i32_0 = arith.constant 0 : i32
    %c0_i32_1 = arith.constant 0 : i32
    return %c0_i32, %c0_i32_0 : i32, i32
  }
  func.func @transform_7(%arg0: i32) -> (i32, i32) {
    %c0_i32 = arith.constant 0 : i32
    %c0_i32_0 = arith.constant 0 : i32
    %c0_i32_1 = arith.constant 0 : i32
    return %c0_i32, %c0_i32_0 : i32, i32
  }
  func.func @transform_8(%arg0: i32) -> (i32, i32) {
    %c0_i32 = arith.constant 0 : i32
    %c0_i32_0 = arith.constant 0 : i32
    %c0_i32_1 = arith.constant 0 : i32
    return %c0_i32, %c0_i32_0 : i32, i32
  }
  func.func @transform_9(%arg0: i32) -> (i32, i32) {
    %c0_i32 = arith.constant 0 : i32
    %c0_i32_0 = arith.constant 0 : i32
    %c0_i32_1 = arith.constant 0 : i32
    return %c0_i32, %c0_i32_0 : i32, i32
  }
  func.func @transform_10(%arg0: i32) -> (i32, i32) {
    %c0_i32 = arith.constant 0 : i32
    %c0_i32_0 = arith.constant 0 : i32
    %c0_i32_1 = arith.constant 0 : i32
    return %c0_i32, %c0_i32_0 : i32, i32
  }
  func.func @transform_11(%arg0: i32) -> (i32, i32, i32) {
    %c0_i32 = arith.constant 0 : i32
    %c0_i32_0 = arith.constant 0 : i32
    %c0_i32_1 = arith.constant 0 : i32
    return %arg0, %c0_i32, %c0_i32_0 : i32, i32, i32
  }
}

</mosaic_0001>

<bundles_post_ra>
// kernel: tpu_custom_call.1
= control target key start
LH: loop header
LB: loop body
LE: loop exit
PB: predicated region body
PF: predicated region fallthrough
CT: control target
= control target key end

     0   :  { %vm98_vm0 = vcmask 1043456   ;;  %v11058_v2 = vmov 0.0   ;;  %s11045_s0 = inlined_call_operand.vmem [shape: f32[2,4,256], index: 0, kind: input, shape index: {}]   ;;  %s11046_s1 = inlined_call_operand.vmem [shape: f32[4,4], index: 1, kind: input, shape index: {}]   ;;  %s11047_s2 = inlined_call_operand.vmem [shape: f32[4,1], index: 2, kind: input, shape index: {}]   ;;  %s11048_s3 = inlined_call_operand.vmem [shape: f32[4,36], index: 3, kind: input, shape index: {}]   ;;  %s11049_s4 = inlined_call_operand.vmem [shape: f32[4,1], index: 4, kind: input, shape index: {}]   ;;  %s11050_s5 = inlined_call_operand.vmem [shape: f32[8,4], index: 5, kind: input, shape index: {}]   ;;  %s11051_s6 = inlined_call_operand.vmem [shape: f32[8,1], index: 6, kind: input, shape index: {}]   ;;  %s11052_s7 = inlined_call_operand.vmem [shape: f32[4,8], index: 7, kind: input, shape index: {}]   ;;  %s11053_s8 = inlined_call_operand.vmem [shape: f32[4,1], index: 8, kind: input, shape index: {}]   ;;  %s11054_s9 = inlined_call_operand.vmem [shape: f32[4,8], index: 9, kind: input, shape index: {}]   ;;  %s11055_s10 = inlined_call_operand.vmem [shape: f32[4,1], index: 10, kind: input, shape index: {}]   ;;  %s11056_s11 = inlined_call_operand.hbm [shape: f32[2,4,256], index: 11, kind: output, shape index: {}]  }
   0x1   :  { %v86_v0 = vld [vmem:[%s11045_s0] sm:$0xff]  ;;  %167 = vmatprep.mubr.f32.mxu0 %v11058_v2  ;;  %2665 = vmatprep.mubr.f32.mxu1 %v11058_v2 }
   0x2   :  { %v7312_v1 = vcombine.high %v86_v0, %v86_v0  ;;  %v81_v3 = vld [vmem:[%s11047_s2] sm:$0xf] }
   0x4   :  { %11142 = vst [vmem:[#allocation8_spill] sm:$0xff] %v7312_v1 }
   0x5   :  { %16 = vsyncpa [#allocation6], 0  ;;  %v76_v4 = vld [vmem:[%s11046_s1] sm:$0xf]  ;;  %vm94_vm1 = vcmask 31744   ;;  %v7231_v5 = vmov 0   ;;  %7017 = vmatprep.subr.msk.mxu0 %vm98_vm0, %v7312_v1  ;;  %v11057_v25 = vlaneseq }
   0x6   :  { %7111 = vset.pattern.permute.xlu0 %v7231_v5  ;;  %7112 = vset.pattern.permute.xlu1 %v7231_v5  ;;  %s7232_s2 = smov 96   ;;  %s7233_s23 = smov 112   ;;  %vm48_vm2 = vcmask 7168   ;;  %vm62_vm3 = vcmask 146568   ;;  %v7239_v23 = vmov 1983009808  }
   0x7   :  { %89 = vperm.xlu0 %7111, %v81_v3   ;;  %7018 = vmatpush1.msk.msra.mxu0 %vm98_vm0, %v86_v0  ;;  %s7234_s24 = smov 64   ;;  %s7235_s25 = smov 80   ;;  %50 = vst.msk [vmem:[#allocation2 + $0x8] sm:$0xff] %vm48_vm2, %v11058_v2  ;;  %54 = vst.msk [vmem:[#allocation2 + $0x20] sm:$0xff] %vm48_vm2, %v11058_v2  ;;  %v234_v24 = vunpack.c.l.s4 %v7239_v23  ;;  %v7380_v29 = vshrl.u32 %v11057_v25, 7  ;;  %vm39_vm4 = vcmask 139264  }
   0x8   :  { %7019 = vmatmul.mubr.msk.f32.vlgmr.msra.gmra.mxu0 %vm94_vm1, %v76_v4  ;;  %7062 = vmatprep.subr.mxu0 %v11058_v2  ;;  %s7236_s26 = smov 32   ;;  %s7237_s27 = smov 48   ;;  %57 = vst.msk [vmem:[#allocation2 + $0x38] sm:$0xff] %vm48_vm2, %v11058_v2  ;;  %60 = vst.msk [vmem:[#allocation2 + $0x50] sm:$0xff] %vm48_vm2, %v11058_v2  ;;  %v7240_v31 = vmov 1934713408  }
   0x9   :  { %s7238_s28 = smov 16   ;;  %64 = vst.msk [vmem:[#allocation2 + $0x8] sm:$0xff] %vm62_vm3, %v11058_v2  ;;  %68 = vst.msk [vmem:[#allocation2 + $0x20] sm:$0xff] %vm62_vm3, %v11058_v2  ;;  %v235_v28 = vunpack.c.0.s8 %v234_v24  ;;  %v267_v32 = vunpack.c.l.s4 %v7240_v31  ;;  %vm51_vm5 = vcmask 1024   ;;  %vm65_vm6 = vcmask 140424   ;;  %s7241_s29 = smov 1  }
   0xa   :  { %71 = vst.msk [vmem:[#allocation2 + $0x38] sm:$0xff] %vm62_vm3, %v11058_v2  ;;  %74 = vst.msk [vmem:[#allocation2 + $0x50] sm:$0xff] %vm62_vm3, %v11058_v2  ;;  %vm400_vm7 = vcmask 138248   ;;  %s7242_s30 = smov 126   ;;  %s7243_s12 = smov 127   ;;  %vm609_vm8 = vcmask 130048  }
   0xb   :  { %11144 = vst [vmem:[#allocation10_spill] sm:$0xff] %v7380_v29  ;;  %40 = vst.msk [vmem:[#allocation2] sm:$0x1] %vm39_vm4, %v11058_v2  ;;  %v7391_v35 = vsub.s32 %v235_v28, %v7380_v29  ;;  %v268_v39 = vunpack.c.0.s8 %v267_v32  ;;  %vm611_vm9 = vcmask 261120   ;;  %vm613_vm10 = vcmask 392192  }
   0xc   :  { %41 = vst.msk [vmem:[#allocation2 + $0x18] sm:$0x1] %vm39_vm4, %v11058_v2  ;;  %42 = vst.msk [vmem:[#allocation2 + $0x30] sm:$0x1] %vm39_vm4, %v11058_v2  ;;  %vm11141_vm11 = vcmask 523264   ;;  %vm11138_vm12 = vcmask 654336  }
   0xd   :  { %43 = vst.msk [vmem:[#allocation2 + $0x48] sm:$0x1] %vm39_vm4, %v11058_v2  ;;  %44 = vst.msk [vmem:[#allocation2 + $0x11] sm:$0x1] %vm39_vm4, %v11058_v2  ;;  %v7415_v47 = vsub.s32 %v268_v39, %v7380_v29  ;;  %vm11140_vm13 = vcmask 785408   ;;  %vm11139_vm14 = vcmask 916480  }
   0xe   :  { %45 = vst.msk [vmem:[#allocation2 + $0x29] sm:$0x1] %vm39_vm4, %v11058_v2  ;;  %46 = vst.msk [vmem:[#allocation2 + $0x41] sm:$0x1] %vm39_vm4, %v11058_v2  ;;  %vm11095_vm15 = vcmask 293888  }
   0xf   :  { %47 = vst.msk [vmem:[#allocation2 + $0x59] sm:$0x1] %vm39_vm4, %v11058_v2  ;;  %11145 = vst [vmem:[#allocation11_spill] sm:$0xff] %v7391_v35  ;;  %vm2951_vm4 = vcmask 1043459  }
  0x10   :  { %49 = vst.msk [vmem:[#allocation2] sm:$0xff] %vm48_vm2, %v11058_v2  ;;  %53 = vst.msk [vmem:[#allocation2 + $0x18] sm:$0xff] %vm48_vm2, %v11058_v2 }
  0x11   :  { %56 = vst.msk [vmem:[#allocation2 + $0x30] sm:$0xff] %vm48_vm2, %v11058_v2  ;;  %59 = vst.msk [vmem:[#allocation2 + $0x48] sm:$0xff] %vm48_vm2, %v11058_v2  ;;  %vm2947_vm2 = vcmask 1041409  }
  0x12   :  { %63 = vst.msk [vmem:[#allocation2] sm:$0xff] %vm62_vm3, %v11058_v2  ;;  %67 = vst.msk [vmem:[#allocation2 + $0x18] sm:$0xff] %vm62_vm3, %v11058_v2 }
  0x13   :  { %70 = vst.msk [vmem:[#allocation2 + $0x30] sm:$0xff] %vm62_vm3, %v11058_v2  ;;  %73 = vst.msk [vmem:[#allocation2 + $0x48] sm:$0xff] %vm62_vm3, %v11058_v2  ;;  %vm2949_vm3 = vcmask 1042434  }
  0x14   :  { %11146 = vst [vmem:[#allocation12_spill] sm:$0xff] %v7415_v47  ;;  %52 = vst.msk [vmem:[#allocation2 + $0x10] sm:$0x3] %vm51_vm5, %v11058_v2 }
  0x15   :  { %55 = vst.msk [vmem:[#allocation2 + $0x28] sm:$0x3] %vm51_vm5, %v11058_v2  ;;  %58 = vst.msk [vmem:[#allocation2 + $0x40] sm:$0x3] %vm51_vm5, %v11058_v2 }
  0x16   :  { %61 = vst.msk [vmem:[#allocation2 + $0x58] sm:$0x3] %vm51_vm5, %v11058_v2  ;;  %vm7244_vm5 = vmmov 0  }
  0x17   :  { %66 = vst.msk [vmem:[#allocation2 + $0x10] sm:$0x3] %vm65_vm6, %v11058_v2  ;;  %69 = vst.msk [vmem:[#allocation2 + $0x28] sm:$0x3] %vm65_vm6, %v11058_v2 }
  0x18   :  { %72 = vst.msk [vmem:[#allocation2 + $0x40] sm:$0x3] %vm65_vm6, %v11058_v2  ;;  %75 = vst.msk [vmem:[#allocation2 + $0x58] sm:$0x3] %vm65_vm6, %v11058_v2  ;;  %vm11096_vm6 = vcmask 130112  }
  0x82   :  { %v7327_v6 = vpop.permute.xlu0 %89 }
  0x83   :  { %11143 = vst [vmem:[#allocation9_spill] sm:$0xff] %v7327_v6 }
  0xc8   :  { %v169_v7 = vpop.f32.mrf.mxu0 }
  0xc9   :  { %v170_v8 = vadd.f32 %v169_v7, %v7327_v6 }
  0xca   :  { %v171_v9 = vpop.f32.mrf.mxu0 }
  0xcb   :  { %v7020_v10 = vmul.f32 -1.442695, %v170_v8  ;;  %v172_v11 = vadd.f32 %v171_v9, %v7327_v6 }
  0xcd   :  { %7155 = vpow2.f32 %v7020_v10  ;;  %v7021_v12 = vmul.f32 -1.442695, %v172_v11 }
  0xcf   :  { %7157 = vpow2.f32 %v7021_v12 }
  0xda   :  { %v7156_v13 = vpop.eup %7155 }
  0xdb   :  { %v180_v14 = vadd.f32 1.0, %v7156_v13 }
  0xdc   :  { %v7158_v15 = vpop.eup %7157 }
  0xdd   :  { %7159 = vrcp.f32 %v180_v14  ;;  %v181_v16 = vadd.f32 1.0, %v7158_v15 }
  0xdf   :  { %7161 = vrcp.f32 %v181_v16 }
  0xea   :  { %v7160_v17 = vpop.eup %7159 }
  0xeb   :  { %v7331_v18 = vmul.f32 %v7160_v17, %v170_v8 }
  0xec   :  { %v7162_v19 = vpop.eup %7161 }
  0xed   :  { %192 = vrot.lane.b32.xlu1 %v7331_v18, %s7232_s2  ;;  %189 = vrot.lane.b32.xlu0 %v7331_v18, %s7233_s23  ;;  %v7345_v20 = vmul.f32 %v7162_v19, %v172_v11 }
  0xf1   :  { %198 = vrot.lane.b32.xlu1 %v7331_v18, %s7234_s24  ;;  %195 = vrot.lane.b32.xlu0 %v7331_v18, %s7235_s25 }
  0xf5   :  { %204 = vrot.lane.b32.xlu1 %v7331_v18, %s7236_s26  ;;  %201 = vrot.lane.b32.xlu0 %v7331_v18, %s7237_s27 }
  0xf9   :  { %214 = vrot.lane.b32.xlu1 %v7345_v20, %s7232_s2  ;;  %207 = vrot.lane.b32.xlu0 %v7331_v18, %s7238_s28 }
  0xfd   :  { %217 = vrot.lane.b32.xlu1 %v7345_v20, %s7235_s25  ;;  %211 = vrot.lane.b32.xlu0 %v7345_v20, %s7233_s23 }
 0x101   :  { %223 = vrot.lane.b32.xlu1 %v7345_v20, %s7237_s27  ;;  %220 = vrot.lane.b32.xlu0 %v7345_v20, %s7234_s24 }
 0x105   :  { %229 = vrot.lane.b32.xlu1 %v7345_v20, %s7238_s28  ;;  %226 = vrot.lane.b32.xlu0 %v7345_v20, %s7236_s26 }
 0x15f   :  { %v193_v21 = vpop.permute.xlu1 %192  ;;  %v190_v22 = vpop.permute.xlu0 %189 }
 0x160   :  { %v232_v36 = vcombine.low %v7331_v18, %v193_v21 }
 0x162   :  { %v239_v42 = vrot.slane %v232_v36, %v7391_v35 }
 0x163   :  { %v199_v26 = vpop.permute.xlu1 %198  ;;  %v196_v27 = vpop.permute.xlu0 %195 }
 0x164   :  { %v240_v30 = vcombine.low %v190_v22, %v196_v27 }
 0x166   :  { %v247_v37 = vrot.slane %v240_v30, %v7391_v35 }
 0x167   :  { %v205_v33 = vpop.permute.xlu1 %204  ;;  %v202_v34 = vpop.permute.xlu0 %201 }
 0x168   :  { %v248_v38 = vcombine.low %v199_v26, %v205_v33  ;;  %v264_v44 = vcombine.low %v239_v42, %v247_v37  ;;  %v265_v52 = vcombine.high %v239_v42, %v247_v37 }
 0x16a   :  { %v255_v45 = vrot.slane %v248_v38, %v7391_v35  ;;  %v272_v54 = vrot.slane %v264_v44, %v7415_v47  ;;  %v279_v63 = vrot.slane %v265_v52, %v7415_v47 }
 0x16b   :  { %v215_v40 = vpop.permute.xlu1 %214  ;;  %v208_v41 = vpop.permute.xlu0 %207 }
 0x16c   :  { %v256_v43 = vcombine.low %v202_v34, %v208_v41  ;;  %v300_v56 = vcombine.low %v7345_v20, %v215_v40 }
 0x16e   :  { %v263_v46 = vrot.slane %v256_v43, %v7391_v35  ;;  %v307_v0 = vrot.slane %v300_v56, %v7391_v35 }
 0x16f   :  { %v218_v48 = vpop.permute.xlu1 %217  ;;  %v212_v49 = vpop.permute.xlu0 %211 }
 0x170   :  { %v280_v50 = vcombine.low %v255_v45, %v263_v46  ;;  %v281_v51 = vcombine.high %v255_v45, %v263_v46  ;;  %v308_v53 = vcombine.low %v212_v49, %v218_v48 }
 0x172   :  { %v288_v55 = vrot.slane %v280_v50, %v7415_v47  ;;  %v295_v61 = vrot.slane %v281_v51, %v7415_v47  ;;  %v315_v62 = vrot.slane %v308_v53, %v7391_v35 }
 0x173   :  { %v224_v57 = vpop.permute.xlu1 %223  ;;  %v221_v58 = vpop.permute.xlu0 %220 }
 0x174   :  { %v297_v59 = vcombine.high %v272_v54, %v288_v55  ;;  %v296_v60 = vcombine.low %v272_v54, %v288_v55  ;;  %v299_v8 = vcombine.high %v279_v63, %v295_v61  ;;  %v298_v9 = vcombine.low %v279_v63, %v295_v61 }
 0x175   :  { %v332_v10 = vcombine.low %v307_v0, %v315_v62  ;;  %v333_v15 = vcombine.high %v307_v0, %v315_v62 }
 0x176   :  { %380 = vrot.lane.b32.xlu0 %v297_v59, %s7241_s29  ;;  %376 = vrot.lane.b32.xlu1 %v296_v60, %s7241_s29 }
 0x177   :  { %v230_v3 = vpop.permute.xlu1 %229  ;;  %v227_v4 = vpop.permute.xlu0 %226  ;;  %v340_v16 = vrot.slane %v332_v10, %v7415_v47  ;;  %v347_v21 = vrot.slane %v333_v15, %v7415_v47 }
 0x178   :  { %v324_v5 = vcombine.low %v224_v57, %v230_v3  ;;  %v316_v7 = vcombine.low %v221_v58, %v227_v4 }
 0x17a   :  { %v331_v11 = vrot.slane %v324_v5, %v7391_v35  ;;  %v323_v12 = vrot.slane %v316_v7, %v7391_v35  ;;  %388 = vrot.lane.b32.xlu0 %v299_v8, %s7241_s29  ;;  %384 = vrot.lane.b32.xlu1 %v298_v9, %s7241_s29 }
 0x17c   :  { %v348_v13 = vcombine.low %v323_v12, %v331_v11  ;;  %v349_v14 = vcombine.high %v323_v12, %v331_v11 }
 0x17e   :  { %v356_v17 = vrot.slane %v348_v13, %v7415_v47  ;;  %v363_v20 = vrot.slane %v349_v14, %v7415_v47 }
 0x180   :  { %v365_v18 = vcombine.high %v340_v16, %v356_v17  ;;  %v364_v19 = vcombine.low %v340_v16, %v356_v17  ;;  %v367_v22 = vcombine.high %v347_v21, %v363_v20  ;;  %v366_v23 = vcombine.low %v347_v21, %v363_v20 }
 0x182   :  { %382 = vrot.lane.b32.xlu0 %v365_v18, %s7241_s29  ;;  %378 = vrot.lane.b32.xlu1 %v364_v19, %s7241_s29 }
 0x186   :  { %390 = vrot.lane.b32.xlu0 %v367_v22, %s7241_s29  ;;  %386 = vrot.lane.b32.xlu1 %v366_v23, %s7241_s29 }
 0x1e8   :  { %v377_v24 = vpop.permute.xlu1 %376  ;;  %v381_v26 = vpop.permute.xlu0 %380 }
 0x1e9   :  { %401 = vst.msk [vmem:[#allocation2 + $0x1] sm:$0xff] %vm400_vm7, %v377_v24  ;;  %403 = vst.msk [vmem:[#allocation2 + $0x19] sm:$0xff] %vm400_vm7, %v381_v26 }
 0x1ec   :  { %v385_v27 = vpop.permute.xlu1 %384  ;;  %v389_v28 = vpop.permute.xlu0 %388 }
 0x1ed   :  { %405 = vst.msk [vmem:[#allocation2 + $0x31] sm:$0xff] %vm400_vm7, %v385_v27  ;;  %407 = vst.msk [vmem:[#allocation2 + $0x49] sm:$0xff] %vm400_vm7, %v389_v28 }
 0x1f0   :  { %v7450_v30 = vld [vmem:[#allocation2 + $0x19] sm:$0xff]  ;;  %v7452_v31 = vld [vmem:[#allocation2 + $0x1] sm:$0xff] }
 0x1f1   :  { %1624 = vrot.lane.b32.xlu0 %v7450_v30, %s7242_s30  ;;  %1620 = vrot.lane.b32.xlu1 %v7452_v31, %s7242_s30  ;;  %v7470_v38 = vld [vmem:[#allocation2] sm:$0xff]  ;;  %v7474_v40 = vld [vmem:[#allocation2 + $0x18] sm:$0xff] }
 0x1f4   :  { %v379_v32 = vpop.permute.xlu1 %378  ;;  %v383_v33 = vpop.permute.xlu0 %382  ;;  %v7458_v34 = vld [vmem:[#allocation2 + $0x49] sm:$0xff]  ;;  %v7460_v36 = vld [vmem:[#allocation2 + $0x31] sm:$0xff] }
 0x1f5   :  { %v7462_v37 = vld [vmem:[#allocation2 + $0x48] sm:$0xff]  ;;  %402 = vst.msk [vmem:[#allocation2 + $0x9] sm:$0xff] %vm400_vm7, %v379_v32  ;;  %404 = vst.msk [vmem:[#allocation2 + $0x21] sm:$0xff] %vm400_vm7, %v383_v33  ;;  %1632 = vrot.lane.b32.xlu0 %v7458_v34, %s7242_s30  ;;  %1628 = vrot.lane.b32.xlu1 %v7460_v36, %s7242_s30  ;;  %v7472_v39 = vld [vmem:[#allocation2 + $0x30] sm:$0xff]  ;;  %v1143_v63 = vcombine.high %v7452_v31, %v7460_v36  ;;  %v1159_v0 = vcombine.high %v7450_v30, %v7458_v34 }
 0x1f6   :  { %v418_v41 = vcombine.high %v7470_v38, %v7472_v39  ;;  %v434_v42 = vcombine.high %v7474_v40, %v7462_v37  ;;  %v1142_v3 = vcombine.low %v7452_v31, %v7460_v36  ;;  %v1158_v4 = vcombine.low %v7450_v30, %v7458_v34 }
 0x1f7   :  { %v1157_v8 = vrot.slane %v1143_v63, %v7391_v35  ;;  %v1173_v9 = vrot.slane %v1159_v0, %v7391_v35  ;;  %v417_v10 = vcombine.low %v7470_v38, %v7472_v39  ;;  %v433_v11 = vcombine.low %v7474_v40, %v7462_v37 }
 0x1f8   :  { %v387_v43 = vpop.permute.xlu1 %386  ;;  %v391_v44 = vpop.permute.xlu0 %390  ;;  %v7481_v45 = vrot.slane %v418_v41, %v7391_v35  ;;  %v7490_v46 = vrot.slane %v434_v42, %v7391_v35  ;;  %v1150_v12 = vrot.slane %v1142_v3, %v7391_v35  ;;  %v1166_v13 = vrot.slane %v1158_v4, %v7391_v35 }
 0x1f9   :  { %406 = vst.msk [vmem:[#allocation2 + $0x39] sm:$0xff] %vm400_vm7, %v387_v43  ;;  %408 = vst.msk [vmem:[#allocation2 + $0x51] sm:$0xff] %vm400_vm7, %v391_v44  ;;  %1376 = vrot.lane.b32.xlu0 %v7450_v30, %s7243_s12  ;;  %1372 = vrot.lane.b32.xlu1 %v7452_v31, %s7243_s12  ;;  %v1190_v16 = vcombine.low %v1157_v8, %v1173_v9  ;;  %v7627_v17 = vrot.slane %v417_v10, %v7391_v35 }
 0x1fa   :  { %11147 = vst [vmem:[#allocation13_spill] sm:$0xff] %v7481_v45  ;;  %11148 = vst [vmem:[#allocation14_spill] sm:$0xff] %v7490_v46  ;;  %v7630_v18 = vrot.slane %v433_v11, %v7391_v35  ;;  %v1175_v19 = vcombine.high %v1150_v12, %v1166_v13  ;;  %v1174_v24 = vcombine.low %v1150_v12, %v1166_v13 }
 0x1fb   :  { %v7643_v22 = vrot.slane %v1190_v16, %v7415_v47  ;;  %v465_v63 = vcombine.low %v7481_v45, %v7490_v46 }
 0x1fc   :  { %v7514_v49 = vld [vmem:[#allocation2 + $0x22] sm:$0xff]  ;;  %v7516_v50 = vld [vmem:[#allocation2 + $0xa] sm:$0xff]  ;;  %v7538_v53 = vld [vmem:[#allocation2 + $0x1a] sm:$0xff]  ;;  %v450_v23 = vcombine.high %v7627_v17, %v7630_v18  ;;  %v1189_v26 = vrot.slane %v1175_v19, %v7415_v47 }
 0x1fd   :  { %1384 = vrot.lane.b32.xlu0 %v7458_v34, %s7243_s12  ;;  %1380 = vrot.lane.b32.xlu1 %v7460_v36, %s7243_s12  ;;  %v7540_v54 = vld [vmem:[#allocation2 + $0x2] sm:$0xff]  ;;  %v1191_v34 = vcombine.high %v1157_v8, %v1173_v9  ;;  %v7728_v13 = vrot.slane %v465_v63, %v7415_v47 }
 0x1fe   :  { %v7562_v57 = vld [vmem:[#allocation2 + $0x21] sm:$0xff]  ;;  %v7564_v58 = vld [vmem:[#allocation2 + $0x9] sm:$0xff]  ;;  %v7662_v33 = vrot.slane %v450_v23, %v7415_v47 }
 0x1ff   :  { %v7586_v61 = vld [vmem:[#allocation2 + $0x20] sm:$0xff]  ;;  %v7588_v62 = vld [vmem:[#allocation2 + $0x8] sm:$0xff] }
 0x200   :  { %v7522_v51 = vld [vmem:[#allocation2 + $0x52] sm:$0xff]  ;;  %v7524_v52 = vld [vmem:[#allocation2 + $0x3a] sm:$0xff]  ;;  %v7546_v55 = vld [vmem:[#allocation2 + $0x4a] sm:$0xff] }
 0x201   :  { %652 = vrot.lane.b32.xlu0 %v7474_v40, %s7243_s12  ;;  %648 = vrot.lane.b32.xlu1 %v7470_v38, %s7243_s12  ;;  %v7548_v56 = vld [vmem:[#allocation2 + $0x32] sm:$0xff]  ;;  %v1882_v15 = vcombine.low %v7538_v53, %v7546_v55  ;;  %v1883_v30 = vcombine.high %v7538_v53, %v7546_v55  ;;  %v1934_v31 = vcombine.low %v7516_v50, %v7524_v52 }
 0x202   :  { %v7570_v59 = vld [vmem:[#allocation2 + $0x51] sm:$0xff]  ;;  %v7572_v60 = vld [vmem:[#allocation2 + $0x39] sm:$0xff]  ;;  %v1866_v14 = vcombine.low %v7540_v54, %v7548_v56  ;;  %v1867_v28 = vcombine.high %v7540_v54, %v7548_v56  ;;  %v1950_v32 = vcombine.low %v7514_v49, %v7522_v51 }
 0x203   :  { %v7602_v5 = vld [vmem:[#allocation2 + $0x50] sm:$0xff]  ;;  %v7604_v7 = vld [vmem:[#allocation2 + $0x38] sm:$0xff]  ;;  %v7636_v21 = vrot.slane %v1882_v15, %v7391_v35  ;;  %v7683_v41 = vrot.slane %v1934_v31, %v7391_v35  ;;  %v1211_v10 = vcombine.high %v7564_v58, %v7572_v60  ;;  %v1227_v11 = vcombine.high %v7562_v57, %v7570_v59 }
 0x204   :  { %v7633_v20 = vrot.slane %v1866_v14, %v7391_v35  ;;  %v7686_v42 = vrot.slane %v1950_v32, %v7391_v35  ;;  %v485_v43 = vcombine.low %v7588_v62, %v7604_v7  ;;  %v501_v44 = vcombine.low %v7586_v61, %v7602_v5 }
 0x205   :  { %660 = vrot.lane.b32.xlu0 %v7462_v37, %s7243_s12  ;;  %656 = vrot.lane.b32.xlu1 %v7472_v39, %s7243_s12  ;;  %v1935_v14 = vcombine.high %v7516_v50, %v7524_v52  ;;  %v1951_v15 = vcombine.high %v7514_v49, %v7522_v51  ;;  %v486_v16 = vcombine.high %v7588_v62, %v7604_v7 }
 0x206   :  { %v1899_v27 = vcombine.high %v7633_v20, %v7636_v21  ;;  %v1967_v0 = vcombine.high %v7683_v41, %v7686_v42  ;;  %v7709_v3 = vrot.slane %v485_v43, %v7391_v35  ;;  %v7715_v8 = vrot.slane %v501_v44, %v7391_v35 }
 0x207   :  { %v502_v19 = vcombine.high %v7586_v61, %v7602_v5  ;;  %v1898_v43 = vcombine.low %v7633_v20, %v7636_v21  ;;  %v449_v20 = vcombine.low %v7627_v17, %v7630_v18 }
 0x208   :  { %v7665_v36 = vrot.slane %v1899_v27, %v7415_v47 }
 0x209   :  { %906 = vrot.lane.b32.xlu0 %v7474_v40, %s7242_s30  ;;  %902 = vrot.lane.b32.xlu1 %v7470_v38, %s7242_s30  ;;  %v7671_v38 = vrot.slane %v1867_v28, %v7391_v35  ;;  %v1210_v40 = vcombine.low %v7564_v58, %v7572_v60 }
 0x20b   :  { %v7712_v4 = vrot.slane %v1210_v40, %v7391_v35 }
 0x20d   :  { %914 = vrot.lane.b32.xlu0 %v7462_v37, %s7242_s30  ;;  %910 = vrot.lane.b32.xlu1 %v7472_v39, %s7242_s30  ;;  %v7668_v37 = vrot.slane %v1174_v24, %v7415_v47  ;;  %v7674_v39 = vrot.slane %v1883_v30, %v7391_v35 }
 0x211   :  { %2096 = vrot.lane.b32.xlu0 %v7514_v49, %s7243_s12  ;;  %2092 = vrot.lane.b32.xlu1 %v7516_v50, %s7243_s12 }
 0x215   :  { %2104 = vrot.lane.b32.xlu0 %v7522_v51, %s7243_s12  ;;  %2100 = vrot.lane.b32.xlu1 %v7524_v52, %s7243_s12 }
 0x219   :  { %2350 = vrot.lane.b32.xlu0 %v7514_v49, %s7242_s30  ;;  %2346 = vrot.lane.b32.xlu1 %v7516_v50, %s7242_s30  ;;  %v1241_v49 = vrot.slane %v1227_v11, %v7391_v35 }
 0x21d   :  { %2358 = vrot.lane.b32.xlu0 %v7522_v51, %s7242_s30  ;;  %2354 = vrot.lane.b32.xlu1 %v7524_v52, %s7242_s30  ;;  %v1225_v52 = vrot.slane %v1211_v10, %v7391_v35  ;;  %v1949_v51 = vrot.slane %v1935_v14, %v7391_v35  ;;  %v7801_v10 = vrot.slane %v1898_v43, %v7415_v47 }
 0x21f   :  { %v1259_v28 = vcombine.high %v1225_v52, %v1241_v49  ;;  %v1258_v40 = vcombine.low %v1225_v52, %v1241_v49 }
 0x221   :  { %2094 = vrot.lane.b32.xlu0 %v7538_v53, %s7243_s12  ;;  %2090 = vrot.lane.b32.xlu1 %v7540_v54, %s7243_s12  ;;  %v7778_v31 = vrot.slane %v1259_v28, %v7415_v47  ;;  %v1208_v28 = vcombine.high %v7643_v22, %v11058_v2 }
 0x225   :  { %2102 = vrot.lane.b32.xlu0 %v7546_v55, %s7243_s12  ;;  %2098 = vrot.lane.b32.xlu1 %v7548_v56, %s7243_s12 }
 0x229   :  { %2348 = vrot.lane.b32.xlu0 %v7538_v53, %s7242_s30  ;;  %2344 = vrot.lane.b32.xlu1 %v7540_v54, %s7242_s30  ;;  %v1226_v53 = vcombine.low %v7562_v57, %v7570_v59  ;;  %v1206_v54 = vcombine.high %v7668_v37, %v11058_v2 }
 0x22b   :  { %v7718_v9 = vrot.slane %v1226_v53, %v7391_v35 }
 0x22d   :  { %2356 = vrot.lane.b32.xlu0 %v7546_v55, %s7242_s30  ;;  %2352 = vrot.lane.b32.xlu1 %v7548_v56, %s7242_s30  ;;  %v7697_v55 = vrot.slane %v1191_v34, %v7415_v47  ;;  %v1914_v56 = vcombine.low %v7671_v38, %v7674_v39  ;;  %v1243_v50 = vcombine.high %v7712_v4, %v7718_v9 }
 0x22f   :  { %v7725_v12 = vrot.slane %v1914_v56, %v7415_v47  ;;  %v7761_v24 = vrot.slane %v1243_v50, %v7415_v47  ;;  %v1266_v56 = vrot.slane %v1258_v40, %v7415_v47  ;;  %v1930_v50 = vcombine.high %v7801_v10, %v11058_v2 }
 0x231   :  { %1626 = vrot.lane.b32.xlu0 %v7562_v57, %s7242_s30  ;;  %1622 = vrot.lane.b32.xlu1 %v7564_v58, %s7242_s30 }
 0x235   :  { %1634 = vrot.lane.b32.xlu0 %v7570_v59, %s7242_s30  ;;  %1630 = vrot.lane.b32.xlu1 %v7572_v60, %s7242_s30 }
 0x239   :  { %1378 = vrot.lane.b32.xlu0 %v7562_v57, %s7243_s12  ;;  %1374 = vrot.lane.b32.xlu1 %v7564_v58, %s7243_s12  ;;  %v1207_v57 = vcombine.high %v1189_v26, %v11058_v2  ;;  %v7740_v58 = vrot.slane %v1967_v0, %v7415_v47 }
 0x23d   :  { %1386 = vrot.lane.b32.xlu0 %v7570_v59, %s7243_s12  ;;  %1382 = vrot.lane.b32.xlu1 %v7572_v60, %s7243_s12  ;;  %v518_v59 = vcombine.high %v7709_v3, %v7715_v8  ;;  %v1965_v60 = vrot.slane %v1951_v15, %v7391_v35 }
 0x23f   :  { %v7758_v23 = vrot.slane %v518_v59, %v7415_v47  ;;  %v1983_v0 = vcombine.high %v1949_v51, %v1965_v60  ;;  %v1242_v59 = vcombine.low %v7712_v4, %v7718_v9 }
 0x241   :  { %654 = vrot.lane.b32.xlu0 %v7586_v61, %s7243_s12  ;;  %650 = vrot.lane.b32.xlu1 %v7588_v62, %s7243_s12  ;;  %v1997_v15 = vrot.slane %v1983_v0, %v7415_v47  ;;  %v7828_v49 = vrot.slane %v1242_v59, %v7415_v47 }
 0x243   :  { %11150 = vst [vmem:[#allocation16_spill] sm:$0xff] %v7828_v49  ;;  %v1274_v9 = vcombine.high %v7828_v49, %v11058_v2 }
 0x245   :  { %662 = vrot.lane.b32.xlu0 %v7602_v5, %s7243_s12  ;;  %658 = vrot.lane.b32.xlu1 %v7604_v7, %s7243_s12 }
 0x249   :  { %908 = vrot.lane.b32.xlu0 %v7586_v61, %s7242_s30  ;;  %904 = vrot.lane.b32.xlu1 %v7588_v62, %s7242_s30  ;;  %v1982_v62 = vcombine.low %v1949_v51, %v1965_v60  ;;  %v516_v61 = vrot.slane %v502_v19, %v7391_v35  ;;  %v1931_v19 = vcombine.high %v7665_v36, %v11058_v2 }
 0x24b   :  { %v7781_v32 = vrot.slane %v1982_v62, %v7415_v47  ;;  %v517_v62 = vcombine.low %v7709_v3, %v7715_v8  ;;  %v1966_v3 = vcombine.low %v7683_v41, %v7686_v42  ;;  %v2001_v42 = vcombine.high %v1997_v15, %v11058_v2 }
 0x24d   :  { %916 = vrot.lane.b32.xlu0 %v7602_v5, %s7242_s30  ;;  %912 = vrot.lane.b32.xlu1 %v7604_v7, %s7242_s30  ;;  %v500_v7 = vrot.slane %v486_v16, %v7391_v35  ;;  %v7866_v40 = vrot.slane %v517_v62, %v7415_v47  ;;  %v7890_v41 = vrot.slane %v1966_v3, %v7415_v47 }
 0x24e   :  { %v550_v62 = vcombine.high %v7758_v23, %v11058_v2 }
 0x24f   :  { %v533_v34 = vcombine.low %v500_v7, %v516_v61  ;;  %v534_v63 = vcombine.high %v500_v7, %v516_v61  ;;  %11152 = vst [vmem:[#allocation18_spill] sm:$0xff] %v7866_v40  ;;  %11153 = vst [vmem:[#allocation19_spill] sm:$0xff] %v7890_v41 }
 0x251   :  { %1291 = vrot.lane.b32.xlu0 %v7643_v22, %s7234_s24  ;;  %1283 = vrot.lane.b32.xlu1 %v1189_v26, %s7236_s26  ;;  %v7810_v14 = vrot.slane %v534_v63, %v7415_v47  ;;  %v1209_v22 = vcombine.high %v7697_v55, %v11058_v2  ;;  %v1276_v63 = vcombine.high %v1266_v56, %v11058_v2 }
 0x253   :  { %11149 = vst [vmem:[#allocation15_spill] sm:$0xff] %v7810_v14 }
 0x255   :  { %2007 = vrot.lane.b32.xlu1 %v7665_v36, %s7236_s26  ;;  %558 = vrot.lane.b32.xlu0 %v7662_v33, %s7236_s26  ;;  %v482_v36 = vcombine.high %v7662_v33, %v11058_v2  ;;  %v549_v33 = vcombine.high %v7866_v40, %v11058_v2 }
 0x259   :  { %1279 = vrot.lane.b32.xlu1 %v1206_v54, %s7238_s28  ;;  %1299 = vrot.lane.b32.xlu0 %v7697_v55, %s7232_s2  ;;  %v7794_v54 = vrot.slane %v533_v34, %v7415_v47  ;;  %v1932_v34 = vcombine.high %v7725_v12, %v11058_v2 }
 0x25d   :  { %2015 = vrot.lane.b32.xlu1 %v7725_v12, %s7234_s24  ;;  %566 = vrot.lane.b32.xlu0 %v7728_v13, %s7234_s24  ;;  %v483_v12 = vcombine.high %v7728_v13, %v11058_v2  ;;  %v1998_v13 = vcombine.high %v7890_v41, %v11058_v2 }
 0x261   :  { %1287 = vrot.lane.b32.xlu1 %v1207_v57, %s7237_s27  ;;  %2035 = vrot.lane.b32.xlu0 %v7740_v58, %s7236_s26  ;;  %v1915_v57 = vcombine.high %v7671_v38, %v7674_v39  ;;  %v7831_v38 = vrot.slane %v449_v20, %v7415_v47 }
 0x263   :  { %v7763_v26 = vpop.permute.xlu0 %1624  ;;  %v7765_v27 = vpop.permute.xlu1 %1620  ;;  %v1929_v52 = vrot.slane %v1915_v57, %v7415_v47  ;;  %11151 = vst [vmem:[#allocation17_spill] sm:$0xff] %v7831_v38  ;;  %v481_v51 = vcombine.high %v7831_v38, %v11058_v2 }
 0x265   :  { %586 = vrot.lane.b32.xlu1 %v7758_v23, %s7236_s26  ;;  %1311 = vrot.lane.b32.xlu0 %v7761_v24, %s7236_s26  ;;  %v1933_v59 = vcombine.high %v1929_v52, %v11058_v2 }
 0x267   :  { %v7773_v5 = vpop.permute.xlu0 %1632  ;;  %v7775_v30 = vpop.permute.xlu1 %1628 }
 0x269   :  { %1327 = vrot.lane.b32.xlu1 %v7778_v31, %s7232_s2  ;;  %2043 = vrot.lane.b32.xlu0 %v7781_v32, %s7234_s24 }
 0x26b   :  { %v7789_v44 = vpop.permute.xlu0 %1376  ;;  %v7791_v53 = vpop.permute.xlu1 %1372 }
 0x26d   :  { %594 = vrot.lane.b32.xlu1 %v7794_v54, %s7234_s24  ;;  %1319 = vrot.lane.b32.xlu0 %v1266_v56, %s7234_s24  ;;  %v1999_v56 = vcombine.high %v7740_v58, %v11058_v2  ;;  %v1660_v58 = vcombine.low %v7763_v26, %v7773_v5 }
 0x26f   :  { %v7805_v21 = vpop.permute.xlu0 %1384  ;;  %v7807_v11 = vpop.permute.xlu1 %1380 }
 0x271   :  { %602 = vrot.lane.b32.xlu1 %v7810_v14, %s7232_s2  ;;  %2051 = vrot.lane.b32.xlu0 %v1997_v15, %s7232_s2 }
 0x273   :  { %v7820_v17 = vpop.permute.xlu0 %652  ;;  %v7822_v18 = vpop.permute.xlu1 %648 }
 0x275   :  { %2003 = vrot.lane.b32.xlu1 %v1930_v50, %s7238_s28  ;;  %2023 = vrot.lane.b32.xlu0 %v1929_v52, %s7232_s2  ;;  %v1644_v52 = vcombine.low %v7765_v27, %v7775_v30 }
 0x277   :  { %v7835_v39 = vpop.permute.xlu0 %660  ;;  %v7837_v4 = vpop.permute.xlu1 %656 }
 0x278   :  { %v688_v50 = vcombine.low %v7820_v17, %v7835_v39  ;;  %v672_v15 = vcombine.low %v7822_v18, %v7837_v4 }
 0x279   :  { %1307 = vrot.lane.b32.xlu1 %v1274_v9, %s7238_s28  ;;  %554 = vrot.lane.b32.xlu0 %v481_v51, %s7238_s28 }
 0x27a   :  { %v7935_v3 = vrot.slane %v688_v50, %v7391_v35  ;;  %v2000_v50 = vcombine.high %v7781_v32, %v11058_v2 }
 0x27b   :  { %v7845_v60 = vpop.permute.xlu0 %906  ;;  %v7847_v16 = vpop.permute.xlu1 %902 }
 0x27d   :  { %2011 = vrot.lane.b32.xlu1 %v1931_v19, %s7237_s27  ;;  %1295 = vrot.lane.b32.xlu0 %v1208_v28, %s7235_s25 }
 0x27f   :  { %v7857_v7 = vpop.permute.xlu0 %914  ;;  %v7859_v61 = vpop.permute.xlu1 %910 }
 0x280   :  { %v926_v23 = vcombine.low %v7847_v16, %v7859_v61 }
 0x281   :  { %2019 = vrot.lane.b32.xlu1 %v1932_v34, %s7235_s25  ;;  %562 = vrot.lane.b32.xlu0 %v482_v36, %s7237_s27  ;;  %v1275_v34 = vcombine.high %v7761_v24, %v11058_v2 }
 0x282   :  { %v7976_v32 = vrot.slane %v926_v23, %v7391_v35 }
 0x283   :  { %v7874_v8 = vpop.permute.xlu0 %2096  ;;  %v7876_v43 = vpop.permute.xlu1 %2092 }
 0x285   :  { %582 = vrot.lane.b32.xlu1 %v549_v33, %s7238_s28  ;;  %1303 = vrot.lane.b32.xlu0 %v1209_v22, %s7233_s23  ;;  %v7938_v33 = vrot.slane %v672_v15, %v7391_v35  ;;  %v1412_v15 = vcombine.low %v7789_v44, %v7805_v21 }
 0x287   :  { %v7885_v55 = vpop.permute.xlu0 %2104  ;;  %v7887_v0 = vpop.permute.xlu1 %2100 }
 0x289   :  { %1323 = vrot.lane.b32.xlu1 %v1276_v63, %s7235_s25  ;;  %570 = vrot.lane.b32.xlu0 %v483_v12, %s7235_s25  ;;  %v942_v12 = vcombine.low %v7845_v60, %v7857_v7 }
 0x28b   :  { %v7895_v20 = vpop.permute.xlu0 %2350  ;;  %v7897_v57 = vpop.permute.xlu1 %2346 }
 0x28d   :  { %2055 = vrot.lane.b32.xlu1 %v2001_v42, %s7233_s23  ;;  %2031 = vrot.lane.b32.xlu0 %v1998_v13, %s7238_s28  ;;  %v7951_v13 = vrot.slane %v1660_v58, %v7391_v35  ;;  %v1397_v58 = vcombine.high %v7791_v53, %v7807_v11  ;;  %v689_v42 = vcombine.high %v7820_v17, %v7835_v39 }
 0x28e   :  { %v943_v17 = vcombine.high %v7845_v60, %v7857_v7 }
 0x28f   :  { %v7910_v9 = vpop.permute.xlu0 %2358  ;;  %v7912_v51 = vpop.permute.xlu1 %2354 }
 0x290   :  { %v2452_v19 = vcombine.low %v7895_v20, %v7910_v9  ;;  %v2436_v28 = vcombine.low %v7897_v57, %v7912_v51 }
 0x291   :  { %2027 = vrot.lane.b32.xlu1 %v1933_v59, %s7233_s23  ;;  %2039 = vrot.lane.b32.xlu0 %v1999_v56, %s7237_s27  ;;  %v7954_v56 = vrot.slane %v1644_v52, %v7391_v35  ;;  %v1277_v59 = vcombine.high %v7778_v31, %v11058_v2  ;;  %v705_v31 = vcombine.high %v7938_v33, %v7935_v3 }
 0x292   :  { %v7929_v36 = vrot.slane %v2452_v19, %v7391_v35  ;;  %v7932_v22 = vrot.slane %v2436_v28, %v7391_v35  ;;  %v1413_v19 = vcombine.high %v7789_v44, %v7805_v21  ;;  %v1396_v28 = vcombine.low %v7791_v53, %v7807_v11 }
 0x293   :  { %v7944_v63 = vpop.permute.xlu0 %2094  ;;  %v7946_v24 = vpop.permute.xlu1 %2090  ;;  %v7973_v52 = vrot.slane %v942_v12, %v7391_v35  ;;  %v551_v44 = vcombine.high %v7794_v54, %v11058_v2  ;;  %v1661_v11 = vcombine.high %v7763_v26, %v7773_v5  ;;  %v1645_v12 = vcombine.high %v7765_v27, %v7775_v30 }
 0x294   :  { %11154 = vst [vmem:[#allocation20_spill] sm:$0xff] %v7929_v36  ;;  %11155 = vst [vmem:[#allocation21_spill] sm:$0xff] %v7932_v22  ;;  %v1677_v23 = vcombine.high %v7954_v56, %v7951_v13  ;;  %v7997_v54 = vrot.slane %v1412_v15, %v7391_v35  ;;  %v8000_v25 = vrot.slane %v1396_v28, %v7391_v35 }
 0x295   :  { %590 = vrot.lane.b32.xlu1 %v550_v62, %s7237_s27  ;;  %1315 = vrot.lane.b32.xlu0 %v1275_v34, %s7237_s27  ;;  %v8009_v27 = vrot.slane %v1413_v19, %v7391_v35  ;;  %v8012_v5 = vrot.slane %v1397_v58, %v7391_v35  ;;  %v959_v30 = vcombine.high %v7976_v32, %v7973_v52 }
 0x296   :  { %v8021_v15 = vrot.slane %v705_v31, %v7415_v47  ;;  %v1659_v19 = vrot.slane %v1645_v12, %v7391_v35  ;;  %v1429_v58 = vcombine.high %v8000_v25, %v7997_v54 }
 0x297   :  { %v7978_v62 = vpop.permute.xlu0 %2102  ;;  %v7980_v34 = vpop.permute.xlu1 %2098  ;;  %v1444_v31 = vcombine.low %v8012_v5, %v8009_v27  ;;  %v8046_v28 = vrot.slane %v959_v30, %v7415_v47  ;;  %v703_v30 = vrot.slane %v689_v42, %v7391_v35  ;;  %v1445_v46 = vcombine.high %v8012_v5, %v8009_v27 }
 0x298   :  { %v2130_v21 = vcombine.low %v7944_v63, %v7978_v62  ;;  %v2114_v53 = vcombine.low %v7946_v24, %v7980_v34  ;;  %v8073_v38 = vrot.slane %v1429_v58, %v7415_v47 }
 0x299   :  { %1331 = vrot.lane.b32.xlu1 %v1277_v59, %s7233_s23  ;;  %2047 = vrot.lane.b32.xlu0 %v2000_v50, %s7235_s25  ;;  %v8076_v60 = vrot.slane %v1444_v31, %v7415_v47 }
 0x29a   :  { %v8003_v48 = vrot.slane %v2130_v21, %v7391_v35  ;;  %v8006_v26 = vrot.slane %v2114_v53, %v7391_v35  ;;  %v1675_v21 = vrot.slane %v1661_v11, %v7391_v35  ;;  %v8033_v53 = vrot.slane %v1677_v23, %v7415_v47 }
 0x29b   :  { %v8016_v59 = vpop.permute.xlu0 %2348  ;;  %v8018_v50 = vpop.permute.xlu1 %2344  ;;  %v673_v11 = vcombine.high %v7822_v18, %v7837_v4  ;;  %v927_v18 = vcombine.high %v7847_v16, %v7859_v61  ;;  %v1676_v16 = vcombine.low %v7954_v56, %v7951_v13 }
 0x29c   :  { %v1692_v1 = vcombine.low %v1659_v19, %v1675_v21  ;;  %v1693_v29 = vcombine.high %v1659_v19, %v1675_v21  ;;  %v2147_v42 = vcombine.high %v8006_v26, %v8003_v48 }
 0x29d   :  { %598 = vrot.lane.b32.xlu1 %v551_v44, %s7235_s25  ;;  %813 = vrot.lane.b32.xlu0 %v8021_v15, %s7236_s26  ;;  %v687_v21 = vrot.slane %v673_v11, %v7391_v35  ;;  %v941_v7 = vrot.slane %v927_v18, %v7391_v35  ;;  %v2131_v18 = vcombine.high %v7944_v63, %v7978_v62 }
 0x29e   :  { %v8093_v11 = vrot.slane %v1692_v1, %v7415_v47  ;;  %v2115_v1 = vcombine.high %v7946_v24, %v7980_v34  ;;  %v8115_v13 = vrot.slane %v2147_v42, %v7415_v47  ;;  %v8127_v63 = vrot.slane %v1676_v16, %v7415_v47 }
 0x29f   :  { %v8041_v12 = vpop.permute.xlu0 %2356  ;;  %v8043_v44 = vpop.permute.xlu1 %2352  ;;  %v720_v61 = vcombine.low %v687_v21, %v703_v30  ;;  %v8130_v24 = vrot.slane %v2131_v18, %v7391_v35 }
 0x2a0   :  { %v2384_v23 = vcombine.low %v8016_v59, %v8041_v12  ;;  %v2368_v2 = vcombine.low %v8018_v50, %v8043_v44  ;;  %11157 = vst [vmem:[#allocation23_spill] sm:$0xff] %v8115_v13  ;;  %11159 = vst [vmem:[#allocation25_spill] sm:$0xff] %v8127_v63  ;;  %v8136_v34 = vrot.slane %v2115_v1, %v7391_v35 }
 0x2a1   :  { %1785 = vrot.lane.b32.xlu1 %v8033_v53, %s7236_s26  ;;  %1067 = vrot.lane.b32.xlu0 %v8046_v28, %s7236_s26  ;;  %v8118_v56 = vrot.slane %v720_v61, %v7415_v47  ;;  %v2385_v27 = vcombine.high %v8016_v59, %v8041_v12  ;;  %v2369_v5 = vcombine.high %v8018_v50, %v8043_v44  ;;  %v11162_v59 = vmov 0.0  }
 0x2a2   :  { %v8061_v39 = vrot.slane %v2384_v23, %v7391_v35  ;;  %v8064_v4 = vrot.slane %v2368_v2, %v7391_v35  ;;  %v957_v2 = vrot.slane %v943_v17, %v7391_v35  ;;  %v8096_v23 = vrot.slane %v1693_v29, %v7415_v47 }
 0x2a3   :  { %v8068_v19 = vpop.permute.xlu0 %1626  ;;  %v8070_v6 = vpop.permute.xlu1 %1622  ;;  %11158 = vst [vmem:[#allocation24_spill] sm:$0xff] %v8118_v56  ;;  %v1708_v50 = vcombine.high %v8127_v63, %v11162_v59  ;;  %v8160_v12 = vrot.slane %v1445_v46, %v7415_v47  ;;  %v721_v44 = vcombine.high %v687_v21, %v703_v30  ;;  %v2198_v1 = vcombine.low %v7874_v8, %v7885_v55 }
 0x2a4   :  { %11156 = vst [vmem:[#allocation22_spill] sm:$0xff] %v8061_v39  ;;  %v974_v17 = vcombine.low %v941_v7, %v957_v2  ;;  %v2401_v29 = vcombine.high %v8064_v4, %v8061_v39  ;;  %v8175_v63 = vrot.slane %v2385_v27, %v7391_v35  ;;  %v8178_v46 = vrot.slane %v2369_v5, %v7391_v35 }
 0x2a5   :  { %1537 = vrot.lane.b32.xlu1 %v8073_v38, %s7236_s26  ;;  %1545 = vrot.lane.b32.xlu0 %v8076_v60, %s7234_s24  ;;  %v975_v27 = vcombine.high %v941_v7, %v957_v2  ;;  %v8195_v5 = vrot.slane %v2198_v1, %v7391_v35 }
 0x2a6   :  { %v8133_v62 = vrot.slane %v974_v17, %v7415_v47  ;;  %v8147_v16 = vrot.slane %v2401_v29, %v7415_v47 }
 0x2a7   :  { %v8088_v58 = vpop.permute.xlu0 %1634  ;;  %v8090_v31 = vpop.permute.xlu1 %1630 }
 0x2a8   :  { %11160 = vst [vmem:[#allocation26_spill] sm:$0xff] %v8133_v62  ;;  %11161 = vst [vmem:[#allocation27_spill] sm:$0xff] %v8147_v16  ;;  %v1728_v7 = vcombine.low %v8068_v19, %v8088_v58 }
 0x2a9   :  { %1793 = vrot.lane.b32.xlu1 %v8093_v11, %s7234_s24  ;;  %1801 = vrot.lane.b32.xlu0 %v8096_v23, %s7232_s2 }
 0x2ab   :  { %v8110_v40 = vpop.permute.xlu0 %1378  ;;  %v8112_v14 = vpop.permute.xlu1 %1374 }
 0x2ad   :  { %2255 = vrot.lane.b32.xlu1 %v8115_v13, %s7236_s26  ;;  %821 = vrot.lane.b32.xlu0 %v8118_v56, %s7234_s24  ;;  %v2162_v13 = vcombine.low %v8136_v34, %v8130_v24 }
 0x2af   :  { %v8142_v61 = vpop.permute.xlu0 %1386  ;;  %v8144_v42 = vpop.permute.xlu1 %1382  ;;  %v8207_v56 = vrot.slane %v2162_v13, %v7415_v47  ;;  %v1712_v13 = vcombine.low %v8070_v6, %v8090_v31 }
 0x2b0   :  { %v1480_v17 = vcombine.low %v8110_v40, %v8142_v61  ;;  %v1464_v18 = vcombine.low %v8112_v14, %v8144_v42 }
 0x2b1   :  { %2509 = vrot.lane.b32.xlu1 %v8147_v16, %s7236_s26  ;;  %1075 = vrot.lane.b32.xlu0 %v8133_v62, %s7234_s24  ;;  %v2182_v16 = vcombine.low %v7876_v43, %v7887_v0  ;;  %v8192_v62 = vrot.slane %v721_v44, %v7415_v47  ;;  %11164 = vst [vmem:[#allocation29_spill] sm:$0xff] %v8207_v56 }
 0x2b2   :  { %v8165_v29 = vrot.slane %v1480_v17, %v7391_v35  ;;  %v8168_v45 = vrot.slane %v1464_v18, %v7391_v35  ;;  %v1428_v18 = vcombine.low %v8000_v25, %v7997_v54  ;;  %v2416_v17 = vcombine.low %v8178_v46, %v8175_v63 }
 0x2b3   :  { %v8180_v30 = vpop.permute.xlu0 %654  ;;  %v8182_v21 = vpop.permute.xlu1 %650  ;;  %11163 = vst [vmem:[#allocation28_spill] sm:$0xff] %v8192_v62  ;;  %v8198_v41 = vrot.slane %v2182_v16, %v7391_v35  ;;  %v8214_v25 = vrot.slane %v975_v27, %v7415_v47  ;;  %v2183_v27 = vcombine.high %v7876_v43, %v7887_v0 }
 0x2b4   :  { %v8217_v54 = vrot.slane %v1428_v18, %v7415_v47  ;;  %v8230_v1 = vrot.slane %v2416_v17, %v7415_v47  ;;  %v2199_v18 = vcombine.high %v7874_v8, %v7885_v55  ;;  %v8245_v17 = vrot.slane %v1728_v7, %v7391_v35 }
 0x2b5   :  { %1781 = vrot.lane.b32.xlu1 %v1708_v50, %s7238_s28  ;;  %1553 = vrot.lane.b32.xlu0 %v8160_v12, %s7232_s2  ;;  %v2215_v2 = vcombine.high %v8198_v41, %v8195_v5  ;;  %v8248_v8 = vrot.slane %v1712_v13, %v7391_v35  ;;  %v1709_v7 = vcombine.high %v8033_v53, %v11162_v59 }
 0x2b6   :  { %11165 = vst [vmem:[#allocation30_spill] sm:$0xff] %v8217_v54  ;;  %11166 = vst [vmem:[#allocation31_spill] sm:$0xff] %v8230_v1  ;;  %v2453_v13 = vcombine.high %v7895_v20, %v7910_v9 }
 0x2b7   :  { %v8202_v50 = vpop.permute.xlu0 %662  ;;  %v8204_v49 = vpop.permute.xlu1 %658  ;;  %v8255_v39 = vrot.slane %v2215_v2, %v7415_v47  ;;  %v8270_v2 = vrot.slane %v2183_v27, %v7391_v35  ;;  %v1745_v53 = vcombine.high %v8248_v8, %v8245_v17 }
 0x2b9   :  { %2263 = vrot.lane.b32.xlu1 %v8207_v56, %s7234_s24  ;;  %829 = vrot.lane.b32.xlu0 %v8192_v62, %s7232_s2  ;;  %v1460_v56 = vcombine.high %v8217_v54, %v11162_v59  ;;  %v2469_v62 = vcombine.high %v7932_v22, %v7929_v36  ;;  %11167 = vst [vmem:[#allocation32_spill] sm:$0xff] %v8255_v39 }
 0x2ba   :  { %v8262_v54 = vrot.slane %v2199_v18, %v7391_v35 }
 0x2bb   :  { %v8225_v16 = vpop.permute.xlu0 %908  ;;  %v8227_v44 = vpop.permute.xlu1 %904  ;;  %v8291_v20 = vrot.slane %v2469_v62, %v7415_v47 }
 0x2bd   :  { %2517 = vrot.lane.b32.xlu1 %v8230_v1, %s7234_s24  ;;  %1083 = vrot.lane.b32.xlu0 %v8214_v25, %s7232_s2 }
 0x2bf   :  { %v8250_v55 = vpop.permute.xlu0 %916  ;;  %v8252_v1 = vpop.permute.xlu1 %912 }
 0x2c0   :  { %v1010_v43 = vcombine.low %v8225_v16, %v8250_v55  ;;  %v994_v0 = vcombine.low %v8227_v44, %v8252_v1 }
 0x2c1   :  { %1533 = vrot.lane.b32.xlu1 %v1460_v56, %s7238_s28  ;;  %2283 = vrot.lane.b32.xlu0 %v8255_v39, %s7236_s26  ;;  %v2437_v56 = vcombine.high %v7897_v57, %v7912_v51  ;;  %v2163_v39 = vcombine.high %v8136_v34, %v8130_v24  ;;  %v704_v57 = vcombine.low %v7938_v33, %v7935_v3 }
 0x2c2   :  { %v8275_v36 = vrot.slane %v1010_v43, %v7391_v35  ;;  %v8278_v18 = vrot.slane %v994_v0, %v7391_v35  ;;  %v2230_v51 = vcombine.low %v8270_v2, %v8262_v54  ;;  %v8303_v24 = vrot.slane %v2453_v13, %v7391_v35 }
 0x2c3   :  { %v8286_v27 = vpop.permute.xlu0 %1291  ;;  %v8288_v22 = vpop.permute.xlu1 %1283  ;;  %v8306_v62 = vrot.slane %v2437_v56, %v7391_v35  ;;  %v2417_v34 = vcombine.high %v8178_v46, %v8175_v63  ;;  %v8318_v3 = vrot.slane %v1745_v53, %v7415_v47  ;;  %v1729_v33 = vcombine.high %v8068_v19, %v8088_v58 }
 0x2c4   :  { %v1713_v63 = vcombine.high %v8070_v6, %v8090_v31  ;;  %v8329_v46 = vrot.slane %v704_v57, %v7415_v47  ;;  %v8343_v19 = vrot.slane %v2230_v51, %v7415_v47 }
 0x2c5   :  { %1789 = vrot.lane.b32.xlu1 %v1709_v7, %s7237_s27  ;;  %2537 = vrot.lane.b32.xlu0 %v8291_v20, %s7236_s26  ;;  %v8315_v7 = vrot.slane %v2163_v39, %v7415_v47  ;;  %v958_v39 = vcombine.low %v7976_v32, %v7973_v52  ;;  %v2484_v13 = vcombine.low %v8306_v62, %v8303_v24 }
 0x2c6   :  { %11169 = vst [vmem:[#allocation34_spill] sm:$0xff] %v8329_v46  ;;  %v8340_v9 = vrot.slane %v2417_v34, %v7415_v47  ;;  %11171 = vst [vmem:[#allocation36_spill] sm:$0xff] %v8343_v19  ;;  %v8350_v6 = vrot.slane %v1729_v33, %v7391_v35  ;;  %v8353_v52 = vrot.slane %v1713_v63, %v7391_v35 }
 0x2c7   :  { %v8310_v43 = vpop.permute.xlu1 %2007  ;;  %v8312_v0 = vpop.permute.xlu0 %558  ;;  %v1497_v32 = vcombine.high %v8168_v45, %v8165_v29  ;;  %v736_v57 = vcombine.high %v8329_v46, %v11162_v59  ;;  %v8364_v51 = vrot.slane %v2484_v13, %v7415_v47  ;;  %v8367_v34 = vrot.slane %v958_v39, %v7415_v47 }
 0x2c8   :  { %11168 = vst [vmem:[#allocation33_spill] sm:$0xff] %v8312_v0  ;;  %11170 = vst [vmem:[#allocation35_spill] sm:$0xff] %v8340_v9  ;;  %v1760_v33 = vcombine.low %v8353_v52, %v8350_v6  ;;  %v757_v63 = vcombine.high %v8180_v30, %v8202_v50  ;;  %v2231_v46 = vcombine.high %v8270_v2, %v8262_v54 }
 0x2c9   :  { %2271 = vrot.lane.b32.xlu1 %v8315_v7, %s7232_s2  ;;  %1813 = vrot.lane.b32.xlu0 %v8318_v3, %s7236_s26  ;;  %11173 = vst [vmem:[#allocation38_spill] sm:$0xff] %v8364_v51  ;;  %11174 = vst [vmem:[#allocation39_spill] sm:$0xff] %v8367_v34  ;;  %v990_v39 = vcombine.high %v8367_v34, %v11162_v59  ;;  %v1461_v34 = vcombine.high %v8073_v38, %v11162_v59 }
 0x2ca   :  { %v1011_v2 = vcombine.high %v8225_v16, %v8250_v55  ;;  %v8417_v38 = vrot.slane %v2231_v46, %v7415_v47  ;;  %v1481_v16 = vcombine.high %v8110_v40, %v8142_v61 }
 0x2cb   :  { %v8335_v56 = vpop.permute.xlu1 %1279  ;;  %v8337_v53 = vpop.permute.xlu0 %1299 }
 0x2cd   :  { %2525 = vrot.lane.b32.xlu1 %v8340_v9, %s7232_s2  ;;  %2291 = vrot.lane.b32.xlu0 %v8343_v19, %s7234_s24  ;;  %v756_v9 = vcombine.low %v8180_v30, %v8202_v50  ;;  %v771_v19 = vrot.slane %v757_v63, %v7391_v35 }
 0x2cf   :  { %v8357_v58 = vpop.permute.xlu1 %2015  ;;  %v8359_v31 = vpop.permute.xlu0 %566 }
 0x2d0   :  { %11172 = vst [vmem:[#allocation37_spill] sm:$0xff] %v8359_v31  ;;  %v741_v31 = vcombine.high %v8182_v21, %v8204_v49 }
 0x2d1   :  { %809 = vrot.lane.b32.xlu1 %v736_v57, %s7238_s28  ;;  %2545 = vrot.lane.b32.xlu0 %v8364_v51, %s7234_s24  ;;  %v8385_v57 = vrot.slane %v1497_v32, %v7415_v47  ;;  %v740_v51 = vcombine.low %v8182_v21, %v8204_v49  ;;  %v8399_v32 = vrot.slane %v1760_v33, %v7415_v47 }
 0x2d2   :  { %v755_v54 = vrot.slane %v741_v31, %v7391_v35  ;;  %v1710_v49 = vcombine.high %v8093_v11, %v11162_v59  ;;  %v2485_v21 = vcombine.high %v8306_v62, %v8303_v24  ;;  %v1025_v11 = vrot.slane %v1011_v2, %v7391_v35 }
 0x2d3   :  { %v8378_v0 = vpop.permute.xlu1 %1287  ;;  %v8380_v13 = vpop.permute.xlu0 %2035  ;;  %v8429_v55 = vrot.slane %v740_v51, %v7391_v35  ;;  %v1027_v2 = vcombine.high %v8278_v18, %v8275_v36 }
 0x2d4   :  { %v788_v31 = vcombine.low %v755_v54, %v771_v19  ;;  %v8442_v40 = vrot.slane %v2485_v21, %v7415_v47 }
 0x2d5   :  { %1063 = vrot.lane.b32.xlu1 %v990_v39, %s7238_s28  ;;  %1565 = vrot.lane.b32.xlu0 %v8385_v57, %s7236_s26  ;;  %v995_v39 = vcombine.high %v8227_v44, %v8252_v1  ;;  %v1465_v44 = vcombine.high %v8112_v14, %v8144_v42  ;;  %v8426_v1 = vrot.slane %v756_v9, %v7391_v35 }
 0x2d6   :  { %v1495_v14 = vrot.slane %v1481_v16, %v7391_v35  ;;  %v8452_v33 = vrot.slane %v788_v31, %v7415_v47  ;;  %v789_v31 = vcombine.high %v755_v54, %v771_v19 }
 0x2d7   :  { %v8407_v30 = vpop.permute.xlu1 %586  ;;  %v8409_v50 = vpop.permute.xlu0 %1311  ;;  %v1009_v46 = vrot.slane %v995_v39, %v7391_v35  ;;  %v1479_v61 = vrot.slane %v1465_v44, %v7391_v35  ;;  %v773_v42 = vcombine.high %v8429_v55, %v8426_v1 }
 0x2d9   :  { %1541 = vrot.lane.b32.xlu1 %v1461_v34, %s7237_s27  ;;  %1821 = vrot.lane.b32.xlu0 %v8399_v32, %s7234_s24  ;;  %v1042_v9 = vcombine.low %v1009_v46, %v1025_v11  ;;  %v1513_v63 = vcombine.high %v1479_v61, %v1495_v14  ;;  %v8468_v16 = vrot.slane %v773_v42, %v7415_v47 }
 0x2da   :  { %v1512_v44 = vcombine.low %v1479_v61, %v1495_v14  ;;  %v1761_v14 = vcombine.high %v8353_v52, %v8350_v6  ;;  %v1043_v19 = vcombine.high %v1009_v46, %v1025_v11  ;;  %v8493_v42 = vrot.slane %v789_v31, %v7415_v47 }
 0x2db   :  { %v8433_v34 = vpop.permute.xlu1 %1327  ;;  %v8435_v24 = vpop.permute.xlu0 %2043  ;;  %v8465_v21 = vrot.slane %v1042_v9, %v7415_v47  ;;  %v8480_v9 = vrot.slane %v1027_v2, %v7415_v47  ;;  %v1334_v2 = vsel %vm609_vm8, %v7668_v37, %v8335_v56 }
 0x2dc   :  { %v1335_v6 = vsel %vm611_vm9, %v1334_v2, %v8288_v22  ;;  %v8508_v46 = vrot.slane %v1043_v19, %v7415_v47  ;;  %v2214_v22 = vcombine.low %v8198_v41, %v8195_v5  ;;  %v737_v19 = vcombine.high %v8021_v15, %v11162_v59 }
 0x2dd   :  { %1797 = vrot.lane.b32.xlu1 %v1710_v49, %s7235_s25  ;;  %2299 = vrot.lane.b32.xlu0 %v8417_v38, %s7232_s2  ;;  %v1336_v37 = vsel %vm613_vm10, %v1335_v6, %v8378_v0  ;;  %v1463_v0 = vcombine.high %v8160_v12, %v11162_v59  ;;  %v993_v12 = vcombine.high %v8214_v25, %v11162_v59 }
 0x2de   :  { %v1337_v56 = vsel %vm11141_vm11, %v1336_v37, %v8286_v27  ;;  %v991_v15 = vcombine.high %v8046_v28, %v11162_v59  ;;  %v8541_v6 = vrot.slane %v2214_v22, %v7415_v47 }
 0x2df   :  { %v8447_v62 = vpop.permute.xlu1 %594  ;;  %v8449_v51 = vpop.permute.xlu0 %1319 }
 0x2e0   :  { %11175 = vst [vmem:[#allocation40_spill] sm:$0xff] %v8447_v62  ;;  %v2246_v28 = vcombine.high %v8541_v6, %v11162_v59 }
 0x2e1   :  { %849 = vrot.lane.b32.xlu1 %v8452_v33, %s7234_s24  ;;  %2553 = vrot.lane.b32.xlu0 %v8442_v40, %s7232_s2 }
 0x2e3   :  { %v8460_v39 = vpop.permute.xlu1 %602  ;;  %v8462_v49 = vpop.permute.xlu0 %2051 }
 0x2e4   :  { %11176 = vst [vmem:[#allocation41_spill] sm:$0xff] %v8460_v39  ;;  %v8477_v39 = vrot.slane %v1513_v63, %v7415_v47  ;;  %v8496_v63 = vrot.slane %v1512_v44, %v7415_v47  ;;  %v8511_v44 = vrot.slane %v1761_v14, %v7415_v47 }
 0x2e5   :  { %1103 = vrot.lane.b32.xlu1 %v8465_v21, %s7234_s24  ;;  %841 = vrot.lane.b32.xlu0 %v8468_v16, %s7236_s26 }
 0x2e7   :  { %v2004_v35 = vpop.permute.xlu1 %2003  ;;  %v8474_v62 = vpop.permute.xlu0 %2023 }
 0x2e9   :  { %1581 = vrot.lane.b32.xlu1 %v8477_v39, %s7232_s2  ;;  %1095 = vrot.lane.b32.xlu0 %v8480_v9, %s7236_s26 }
 0x2eb   :  { %v8488_v54 = vpop.permute.xlu1 %1307  ;;  %v8490_v61 = vpop.permute.xlu0 %554 }
 0x2ed   :  { %857 = vrot.lane.b32.xlu1 %v8493_v42, %s7232_s2  ;;  %1573 = vrot.lane.b32.xlu0 %v8496_v63, %s7234_s24 }
 0x2ef   :  { %v2012_v52 = vpop.permute.xlu1 %2011  ;;  %v1296_v11 = vpop.permute.xlu0 %1295 }
 0x2f0   :  { %v1338_v2 = vsel %vm11138_vm12, %v1337_v56, %v1296_v11  ;;  %v2058_v11 = vsel %vm609_vm8, %v7801_v10, %v2004_v35  ;;  %v1462_v35 = vcombine.high %v8076_v60, %v11162_v59  ;;  %v11179_v10 = vcombine.low %v8006_v26, %v8003_v48  ;;  %v11180_v26 = vld [vmem:[#allocation22_spill] sm:$0xff] }
 0x2f1   :  { %1111 = vrot.lane.b32.xlu1 %v8508_v46, %s7232_s2  ;;  %1829 = vrot.lane.b32.xlu0 %v8511_v44, %s7232_s2  ;;  %v1339_v5 = vsel %vm11140_vm13, %v1338_v2, %v8337_v53  ;;  %v2059_v53 = vsel %vm611_vm9, %v2058_v11, %v8310_v43  ;;  %v1711_v43 = vcombine.high %v8096_v23, %v11162_v59  ;;  %v11182_v11 = vld [vmem:[#allocation24_spill] sm:$0xff] }
 0x2f2   :  { %v8560_v22 = vrot.slane %v11179_v10, %v7415_v47  ;;  %v1744_v2 = vcombine.low %v8248_v8, %v8245_v17 }
 0x2f3   :  { %v2020_v31 = vpop.permute.xlu1 %2019  ;;  %v8523_v14 = vpop.permute.xlu0 %562 }
 0x2f4   :  { %11177 = vst [vmem:[#allocation42_spill] sm:$0xff] %v8523_v14  ;;  %v2178_v48 = vcombine.high %v8560_v22, %v11162_v59 }
 0x2f5   :  { %1557 = vrot.lane.b32.xlu1 %v1463_v0, %s7233_s23  ;;  %817 = vrot.lane.b32.xlu0 %v737_v19, %s7237_s27  ;;  %v2060_v19 = vsel %vm613_vm10, %v2059_v53, %v2012_v52  ;;  %v11181_v52 = vcombine.low %v8064_v4, %v11180_v26  ;;  %v8589_v4 = vrot.slane %v1744_v2, %v7415_v47  ;;  %v11184_v53 = vld [vmem:[#allocation19_spill] sm:$0xff]  ;;  %v11186_v2 = vld [vmem:[#allocation26_spill] sm:$0xff] }
 0x2f6   :  { %v2061_v60 = vsel %vm11141_vm11, %v2060_v19, %v8357_v58 }
 0x2f7   :  { %v8532_v41 = vpop.permute.xlu1 %582  ;;  %v1304_v27 = vpop.permute.xlu0 %1303 }
 0x2f8   :  { %v1340_v37 = vsel %vm11139_vm14, %v1339_v5, %v1304_v27 }
 0x2f9   :  { %v1350_v56 = vrot.slane %v1340_v37, 4  ;;  %1087 = vrot.lane.b32.xlu1 %v993_v12, %s7233_s23  ;;  %1071 = vrot.lane.b32.xlu0 %v991_v15, %s7237_s27  ;;  %v8577_v12 = vrot.slane %v11181_v52, %v7415_v47  ;;  %v2062_v15 = vsel %vm11138_vm12, %v2061_v60, %v2020_v31  ;;  %v738_v37 = vcombine.high %v11182_v11, %v11162_v59  ;;  %v11183_v31 = vld [vmem:[#allocation16_spill] sm:$0xff]  ;;  %v11189_v11 = vld [vmem:[#allocation21_spill] sm:$0xff] }
 0x2fa   :  { %v2063_v17 = vsel %vm11140_vm13, %v2062_v15, %v8474_v62  ;;  %v992_v60 = vcombine.high %v11186_v2, %v11162_v59 }
 0x2fb   :  { %1354 = vst [vmem:[#allocation3 + $0x18] sm:$0xf0] %v1350_v56  ;;  %v1324_v25 = vpop.permute.xlu1 %1323  ;;  %v8550_v0 = vpop.permute.xlu0 %570  ;;  %v2432_v58 = vcombine.high %v8577_v12, %v11162_v59  ;;  %v1341_v56 = vsel %vm609_vm8, %v11183_v31, %v8488_v54  ;;  %v1776_v54 = vcombine.high %v8589_v4, %v11162_v59 }
 0x2fc   :  { %11178 = vst [vmem:[#allocation43_spill] sm:$0xff] %v8550_v0  ;;  %v1342_v19 = vsel %vm611_vm9, %v1341_v56, %v8409_v50  ;;  %v11187_v50 = vld [vmem:[#allocation28_spill] sm:$0xff] }
 0x2fd   :  { %2279 = vrot.lane.b32.xlu1 %v2246_v28, %s7238_s28  ;;  %1549 = vrot.lane.b32.xlu0 %v1462_v35, %s7235_s25  ;;  %v739_v52 = vcombine.high %v11187_v50, %v11162_v59 }
 0x2ff   :  { %v2056_v5 = vpop.permute.xlu1 %2055  ;;  %v2032_v27 = vpop.permute.xlu0 %2031 }
 0x300   :  { %v2065_v28 = vsel %vm609_vm8, %v11184_v53, %v2032_v27 }
 0x301   :  { %2251 = vrot.lane.b32.xlu1 %v2178_v48, %s7238_s28  ;;  %1805 = vrot.lane.b32.xlu0 %v1711_v43, %s7233_s23  ;;  %v2066_v62 = vsel %vm611_vm9, %v2065_v28, %v8380_v13 }
 0x303   :  { %v2028_v23 = vpop.permute.xlu1 %2027  ;;  %v2040_v8 = vpop.permute.xlu0 %2039 }
 0x304   :  { %v2064_v35 = vsel %vm11139_vm14, %v2063_v17, %v2028_v23  ;;  %v2067_v27 = vsel %vm613_vm10, %v2066_v62, %v2040_v8 }
 0x305   :  { %2072 = vst [vmem:[#allocation3 + $0x8] sm:$0xf] %v2064_v35  ;;  %2505 = vrot.lane.b32.xlu1 %v2432_v58, %s7238_s28  ;;  %825 = vrot.lane.b32.xlu0 %v738_v37, %s7235_s25  ;;  %v2068_v17 = vsel %vm11141_vm11, %v2067_v27, %v8435_v24  ;;  %v11188_v58 = vld [vmem:[#allocation23_spill] sm:$0xff]  ;;  %v11190_v37 = vld [vmem:[#allocation20_spill] sm:$0xff] }
 0x306   :  { %v11191_v31 = vcombine.low %v11189_v11, %v11190_v37  ;;  %v2181_v11 = vcombine.high %v8315_v7, %v11162_v59  ;;  %v1777_v37 = vcombine.high %v8318_v3, %v11162_v59 }
 0x307   :  { %v8601_v10 = vpop.permute.xlu1 %590  ;;  %v1316_v43 = vpop.permute.xlu0 %1315 }
 0x308   :  { %11185 = vst [vmem:[#allocation22_spill] sm:$0xff] %v8601_v10  ;;  %v1343_v48 = vsel %vm613_vm10, %v1342_v19, %v1316_v43  ;;  %v8628_v56 = vrot.slane %v11191_v31, %v7415_v47  ;;  %v11193_v19 = vld [vmem:[#allocation27_spill] sm:$0xff] }
 0x309   :  { %v1344_v26 = vsel %vm11141_vm11, %v1343_v48, %v8449_v51  ;;  %1809 = vrot.lane.b32.xlu1 %v1776_v54, %s7238_s28  ;;  %1079 = vrot.lane.b32.xlu0 %v992_v60, %s7235_s25  ;;  %v2179_v51 = vcombine.high %v11188_v58, %v11162_v59  ;;  %v2433_v43 = vcombine.high %v11193_v19, %v11162_v59  ;;  %v11194_v60 = vld [vmem:[#allocation29_spill] sm:$0xff]  ;;  %v11195_v48 = vld [vmem:[#allocation32_spill] sm:$0xff]  ;;  %v11199_v19 = vld [vmem:[#allocation38_spill] sm:$0xff] }
 0x30a   :  { %v1345_v13 = vsel %vm11138_vm12, %v1344_v26, %v1324_v25  ;;  %v2500_v54 = vcombine.high %v8628_v56, %v11162_v59  ;;  %v2180_v27 = vcombine.high %v11194_v60, %v11162_v59  ;;  %v2247_v26 = vcombine.high %v11195_v48, %v11162_v59 }
 0x30b   :  { %v1332_v15 = vpop.permute.xlu1 %1331  ;;  %v1346_v23 = vsel %vm11140_vm13, %v1345_v13, %v8433_v34  ;;  %v2048_v8 = vpop.permute.xlu0 %2047  ;;  %v1779_v48 = vcombine.high %v8511_v44, %v11162_v59 }
 0x30c   :  { %v1347_v25 = vsel %vm11139_vm14, %v1346_v23, %v1332_v15  ;;  %v2069_v53 = vsel %vm11138_vm12, %v2068_v17, %v2048_v8  ;;  %v11197_v23 = vcombine.low %v8168_v45, %v8165_v29 }
 0x30d   :  { %v1351_v28 = vrot.slane %v1347_v25, 4  ;;  %v2070_v34 = vsel %vm11140_vm13, %v2069_v53, %v8462_v49  ;;  %2259 = vrot.lane.b32.xlu1 %v2179_v51, %s7237_s27  ;;  %833 = vrot.lane.b32.xlu0 %v739_v52, %s7233_s23  ;;  %v772_v49 = vcombine.low %v8429_v55, %v8426_v1  ;;  %v11196_v1 = vld [vmem:[#allocation31_spill] sm:$0xff]  ;;  %v2501_v52 = vcombine.high %v8291_v20, %v11162_v59 }
 0x30e   :  { %v2071_v24 = vsel %vm11139_vm14, %v2070_v34, %v2056_v5  ;;  %v2434_v55 = vcombine.high %v11196_v1, %v11162_v59  ;;  %v8674_v17 = vrot.slane %v11197_v23, %v7415_v47  ;;  %v805_v53 = vcombine.high %v8468_v16, %v11162_v59 }
 0x30f   :  { %1355 = vst [vmem:[#allocation3 + $0x10] sm:$0xf0] %v1351_v28  ;;  %2073 = vst [vmem:[#allocation3 + $0x20] sm:$0xf] %v2071_v24  ;;  %v8637_v35 = vpop.permute.xlu1 %598  ;;  %v8639_v62 = vpop.permute.xlu0 %813  ;;  %v8668_v15 = vrot.slane %v772_v49, %v7415_v47  ;;  %v11198_v28 = vld [vmem:[#allocation36_spill] sm:$0xff]  ;;  %v1059_v24 = vcombine.high %v8480_v9, %v11162_v59  ;;  %v11200_v16 = vcombine.low %v8278_v18, %v8275_v36 }
 0x310   :  { %11192 = vst [vmem:[#allocation24_spill] sm:$0xff] %v8637_v35  ;;  %v1528_v51 = vcombine.high %v8674_v17, %v11162_v59  ;;  %v2248_v34 = vcombine.high %v11198_v28, %v11162_v59  ;;  %v1530_v9 = vcombine.high %v8496_v63, %v11162_v59 }
 0x311   :  { %2513 = vrot.lane.b32.xlu1 %v2433_v43, %s7237_s27  ;;  %2533 = vrot.lane.b32.xlu0 %v2500_v54, %s7238_s28  ;;  %v804_v20 = vcombine.high %v8668_v15, %v11162_v59  ;;  %v2502_v43 = vcombine.high %v11199_v19, %v11162_v59  ;;  %v8720_v54 = vrot.slane %v11200_v16, %v7415_v47  ;;  %v11204_v19 = vld [vmem:[#allocation14_spill] sm:$0xff] }
 0x313   :  { %v8649_v5 = vpop.permute.xlu1 %1785  ;;  %v8651_v2 = vpop.permute.xlu0 %1067 }
 0x315   :  { %2267 = vrot.lane.b32.xlu1 %v2180_v27, %s7235_s25  ;;  %2287 = vrot.lane.b32.xlu0 %v2247_v26, %s7237_s27  ;;  %v1058_v27 = vcombine.high %v8720_v54, %v11162_v59  ;;  %v1529_v26 = vcombine.high %v8385_v57, %v11162_v59  ;;  %v1060_v57 = vcombine.high %v8465_v21, %v11162_v59 }
 0x317   :  { %v8659_v13 = vpop.permute.xlu1 %1537  ;;  %v8661_v50 = vpop.permute.xlu0 %1545 }
 0x319   :  { %2521 = vrot.lane.b32.xlu1 %v2434_v55, %s7235_s25  ;;  %2541 = vrot.lane.b32.xlu0 %v2501_v52, %s7237_s27  ;;  %v806_v55 = vcombine.high %v8452_v33, %v11162_v59  ;;  %v1778_v52 = vcombine.high %v8399_v32, %v11162_v59 }
 0x31b   :  { %v8678_v8 = vpop.permute.xlu1 %1793  ;;  %v8680_v58 = vpop.permute.xlu0 %1801 }
 0x31d   :  { %837 = vrot.lane.b32.xlu1 %v804_v20, %s7238_s28  ;;  %1561 = vrot.lane.b32.xlu0 %v1528_v51, %s7238_s28  ;;  %v2249_v20 = vcombine.high %v8417_v38, %v11162_v59  ;;  %v1531_v51 = vcombine.high %v8477_v39, %v11162_v59 }
 0x31f   :  { %v8688_v45 = vpop.permute.xlu1 %2255  ;;  %v8690_v29 = vpop.permute.xlu0 %821 }
 0x321   :  { %2275 = vrot.lane.b32.xlu1 %v2181_v11, %s7233_s23  ;;  %1817 = vrot.lane.b32.xlu0 %v1777_v37, %s7237_s27  ;;  %v2503_v11 = vcombine.high %v8442_v40, %v11162_v59  ;;  %v807_v37 = vcombine.high %v8493_v42, %v11162_v59  ;;  %v11206_v42 = vld [vmem:[#allocation15_spill] sm:$0xff] }
 0x323   :  { %v8698_v31 = vpop.permute.xlu1 %2509  ;;  %v8700_v25 = vpop.permute.xlu0 %1075 }
 0x325   :  { %845 = vrot.lane.b32.xlu1 %v805_v53, %s7237_s27  ;;  %2295 = vrot.lane.b32.xlu0 %v2248_v34, %s7235_s25  ;;  %v11202_v53 = vld [vmem:[#allocation35_spill] sm:$0xff]  ;;  %v1061_v34 = vcombine.high %v8508_v46, %v11162_v59 }
 0x326   :  { %v2435_v28 = vcombine.high %v11202_v53, %v11162_v59 }
 0x327   :  { %v8708_v7 = vpop.permute.xlu1 %1781  ;;  %v8710_v3 = vpop.permute.xlu0 %1553 }
 0x329   :  { %1099 = vrot.lane.b32.xlu1 %v1059_v24, %s7237_s27  ;;  %2549 = vrot.lane.b32.xlu0 %v2502_v43, %s7235_s25  ;;  %v11203_v24 = vld [vmem:[#allocation13_spill] sm:$0xff] }
 0x32a   :  { %v11205_v43 = vcombine.high %v11203_v24, %v11204_v19 }
 0x32b   :  { %v8724_v49 = vpop.permute.xlu1 %2263  ;;  %v8726_v60 = vpop.permute.xlu0 %829 }
 0x32c   :  { %v480_v16 = vrot.slane %v11205_v43, %v7415_v47  ;;  %v11211_v47 = vld [vmem:[#allocation30_spill] sm:$0xff] }
 0x32d   :  { %1577 = vrot.lane.b32.xlu1 %v1530_v9, %s7235_s25  ;;  %1091 = vrot.lane.b32.xlu0 %v1058_v27, %s7238_s28  ;;  %v552_v9 = vcombine.high %v11206_v42, %v11162_v59 }
 0x32f   :  { %v8734_v36 = vpop.permute.xlu1 %2517  ;;  %v8736_v18 = vpop.permute.xlu0 %1083 }
 0x331   :  { %1833 = vrot.lane.b32.xlu1 %v1779_v48, %s7233_s23  ;;  %1569 = vrot.lane.b32.xlu0 %v1529_v26, %s7237_s27  ;;  %v484_v26 = vcombine.high %v480_v16, %v11162_v59 }
 0x333   :  { %v1534_v63 = vpop.permute.xlu1 %1533  ;;  %v8744_v1 = vpop.permute.xlu0 %2283 }
 0x334   :  { %v1588_v59 = vsel %vm609_vm8, %v11211_v47, %v1534_v63 }
 0x335   :  { %853 = vrot.lane.b32.xlu1 %v806_v55, %s7235_s25  ;;  %1825 = vrot.lane.b32.xlu0 %v1778_v52, %s7235_s25  ;;  %v82_v52 = vld [vmem:[%s11049_s4] sm:$0xf]  ;;  %v1589_v35 = vsel %vm611_vm9, %v1588_v59, %v8659_v13 }
 0x337   :  { %v1790_v44 = vpop.permute.xlu1 %1789  ;;  %v8752_v23 = vpop.permute.xlu0 %2537 }
 0x339   :  { %1107 = vrot.lane.b32.xlu1 %v1060_v57, %s7235_s25  ;;  %2303 = vrot.lane.b32.xlu0 %v2249_v20, %s7233_s23  ;;  %v83_v57 = vld [vmem:[%s11051_s6] sm:$0xff] }
 0x33b   :  { %v8760_v33 = vpop.permute.xlu1 %2271  ;;  %v8762_v32 = vpop.permute.xlu0 %1813 }
 0x33d   :  { %1585 = vrot.lane.b32.xlu1 %v1531_v51, %s7233_s23  ;;  %2557 = vrot.lane.b32.xlu0 %v2503_v11, %s7233_s23 }
 0x33f   :  { %v8770_v21 = vpop.permute.xlu1 %2525  ;;  %v8772_v38 = vpop.permute.xlu0 %2291 }
 0x340   :  { %11201 = vst [vmem:[#allocation16_spill] sm:$0xff] %v8770_v21 }
 0x341   :  { %861 = vrot.lane.b32.xlu1 %v807_v37, %s7233_s23  ;;  %2529 = vrot.lane.b32.xlu0 %v2435_v28, %s7233_s23 }
 0x343   :  { %v810_v39 = vpop.permute.xlu1 %809  ;;  %v8780_v40 = vpop.permute.xlu0 %2545 }
 0x345   :  { %1115 = vrot.lane.b32.xlu1 %v1061_v34, %s7233_s23  ;;  %574 = vrot.lane.b32.xlu0 %v480_v16, %s7232_s2 }
 0x347   :  { %v1064_v27 = vpop.permute.xlu1 %1063  ;;  %v8792_v48 = vpop.permute.xlu0 %1565 }
 0x349   :  { %606 = vrot.lane.b32.xlu1 %v552_v9, %s7233_s23  ;;  %578 = vrot.lane.b32.xlu0 %v484_v26, %s7233_s23 }
 0x34b   :  { %v1542_v46 = vpop.permute.xlu1 %1541  ;;  %v8797_v55 = vpop.permute.xlu0 %1821 }
 0x34c   :  { %v1590_v21 = vsel %vm613_vm10, %v1589_v35, %v1542_v46 }
 0x34d   :  { %2588 = vperm.xlu1 %7112, %v82_v52   ;;  %v11210_v52 = vld [vmem:[#allocation25_spill] sm:$0xff]  ;;  %v1591_v47 = vsel %vm11141_vm11, %v1590_v21, %v8661_v50  ;;  %v11213_v50 = vld [vmem:[#allocation39_spill] sm:$0xff] }
 0x34e   :  { %v1118_v21 = vsel %vm609_vm8, %v11213_v50, %v1064_v27 }
 0x34f   :  { %v1798_v20 = vpop.permute.xlu1 %1797  ;;  %v8805_v51 = vpop.permute.xlu0 %2299 }
 0x351   :  { %3003 = vperm.xlu1 %7112, %v83_v57   ;;  %v1836_v57 = vsel %vm609_vm8, %v11210_v52, %v8708_v7 }
 0x352   :  { %v1837_v0 = vsel %vm611_vm9, %v1836_v57, %v8649_v5 }
 0x353   :  { %v8807_v11 = vpop.permute.xlu1 %849  ;;  %v8809_v37 = vpop.permute.xlu0 %2553 }
 0x357   :  { %v8811_v53 = vpop.permute.xlu1 %1103  ;;  %v8813_v28 = vpop.permute.xlu0 %841 }
 0x358   :  { %11207 = vst [vmem:[#allocation19_spill] sm:$0xff] %v8811_v53 }
 0x35b   :  { %v8815_v34 = vpop.permute.xlu1 %1581  ;;  %v8817_v24 = vpop.permute.xlu0 %1095 }
 0x35f   :  { %v8819_v19 = vpop.permute.xlu1 %857  ;;  %v8821_v43 = vpop.permute.xlu0 %1573 }
 0x360   :  { %11208 = vst [vmem:[#allocation26_spill] sm:$0xff] %v8819_v19 }
 0x363   :  { %v8823_v16 = vpop.permute.xlu1 %1111  ;;  %v8825_v42 = vpop.permute.xlu0 %1829 }
 0x364   :  { %11209 = vst [vmem:[#allocation28_spill] sm:$0xff] %v8823_v16  ;;  %v1838_v16 = vsel %vm613_vm10, %v1837_v0, %v1790_v44  ;;  %v11212_v44 = vld [vmem:[#allocation34_spill] sm:$0xff] }
 0x365   :  { %v1839_v19 = vsel %vm11141_vm11, %v1838_v16, %v8678_v8  ;;  %v864_v46 = vsel %vm609_vm8, %v11212_v44, %v810_v39  ;;  %v1119_v16 = vsel %vm611_vm9, %v1118_v21, %v8651_v2 }
 0x366   :  { %v1840_v5 = vsel %vm11138_vm12, %v1839_v19, %v1798_v20 }
 0x367   :  { %v1558_v9 = vpop.permute.xlu1 %1557  ;;  %v818_v26 = vpop.permute.xlu0 %817  ;;  %v1841_v13 = vsel %vm11140_vm13, %v1840_v5, %v8680_v58 }
 0x36b   :  { %v1088_v14 = vpop.permute.xlu1 %1087  ;;  %v1072_v10 = vpop.permute.xlu0 %1071 }
 0x36c   :  { %v1120_v57 = vsel %vm613_vm10, %v1119_v16, %v1072_v10 }
 0x36f   :  { %v8840_v53 = vpop.permute.xlu1 %2279  ;;  %v1550_v7 = vpop.permute.xlu0 %1549 }
 0x370   :  { %v1592_v63 = vsel %vm11138_vm12, %v1591_v47, %v1550_v7  ;;  %v1121_v47 = vsel %vm11141_vm11, %v1120_v57, %v8700_v25 }
 0x371   :  { %v1593_v59 = vsel %vm11140_vm13, %v1592_v63, %v8710_v3  ;;  %v865_v3 = vsel %vm611_vm9, %v864_v46, %v8639_v62 }
 0x372   :  { %v1594_v0 = vsel %vm11139_vm14, %v1593_v59, %v1558_v9  ;;  %v866_v58 = vsel %vm613_vm10, %v865_v3, %v818_v26 }
 0x373   :  { %1602 = vst [vmem:[#allocation3 + $0x48] sm:$0xf] %v1594_v0  ;;  %v2252_v35 = vpop.permute.xlu1 %2251  ;;  %v1806_v8 = vpop.permute.xlu0 %1805  ;;  %v867_v39 = vsel %vm11141_vm11, %v866_v58, %v8690_v29 }
 0x374   :  { %v1842_v20 = vsel %vm11139_vm14, %v1841_v13, %v1806_v8  ;;  %v2306_v46 = vsel %vm609_vm8, %v8560_v22, %v2252_v35 }
 0x375   :  { %v1852_v19 = vrot.slane %v1842_v20, 4 }
 0x377   :  { %1856 = vst [vmem:[#allocation3 + $0x48] sm:$0xf0] %v1852_v19  ;;  %v2506_v9 = vpop.permute.xlu1 %2505  ;;  %v826_v52 = vpop.permute.xlu0 %825 }
 0x378   :  { %v868_v62 = vsel %vm11138_vm12, %v867_v39, %v826_v52 }
 0x379   :  { %v869_v10 = vsel %vm11140_vm13, %v868_v62, %v8726_v60 }
 0x37b   :  { %v1810_v27 = vpop.permute.xlu1 %1809  ;;  %v1080_v7 = vpop.permute.xlu0 %1079 }
 0x37c   :  { %v1122_v5 = vsel %vm11138_vm12, %v1121_v47, %v1080_v7 }
 0x37d   :  { %v1123_v2 = vsel %vm11140_vm13, %v1122_v5, %v8736_v18  ;;  %v1843_v5 = vsel %vm609_vm8, %v8589_v4, %v1810_v27 }
 0x37e   :  { %v1124_v63 = vsel %vm11139_vm14, %v1123_v2, %v1088_v14  ;;  %v2307_v14 = vsel %vm611_vm9, %v2306_v46, %v8688_v45 }
 0x37f   :  { %1132 = vst [vmem:[#allocation3 + $0x18] sm:$0xf] %v1124_v63  ;;  %v2260_v26 = vpop.permute.xlu1 %2259  ;;  %v834_v29 = vpop.permute.xlu0 %833  ;;  %v1844_v63 = vsel %vm611_vm9, %v1843_v5, %v8762_v32 }
 0x380   :  { %v870_v59 = vsel %vm11139_vm14, %v869_v10, %v834_v29  ;;  %v2308_v60 = vsel %vm613_vm10, %v2307_v14, %v2260_v26 }
 0x381   :  { %v880_v0 = vrot.slane %v870_v59, 4  ;;  %v2309_v21 = vsel %vm11141_vm11, %v2308_v60, %v8724_v49  ;;  %v2313_v49 = vsel %vm609_vm8, %v8541_v6, %v8840_v53 }
 0x382   :  { %v2314_v2 = vsel %vm611_vm9, %v2313_v49, %v8744_v1 }
 0x383   :  { %884 = vst [vmem:[#allocation3 + $0x30] sm:$0xf0] %v880_v0  ;;  %v2514_v25 = vpop.permute.xlu1 %2513  ;;  %v2534_v13 = vpop.permute.xlu0 %2533 }
 0x384   :  { %v2567_v29 = vsel %vm609_vm8, %v8628_v56, %v2534_v13 }
 0x385   :  { %v2568_v32 = vsel %vm611_vm9, %v2567_v29, %v8752_v23 }
 0x387   :  { %v2268_v8 = vpop.permute.xlu1 %2267  ;;  %v2288_v44 = vpop.permute.xlu0 %2287 }
 0x388   :  { %v2310_v3 = vsel %vm11138_vm12, %v2309_v21, %v2268_v8  ;;  %v2315_v59 = vsel %vm613_vm10, %v2314_v2, %v2288_v44 }
 0x389   :  { %v2311_v16 = vsel %vm11140_vm13, %v2310_v3, %v8760_v33  ;;  %v2316_v53 = vsel %vm11141_vm11, %v2315_v59, %v8772_v38  ;;  %v11221_v59 = vld [vmem:[#allocation42_spill] sm:$0xff] }
 0x38b   :  { %v8878_v18 = vpop.permute.xlu1 %2521  ;;  %v2542_v50 = vpop.permute.xlu0 %2541 }
 0x38c   :  { %v2569_v13 = vsel %vm613_vm10, %v2568_v32, %v2542_v50  ;;  %v11223_v32 = vld [vmem:[#allocation28_spill] sm:$0xff] }
 0x38d   :  { %v2570_v14 = vsel %vm11141_vm11, %v2569_v13, %v8780_v40  ;;  %v11214_v40 = vld [vmem:[#allocation18_spill] sm:$0xff] }
 0x38f   :  { %v838_v20 = vpop.permute.xlu1 %837  ;;  %v1562_v19 = vpop.permute.xlu0 %1561 }
 0x390   :  { %v1595_v33 = vsel %vm609_vm8, %v8674_v17, %v1562_v19  ;;  %v2560_v17 = vsel %vm609_vm8, %v8577_v12, %v2506_v9  ;;  %v623_v19 = vsel %vm609_vm8, %v11214_v40, %v8532_v41 }
 0x391   :  { %v1596_v4 = vsel %vm611_vm9, %v1595_v33, %v8792_v48  ;;  %v871_v48 = vsel %vm609_vm8, %v8668_v15, %v838_v20  ;;  %v2561_v23 = vsel %vm611_vm9, %v2560_v17, %v8698_v31  ;;  %v11219_v33 = vld [vmem:[#allocation22_spill] sm:$0xff] }
 0x392   :  { %v872_v46 = vsel %vm611_vm9, %v871_v48, %v8813_v28 }
 0x393   :  { %v2276_v52 = vpop.permute.xlu1 %2275  ;;  %v1818_v22 = vpop.permute.xlu0 %1817 }
 0x394   :  { %v2312_v35 = vsel %vm11139_vm14, %v2311_v16, %v2276_v52  ;;  %v1845_v6 = vsel %vm613_vm10, %v1844_v63, %v1818_v22 }
 0x395   :  { %v2322_v45 = vrot.slane %v2312_v35, 4  ;;  %v1846_v56 = vsel %vm11141_vm11, %v1845_v6, %v8797_v55  ;;  %v2562_v55 = vsel %vm613_vm10, %v2561_v23, %v2514_v25  ;;  %v11226_v23 = vld [vmem:[#allocation43_spill] sm:$0xff] }
 0x397   :  { %2326 = vst [vmem:[#allocation3 + $0x8] sm:$0xf0] %v2322_v45  ;;  %v846_v58 = vpop.permute.xlu1 %845  ;;  %v2296_v57 = vpop.permute.xlu0 %2295 }
 0x398   :  { %v2317_v12 = vsel %vm11138_vm12, %v2316_v53, %v2296_v57  ;;  %v11216_v57 = vld [vmem:[#allocation19_spill] sm:$0xff] }
 0x39b   :  { %v1100_v39 = vpop.permute.xlu1 %1099  ;;  %v2550_v47 = vpop.permute.xlu0 %2549 }
 0x39c   :  { %v2571_v25 = vsel %vm11138_vm12, %v2570_v14, %v2550_v47 }
 0x39d   :  { %v2572_v22 = vsel %vm11140_vm13, %v2571_v25, %v8809_v37  ;;  %v2580_v25 = vld [vmem:[#allocation3 + $0x48] sm:$0xff] }
 0x39f   :  { %v1578_v7 = vpop.permute.xlu1 %1577  ;;  %v1092_v62 = vpop.permute.xlu0 %1091 }
 0x3a0   :  { %v1125_v44 = vsel %vm609_vm8, %v8720_v54, %v1092_v62  ;;  %v11218_v62 = vld [vmem:[#allocation16_spill] sm:$0xff] }
 0x3a1   :  { %v1126_v28 = vsel %vm611_vm9, %v1125_v44, %v8817_v24 }
 0x3a2   :  { %v1127_v45 = vsel %vm613_vm10, %v1126_v28, %v1100_v39  ;;  %v2578_v28 = vld [vmem:[#allocation3 + $0x18] sm:$0xff] }
 0x3a3   :  { %v1834_v26 = vpop.permute.xlu1 %1833  ;;  %v1570_v10 = vpop.permute.xlu0 %1569  ;;  %v1128_v37 = vsel %vm11141_vm11, %v1127_v45, %v11216_v57 }
 0x3a4   :  { %v1597_v1 = vsel %vm613_vm10, %v1596_v4, %v1570_v10  ;;  %v11222_v4 = vld [vmem:[#allocation40_spill] sm:$0xff] }
 0x3a5   :  { %v1598_v38 = vsel %vm11141_vm11, %v1597_v1, %v8821_v43  ;;  %v2318_v43 = vsel %vm11140_vm13, %v2317_v12, %v8805_v51  ;;  %v2563_v51 = vsel %vm11141_vm11, %v2562_v55, %v8734_v36  ;;  %v11225_v12 = vld [vmem:[#allocation37_spill] sm:$0xff] }
 0x3a6   :  { %v1599_v21 = vsel %vm11138_vm12, %v1598_v38, %v1578_v7  ;;  %v2564_v3 = vsel %vm11138_vm12, %v2563_v51, %v8878_v18  ;;  %v11217_v7 = vld [vmem:[#allocation26_spill] sm:$0xff]  ;;  %v11227_v55 = vld [vmem:[#allocation41_spill] sm:$0xff]  ;;  %v77_v51 = vld [vmem:[%s11048_s3] sm:$0xf] }
 0x3a7   :  { %v854_v27 = vpop.permute.xlu1 %853  ;;  %v1826_v0 = vpop.permute.xlu0 %1825  ;;  %v1600_v24 = vsel %vm11140_vm13, %v1599_v21, %v8815_v34  ;;  %v624_v34 = vsel %vm611_vm9, %v623_v19, %v8407_v30  ;;  %v2565_v49 = vsel %vm11140_vm13, %v2564_v3, %v11218_v62  ;;  %v7033_v21 = vld [vmem:[%s11045_s0 + $0x8] sm:$0xff]  ;;  %v11229_v3 = vmov 0.0  }
 0x3a8   :  { %v1847_v9 = vsel %vm11138_vm12, %v1846_v56, %v1826_v0  ;;  %v625_v2 = vsel %vm613_vm10, %v624_v34, %v11219_v33  ;;  %v11224_v56 = vld [vmem:[#allocation24_spill] sm:$0xff]  ;;  %v11231_v34 = vld [vmem:[#allocation9_spill] sm:$0xff]  ;;  %7064 = vmatprep.mubr.msk.f32.mxu0 %vm7244_vm5, %v11229_v3 }
 0x3a9   :  { %v1848_v8 = vsel %vm11140_vm13, %v1847_v9, %v8825_v42  ;;  %v873_v42 = vsel %vm613_vm10, %v872_v46, %v846_v58  ;;  %v626_v17 = vsel %vm11141_vm11, %v625_v2, %v11222_v4 }
 0x3aa   :  { %v1849_v15 = vsel %vm11139_vm14, %v1848_v8, %v1834_v26  ;;  %v874_v16 = vsel %vm11141_vm11, %v873_v42, %v8807_v11  ;;  %v11215_v11 = vld [vmem:[#allocation17_spill] sm:$0xff]  ;;  %v627_v0 = vsel %vm11138_vm12, %v626_v17, %v11224_v56 }
 0x3ab   :  { %v1853_v31 = vrot.slane %v1849_v15, 4  ;;  %v1108_v50 = vpop.permute.xlu1 %1107  ;;  %v2304_v60 = vpop.permute.xlu0 %2303  ;;  %v875_v41 = vsel %vm11138_vm12, %v874_v16, %v854_v27  ;;  %v610_v58 = vsel %vm609_vm8, %v11215_v11, %v8490_v61  ;;  %v11220_v26 = vld [vmem:[#allocation33_spill] sm:$0xff]  ;;  %v628_v44 = vsel %vm11140_vm13, %v627_v0, %v11227_v55  ;;  %v7203_v16 = vld [vmem:[%s11046_s1] sm:$0xf] }
 0x3ac   :  { %v2319_v54 = vsel %vm11139_vm14, %v2318_v43, %v2304_v60  ;;  %v876_v39 = vsel %vm11140_vm13, %v875_v41, %v11217_v7  ;;  %v1129_v63 = vsel %vm11138_vm12, %v1128_v37, %v1108_v50  ;;  %v612_v10 = vsel %vm611_vm9, %v610_v58, %v11220_v26  ;;  %v2582_v60 = vld [vmem:[#allocation3 + $0x8] sm:$0xff] }
 0x3ad   :  { %1857 = vst [vmem:[#allocation3 + $0x28] sm:$0xf0] %v1853_v31  ;;  %v2323_v20 = vrot.slane %v2319_v54, 4  ;;  %v614_v6 = vsel %vm613_vm10, %v612_v10, %v11221_v59  ;;  %v1130_v53 = vsel %vm11140_vm13, %v1129_v63, %v11223_v32 }
 0x3ae   :  { %v616_v9 = vsel %vm11141_vm11, %v614_v6, %v11225_v12  ;;  %v11235_v12 = vld [vmem:[#allocation11_spill] sm:$0xff] }
 0x3af   :  { %2327 = vst [vmem:[#allocation3 + $0x20] sm:$0xf0] %v2323_v20  ;;  %v1586_v52 = vpop.permute.xlu1 %1585  ;;  %v2558_v35 = vpop.permute.xlu0 %2557  ;;  %v618_v38 = vsel %vm11138_vm12, %v616_v9, %v11226_v23  ;;  %v8998_v20 = vcombine.high %v7033_v21, %v7033_v21 }
 0x3b0   :  { %v1601_v36 = vsel %vm11139_vm14, %v1600_v24, %v1586_v52  ;;  %v2573_v18 = vsel %vm11139_vm14, %v2572_v22, %v2558_v35 }
 0x3b1   :  { %1603 = vst [vmem:[#allocation3 + $0x28] sm:$0xf] %v1601_v36  ;;  %2575 = vst [vmem:[#allocation3 + $0x38] sm:$0xf] %v2573_v18 }
 0x3b2   :  { %11228 = vst [vmem:[#allocation23_spill] sm:$0xff] %v8998_v20 }
 0x3b3   :  { %v862_v47 = vpop.permute.xlu1 %861  ;;  %v2530_v5 = vpop.permute.xlu0 %2529 }
 0x3b4   :  { %v877_v61 = vsel %vm11139_vm14, %v876_v39, %v862_v47  ;;  %v2566_v30 = vsel %vm11139_vm14, %v2565_v49, %v2530_v5 }
 0x3b5   :  { %v881_v29 = vrot.slane %v877_v61, 4  ;;  %2574 = vst [vmem:[#allocation3 + $0x40] sm:$0xf] %v2566_v30 }
 0x3b6   :  { %v2583_v43 = vld [vmem:[#allocation3 + $0x20] sm:$0xff] }
 0x3b7   :  { %885 = vst [vmem:[#allocation3] sm:$0xf0] %v881_v29  ;;  %v1116_v1 = vpop.permute.xlu1 %1115  ;;  %v575_v27 = vpop.permute.xlu0 %574 }
 0x3b8   :  { %v1131_v13 = vsel %vm11139_vm14, %v1130_v53, %v1116_v1  ;;  %v2585_v48 = vld [vmem:[#allocation3 + $0x38] sm:$0xf]  ;;  %v620_v8 = vsel %vm11140_vm13, %v618_v38, %v575_v27  ;;  %v2581_v42 = vld [vmem:[#allocation3 + $0x28] sm:$0xff] }
 0x3b9   :  { %1133 = vst [vmem:[#allocation3 + $0x10] sm:$0xf] %v1131_v13  ;;  %7022 = vmatprep.subr.msk.mxu1 %vm98_vm0, %v2585_v48 }
 0x3bb   :  { %v607_v15 = vpop.permute.xlu1 %606  ;;  %v579_v46 = vpop.permute.xlu0 %578 }
 0x3bc   :  { %v629_v14 = vsel %vm11139_vm14, %v628_v44, %v607_v15  ;;  %v622_v31 = vsel %vm11139_vm14, %v620_v8, %v579_v46  ;;  %v2584_v50 = vld [vmem:[#allocation3 + $0x40] sm:$0xf] }
 0x3bd   :  { %631 = vst [vmem:[#allocation3] sm:$0xf] %v629_v14  ;;  %630 = vst [vmem:[#allocation3 + $0x30] sm:$0xf] %v622_v31  ;;  %7023 = vmatpush1.msk.msra.mxu1 %vm98_vm0, %v2584_v50 }
 0x3be   :  { %2625 = vmatprep.subr.mxu1 %v2583_v43 }
 0x3bf   :  { %2626 = vmatpush1.msra.mxu1 %v2582_v60 }
 0x3c0   :  { %2627 = vmatprep.subr.mxu1 %v2581_v42  ;;  %v2579_v54 = vld [vmem:[#allocation3 + $0x10] sm:$0xff] }
 0x3c1   :  { %2628 = vmatpush1.msra.mxu1 %v2580_v25 }
 0x3c2   :  { %2629 = vmatprep.subr.mxu1 %v2579_v54 }
 0x3c3   :  { %2630 = vmatpush1.msra.mxu1 %v2578_v28 }
 0x3c4   :  { %v2577_v40 = vld [vmem:[#allocation3] sm:$0xff]  ;;  %v2576_v19 = vld [vmem:[#allocation3 + $0x30] sm:$0xff] }
 0x3c5   :  { %2631 = vmatprep.subr.mxu1 %v2577_v40 }
 0x3c6   :  { %2632 = vmatpush1.msra.mxu1 %v2576_v19 }
 0x3c7   :  { %7024 = vmatmul.mubr.msk.f32.vlgmr.msra.gmra.mxu1 %vm11095_vm15, %v77_v51  ;;  %7034 = vmatprep.subr.msk.mxu1 %vm98_vm0, %v8998_v20  ;;  %vm2954_vm15 = vcmask 125952  }
 0x3c8   :  { %7035 = vmatpush1.msk.msra.mxu1 %vm98_vm0, %v7033_v21  ;;  %3646 = vmatprep.mubr.f32.mxu1 %v11229_v3  ;;  %v9013_v52 = vpop.permute.xlu1 %2588  ;;  %v11236_v21 = vld [vmem:[#allocation12_spill] sm:$0xff] }
 0x3c9   :  { %7077 = vmatprep.subr.mxu1 %v11229_v3  ;;  %11230 = vst [vmem:[#allocation21_spill] sm:$0xff] %v9013_v52 }
 0x3cb   :  { %7036 = vmatmul.mubr.msk.f32.vlgmr.msra.gmra.mxu1 %vm94_vm1, %v7203_v16 }
 0x3cc   :  { %v9083_v17 = vpop.permute.xlu1 %3003  ;;  %7079 = vmatprep.mubr.msk.f32.mxu1 %vm7244_vm5, %v11229_v3 }
 0x3cd   :  { %11234 = vst [vmem:[#allocation29_spill] sm:$0xff] %v9083_v17 }
 0x487   :  { %v2667_v24 = vpop.f32.mrf.mxu1 }
 0x488   :  { %v2668_v22 = vadd.f32 %v2667_v24, %v9013_v52 }
 0x489   :  { %v2669_v35 = vpop.f32.mrf.mxu1 }
 0x48a   :  { %v7025_v41 = vmul.f32 -1.442695, %v2668_v22  ;;  %v2670_v45 = vadd.f32 %v2669_v35, %v9013_v52 }
 0x48b   :  { %v3648_v18 = vpop.f32.mrf.mxu1 }
 0x48c   :  { %7163 = vpow2.f32 %v7025_v41  ;;  %v7026_v36 = vmul.f32 -1.442695, %v2670_v45  ;;  %v3649_v57 = vadd.f32 %v3648_v18, %v11231_v34 }
 0x48d   :  { %v3650_v39 = vpop.f32.mrf.mxu1 }
 0x48e   :  { %7165 = vpow2.f32 %v7026_v36  ;;  %v7037_v37 = vmul.f32 -1.442695, %v3649_v57  ;;  %v3651_v62 = vadd.f32 %v3650_v39, %v11231_v34 }
 0x490   :  { %v7038_v33 = vmul.f32 -1.442695, %v3651_v62 }
 0x499   :  { %v7164_v11 = vpop.eup %7163 }
 0x49a   :  { %v2678_v58 = vadd.f32 1.0, %v7164_v11 }
 0x49b   :  { %v7166_v47 = vpop.eup %7165 }
 0x49c   :  { %7167 = vrcp.f32 %v2678_v58  ;;  %v2679_v7 = vadd.f32 1.0, %v7166_v47 }
 0x49d   :  { %7169 = vpow2.f32 %v7037_v37 }
 0x49e   :  { %7171 = vrcp.f32 %v2679_v7 }
 0x49f   :  { %7173 = vpow2.f32 %v7038_v33 }
 0x4a9   :  { %v7168_v49 = vpop.eup %7167 }
 0x4aa   :  { %v9019_v5 = vmul.f32 %v7168_v49, %v2668_v22  ;;  %v7170_v2 = vpop.eup %7169 }
 0x4ab   :  { %v3659_v63 = vadd.f32 1.0, %v7170_v2  ;;  %v7172_v61 = vpop.eup %7171 }
 0x4ac   :  { %11232 = vst [vmem:[#allocation20_spill] sm:$0xff] %v9019_v5  ;;  %2690 = vrot.lane.b32.xlu1 %v9019_v5, %s7232_s2  ;;  %2687 = vrot.lane.b32.xlu0 %v9019_v5, %s7233_s23  ;;  %v9033_v30 = vmul.f32 %v7172_v61, %v2670_v45  ;;  %v7174_v26 = vpop.eup %7173 }
 0x4ad   :  { %7175 = vrcp.f32 %v3659_v63  ;;  %v3660_v10 = vadd.f32 1.0, %v7174_v26 }
 0x4ae   :  { %11233 = vst [vmem:[#allocation27_spill] sm:$0xff] %v9033_v30 }
 0x4af   :  { %7177 = vrcp.f32 %v3660_v10 }
 0x4b0   :  { %2696 = vrot.lane.b32.xlu1 %v9019_v5, %s7234_s24  ;;  %2693 = vrot.lane.b32.xlu0 %v9019_v5, %s7235_s25 }
 0x4b4   :  { %2702 = vrot.lane.b32.xlu1 %v9019_v5, %s7236_s26  ;;  %2699 = vrot.lane.b32.xlu0 %v9019_v5, %s7237_s27 }
 0x4b8   :  { %2709 = vrot.lane.b32.xlu1 %v9033_v30, %s7233_s23  ;;  %2705 = vrot.lane.b32.xlu0 %v9019_v5, %s7238_s28 }
 0x4ba   :  { %v7176_v29 = vpop.eup %7175 }
 0x4bb   :  { %v9051_v59 = vmul.f32 %v7176_v29, %v3649_v57 }
 0x4bc   :  { %2715 = vrot.lane.b32.xlu1 %v9033_v30, %s7235_s25  ;;  %2712 = vrot.lane.b32.xlu0 %v9033_v30, %s7232_s2  ;;  %v7178_v6 = vpop.eup %7177 }
 0x4bd   :  { %v9065_v4 = vmul.f32 %v7178_v6, %v3651_v62 }
 0x4c0   :  { %2721 = vrot.lane.b32.xlu1 %v9033_v30, %s7237_s27  ;;  %2718 = vrot.lane.b32.xlu0 %v9033_v30, %s7234_s24 }
 0x4c4   :  { %2727 = vrot.lane.b32.xlu1 %v9033_v30, %s7238_s28  ;;  %2724 = vrot.lane.b32.xlu0 %v9033_v30, %s7236_s26 }
 0x4c8   :  { %3671 = vrot.lane.b32.xlu1 %v9051_v59, %s7232_s2  ;;  %3668 = vrot.lane.b32.xlu0 %v9051_v59, %s7233_s23 }
 0x4cc   :  { %3677 = vrot.lane.b32.xlu1 %v9051_v59, %s7234_s24  ;;  %3674 = vrot.lane.b32.xlu0 %v9051_v59, %s7235_s25 }
 0x4d0   :  { %3683 = vrot.lane.b32.xlu1 %v9051_v59, %s7236_s26  ;;  %3680 = vrot.lane.b32.xlu0 %v9051_v59, %s7237_s27 }
 0x4d4   :  { %3693 = vrot.lane.b32.xlu1 %v9065_v4, %s7232_s2  ;;  %3686 = vrot.lane.b32.xlu0 %v9051_v59, %s7238_s28 }
 0x4d8   :  { %3696 = vrot.lane.b32.xlu1 %v9065_v4, %s7235_s25  ;;  %3690 = vrot.lane.b32.xlu0 %v9065_v4, %s7233_s23 }
 0x4dc   :  { %3702 = vrot.lane.b32.xlu1 %v9065_v4, %s7237_s27  ;;  %3699 = vrot.lane.b32.xlu0 %v9065_v4, %s7234_s24 }
 0x4e0   :  { %3708 = vrot.lane.b32.xlu1 %v9065_v4, %s7238_s28  ;;  %3705 = vrot.lane.b32.xlu0 %v9065_v4, %s7236_s26 }
 0x51e   :  { %v2691_v1 = vpop.permute.xlu1 %2690  ;;  %v2688_v32 = vpop.permute.xlu0 %2687 }
 0x51f   :  { %v2730_v48 = vcombine.low %v9019_v5, %v2691_v1 }
 0x521   :  { %v2737_v55 = vrot.slane %v2730_v48, %v11235_v12 }
 0x522   :  { %v2697_v53 = vpop.permute.xlu1 %2696  ;;  %v2694_v27 = vpop.permute.xlu0 %2693 }
 0x523   :  { %v2738_v56 = vcombine.low %v2688_v32, %v2694_v27 }
 0x525   :  { %v2745_v9 = vrot.slane %v2738_v56, %v11235_v12 }
 0x526   :  { %v2703_v0 = vpop.permute.xlu1 %2702  ;;  %v2700_v13 = vpop.permute.xlu0 %2699 }
 0x527   :  { %v2746_v23 = vcombine.low %v2697_v53, %v2703_v0  ;;  %v2762_v15 = vcombine.low %v2737_v55, %v2745_v9  ;;  %v2763_v46 = vcombine.high %v2737_v55, %v2745_v9 }
 0x529   :  { %v2753_v14 = vrot.slane %v2746_v23, %v11235_v12  ;;  %v2777_v28 = vrot.slane %v2763_v46, %v11236_v21  ;;  %v2770_v19 = vrot.slane %v2762_v15, %v11236_v21 }
 0x52a   :  { %v2710_v38 = vpop.permute.xlu1 %2709  ;;  %v2706_v8 = vpop.permute.xlu0 %2705 }
 0x52b   :  { %v2754_v44 = vcombine.low %v2700_v13, %v2706_v8 }
 0x52d   :  { %v2761_v31 = vrot.slane %v2754_v44, %v11235_v12 }
 0x52e   :  { %v2716_v50 = vpop.permute.xlu1 %2715  ;;  %v2713_v43 = vpop.permute.xlu0 %2712 }
 0x52f   :  { %v2778_v60 = vcombine.low %v2753_v14, %v2761_v31  ;;  %v2779_v42 = vcombine.high %v2753_v14, %v2761_v31  ;;  %v2806_v25 = vcombine.low %v2710_v38, %v2716_v50  ;;  %v2798_v54 = vcombine.low %v9033_v30, %v2713_v43 }
 0x531   :  { %v2793_v40 = vrot.slane %v2779_v42, %v11236_v21  ;;  %v2786_v51 = vrot.slane %v2778_v60, %v11236_v21  ;;  %v2813_v41 = vrot.slane %v2806_v25, %v11235_v12  ;;  %v2805_v45 = vrot.slane %v2798_v54, %v11235_v12 }
 0x532   :  { %v2722_v16 = vpop.permute.xlu1 %2721  ;;  %v2719_v24 = vpop.permute.xlu0 %2718 }
 0x533   :  { %v2796_v22 = vcombine.low %v2777_v28, %v2793_v40  ;;  %v2794_v35 = vcombine.low %v2770_v19, %v2786_v51  ;;  %v2797_v11 = vcombine.high %v2777_v28, %v2793_v40  ;;  %v2795_v58 = vcombine.high %v2770_v19, %v2786_v51 }
 0x534   :  { %v2830_v7 = vcombine.low %v2805_v45, %v2813_v41  ;;  %v2831_v39 = vcombine.high %v2805_v45, %v2813_v41 }
 0x535   :  { %v2878_v36 = vsel %vm609_vm8, %v2796_v22, 0.0  ;;  %v2866_v18 = vsel %vm609_vm8, %v2794_v35, 0.0  ;;  %v2884_v33 = vsel %vm609_vm8, %v2797_v11, 0.0  ;;  %v2872_v2 = vsel %vm609_vm8, %v2795_v58, 0.0 }
 0x536   :  { %v2728_v34 = vpop.permute.xlu1 %2727  ;;  %2879 = vadd.xlane.f32.xlu1 %v2878_v36  ;;  %2867 = vadd.xlane.f32.xlu0 %v2866_v18  ;;  %v2725_v57 = vpop.permute.xlu0 %2724  ;;  %v2838_v29 = vrot.slane %v2830_v7, %v11236_v21  ;;  %v2845_v1 = vrot.slane %v2831_v39, %v11236_v21 }
 0x537   :  { %v2822_v37 = vcombine.low %v2722_v16, %v2728_v34  ;;  %v2814_v47 = vcombine.low %v2719_v24, %v2725_v57 }
 0x539   :  { %v2829_v62 = vrot.slane %v2822_v37, %v11235_v12  ;;  %v2821_v49 = vrot.slane %v2814_v47, %v11235_v12 }
 0x53a   :  { %v3672_v63 = vpop.permute.xlu1 %3671  ;;  %2885 = vadd.xlane.f32.xlu1 %v2884_v33  ;;  %2873 = vadd.xlane.f32.xlu0 %v2872_v2  ;;  %v3669_v61 = vpop.permute.xlu0 %3668 }
 0x53b   :  { %v2846_v26 = vcombine.low %v2821_v49, %v2829_v62  ;;  %v2847_v10 = vcombine.high %v2821_v49, %v2829_v62  ;;  %v3711_v42 = vcombine.low %v9051_v59, %v3672_v63 }
 0x53d   :  { %v2854_v6 = vrot.slane %v2846_v26, %v11236_v21  ;;  %v2861_v32 = vrot.slane %v2847_v10, %v11236_v21  ;;  %v3718_v35 = vrot.slane %v3711_v42, %v11235_v12 }
 0x53e   :  { %v3678_v53 = vpop.permute.xlu1 %3677  ;;  %v3675_v27 = vpop.permute.xlu0 %3674 }
 0x53f   :  { %v2863_v56 = vcombine.high %v2838_v29, %v2854_v6  ;;  %v2862_v0 = vcombine.low %v2838_v29, %v2854_v6  ;;  %v2864_v13 = vcombine.low %v2845_v1, %v2861_v32  ;;  %v2865_v48 = vcombine.high %v2845_v1, %v2861_v32 }
 0x540   :  { %v3719_v14 = vcombine.low %v3669_v61, %v3675_v27 }
 0x541   :  { %v2875_v9 = vsel %vm609_vm8, %v2863_v56, 0.0  ;;  %v2869_v23 = vsel %vm609_vm8, %v2862_v0, 0.0  ;;  %v2881_v38 = vsel %vm609_vm8, %v2864_v13, 0.0  ;;  %v2887_v31 = vsel %vm609_vm8, %v2865_v48, 0.0 }
 0x542   :  { %v3684_v8 = vpop.permute.xlu1 %3683  ;;  %2876 = vadd.xlane.f32.xlu0 %v2875_v9  ;;  %v2963_v55 = vadd.f32 %v2875_v9, %v2872_v2  ;;  %2870 = vadd.xlane.f32.xlu1 %v2869_v23  ;;  %v2956_v44 = vadd.f32 %v2869_v23, %v2866_v18  ;;  %v3681_v15 = vpop.permute.xlu0 %3680  ;;  %v2970_v46 = vadd.f32 %v2881_v38, %v2878_v36 }
 0x543   :  { %v3727_v25 = vcombine.low %v3678_v53, %v3684_v8  ;;  %v2977_v51 = vadd.f32 %v2887_v31, %v2884_v33  ;;  %v3726_v16 = vrot.slane %v3719_v14, %v11235_v12 }
 0x544   :  { %v2964_v50 = vrot.slane %v2963_v55, 4  ;;  %v2957_v43 = vrot.slane %v2956_v44, 4  ;;  %v2971_v60 = vrot.slane %v2970_v46, 4 }
 0x545   :  { %v3734_v41 = vrot.slane %v3727_v25, %v11235_v12  ;;  %v2978_v11 = vrot.slane %v2977_v51, 4  ;;  %v3743_v34 = vcombine.low %v3718_v35, %v3726_v16  ;;  %v3744_v61 = vcombine.high %v3718_v35, %v3726_v16 }
 0x546   :  { %v2965_v54 = vadd.f32 %v2964_v50, %v2963_v55  ;;  %v2958_v28 = vadd.f32 %v2957_v43, %v2956_v44  ;;  %v3694_v40 = vpop.permute.xlu1 %3693  ;;  %2882 = vadd.xlane.f32.xlu0 %v2881_v38  ;;  %v3687_v19 = vpop.permute.xlu0 %3686  ;;  %v2972_v22 = vadd.f32 %v2971_v60, %v2970_v46 }
 0x547   :  { %v3735_v24 = vcombine.low %v3681_v15, %v3687_v19  ;;  %v2979_v33 = vadd.f32 %v2978_v11, %v2977_v51  ;;  %v3751_v26 = vrot.slane %v3743_v34, %v11236_v21  ;;  %v3779_v10 = vcombine.low %v9065_v4, %v3694_v40 }
 0x548   :  { %v2966_v36 = vrot.slane %v2965_v54, 2  ;;  %v2959_v18 = vrot.slane %v2958_v28, 2  ;;  %v2973_v37 = vrot.slane %v2972_v22, 2  ;;  %v3758_v48 = vrot.slane %v3744_v61, %v11236_v21  ;;  %v11238_v61 = vld [vmem:[#allocation10_spill] sm:$0xff] }
 0x549   :  { %v3742_v45 = vrot.slane %v3735_v24, %v11235_v12  ;;  %v2980_v56 = vrot.slane %v2979_v33, 2  ;;  %v3786_v9 = vrot.slane %v3779_v10, %v11235_v12 }
 0x54a   :  { %v3697_v59 = vpop.permute.xlu1 %3696  ;;  %2888 = vadd.xlane.f32.xlu0 %v2887_v31  ;;  %v3691_v58 = vpop.permute.xlu0 %3690  ;;  %v2967_v62 = vadd.f32 %v2966_v36, %v2965_v54  ;;  %v2960_v49 = vadd.f32 %v2959_v18, %v2958_v28  ;;  %v2974_v29 = vadd.f32 %v2973_v37, %v2972_v22 }
 0x54b   :  { %v3759_v57 = vcombine.low %v3734_v41, %v3742_v45  ;;  %v3760_v47 = vcombine.high %v3734_v41, %v3742_v45  ;;  %v3787_v39 = vcombine.low %v3691_v58, %v3697_v59  ;;  %v2981_v31 = vadd.f32 %v2980_v56, %v2979_v33 }
 0x54c   :  { %v2968_v53 = vrot.slane %v2967_v62, 1  ;;  %v2961_v27 = vrot.slane %v2960_v49, 1  ;;  %v2975_v4 = vrot.slane %v2974_v29, 1 }
 0x54d   :  { %v3767_v7 = vrot.slane %v3759_v57, %v11236_v21  ;;  %v3774_v6 = vrot.slane %v3760_v47, %v11236_v21  ;;  %v3794_v1 = vrot.slane %v3787_v39, %v11235_v12  ;;  %v2982_v19 = vrot.slane %v2981_v31, 1 }
 0x54e   :  { %v3703_v2 = vpop.permute.xlu1 %3702  ;;  %v3700_v63 = vpop.permute.xlu0 %3699  ;;  %v2969_v46 = vadd.f32 %v2968_v53, %v2967_v62  ;;  %v2962_v14 = vadd.f32 %v2961_v27, %v2960_v49  ;;  %v2976_v60 = vadd.f32 %v2975_v4, %v2974_v29 }
 0x54f   :  { %v3775_v32 = vcombine.low %v3751_v26, %v3767_v7  ;;  %v3811_v8 = vcombine.low %v3786_v9, %v3794_v1  ;;  %v3777_v15 = vcombine.low %v3758_v48, %v3774_v6  ;;  %v3812_v42 = vcombine.high %v3786_v9, %v3794_v1 }
 0x550   :  { %v2985_v28 = vmul.f32 0.0625, %v2969_v46  ;;  %v2984_v40 = vmul.f32 0.0625, %v2962_v14  ;;  %v2986_v24 = vmul.f32 0.0625, %v2976_v60  ;;  %v3776_v35 = vcombine.high %v3751_v26, %v3767_v7 }
 0x551   :  { %v3819_v25 = vrot.slane %v3811_v8, %v11236_v21  ;;  %v3826_v22 = vrot.slane %v3812_v42, %v11236_v21  ;;  %v2983_v41 = vadd.f32 %v2982_v19, %v2981_v31  ;;  %v3778_v59 = vcombine.high %v3758_v48, %v3774_v6 }
 0x552   :  { %v3709_v0 = vpop.permute.xlu1 %3708  ;;  %v3706_v13 = vpop.permute.xlu0 %3705  ;;  %v2992_v45 = vsel %vm2947_vm2, %v2985_v28, %v2984_v40  ;;  %v11237_v7 = vlaneseq }
 0x553   :  { %v3803_v23 = vcombine.low %v3703_v2, %v3709_v0  ;;  %v3795_v38 = vcombine.low %v3700_v63, %v3706_v13  ;;  %3855 = vrot.lane.b32.xlu1 %v3775_v32, %s7241_s29  ;;  %v2993_v18 = vsel %vm2949_vm3, %v2986_v24, %v2992_v45  ;;  %v2987_v11 = vmul.f32 0.0625, %v2983_v41 }
 0x554   :  { %v2908_v39 = vand.u32 127, %v11237_v7 }
 0x555   :  { %v3810_v55 = vrot.slane %v3803_v23, %v11235_v12  ;;  %v3802_v44 = vrot.slane %v3795_v38, %v11235_v12  ;;  %v2994_v58 = vsel %vm2951_vm4, %v2987_v11, %v2993_v18 }
 0x556   :  { %v2913_v33 = vadd.s32 4294967288, %v2908_v39  ;;  %v9150_v6 = vsub.s32 %v2908_v39, %v11238_v61 }
 0x557   :  { %v3827_v50 = vcombine.low %v3802_v44, %v3810_v55  ;;  %v3828_v43 = vcombine.high %v3802_v44, %v3810_v55  ;;  %3863 = vrot.lane.b32.xlu1 %v3777_v15, %s7241_s29 }
 0x558   :  { %v9147_v26 = vsub.s32 %v2913_v33, %v11238_v61  ;;  %11240 = vst [vmem:[#allocation31_spill] sm:$0xff] %v9150_v6 }
 0x559   :  { %v3835_v54 = vrot.slane %v3827_v50, %v11236_v21  ;;  %v3842_v51 = vrot.slane %v3828_v43, %v11236_v21 }
 0x55a   :  { %11239 = vst [vmem:[#allocation32_spill] sm:$0xff] %v9147_v26 }
 0x55b   :  { %v3843_v16 = vcombine.low %v3819_v25, %v3835_v54  ;;  %v3845_v36 = vcombine.low %v3826_v22, %v3842_v51  ;;  %v3844_v34 = vcombine.high %v3819_v25, %v3835_v54  ;;  %v3846_v57 = vcombine.high %v3826_v22, %v3842_v51 }
 0x55d   :  { %3857 = vrot.lane.b32.xlu1 %v3843_v16, %s7241_s29 }
 0x560   :  { %3859 = vrot.lane.b32.xlu0 %v3776_v35, %s7241_s29 }
 0x561   :  { %3865 = vrot.lane.b32.xlu1 %v3845_v36, %s7241_s29 }
 0x564   :  { %3867 = vrot.lane.b32.xlu0 %v3778_v59, %s7241_s29 }
 0x565   :  { %2995 = vrot.lane.b32.xlu1 %v2994_v58, %s7238_s28 }
 0x568   :  { %3861 = vrot.lane.b32.xlu0 %v3844_v34, %s7241_s29 }
 0x56c   :  { %3869 = vrot.lane.b32.xlu0 %v3846_v57, %s7241_s29 }
 0x5bf   :  { %v2880_v37 = vpop.xlane.xlu1 %2879  ;;  %v2868_v47 = vpop.xlane.xlu0 %2867 }
 0x5c0   :  { %v2891_v1 = vmul.f32 0.0625, %v2868_v47  ;;  %v2895_v53 = vmul.f32 0.0625, %v2880_v37 }
 0x5c2   :  { %v2912_v9 = vrot.slane %v2891_v1, %v9150_v6  ;;  %v2932_v8 = vrot.slane %v2895_v53, %v9150_v6  ;;  %v78_v1 = vld [vmem:[%s11050_s5] sm:$0xff] }
 0x5c3   :  { %v2886_v62 = vpop.xlane.xlu1 %2885  ;;  %v2874_v49 = vpop.xlane.xlu0 %2873 }
 0x5c4   :  { %v2893_v32 = vmul.f32 0.0625, %v2874_v49  ;;  %v2897_v23 = vmul.f32 0.0625, %v2886_v62 }
 0x5c6   :  { %v2923_v38 = vrot.slane %v2893_v32, %v9150_v6  ;;  %v2941_v50 = vrot.slane %v2897_v23, %v9150_v6 }
 0x5cb   :  { %v2871_v2 = vpop.xlane.xlu1 %2870  ;;  %v2877_v63 = vpop.xlane.xlu0 %2876 }
 0x5cc   :  { %v2892_v10 = vmul.f32 0.0625, %v2871_v2  ;;  %v2894_v29 = vmul.f32 0.0625, %v2877_v63 }
 0x5ce   :  { %v2917_v0 = vrot.slane %v2892_v10, %v9147_v26  ;;  %v2927_v13 = vrot.slane %v2894_v29, %v9147_v26 }
 0x5cf   :  { %v3856_v27 = vpop.permute.xlu1 %3855  ;;  %v2883_v56 = vpop.xlane.xlu0 %2882 }
 0x5d0   :  { %3879 = vst.msk [vmem:[#allocation2 + $0x1] sm:$0xff] %vm400_vm7, %v3856_v27  ;;  %v2896_v48 = vmul.f32 0.0625, %v2883_v56  ;;  %v2919_v15 = vsel %vm11096_vm6, %v2917_v0, %v2912_v9  ;;  %v2928_v46 = vsel %vm11096_vm6, %v2927_v13, %v2923_v38 }
 0x5d1   :  { %v2948_v54 = vsel %vm2947_vm2, %v2928_v46, %v2919_v15 }
 0x5d2   :  { %v2936_v4 = vrot.slane %v2896_v48, %v9147_v26 }
 0x5d3   :  { %v3864_v55 = vpop.permute.xlu1 %3863  ;;  %v2889_v44 = vpop.xlane.xlu0 %2888 }
 0x5d4   :  { %3883 = vst.msk [vmem:[#allocation2 + $0x31] sm:$0xff] %vm400_vm7, %v3864_v55  ;;  %v2898_v14 = vmul.f32 0.0625, %v2889_v44  ;;  %v2937_v31 = vsel %vm11096_vm6, %v2936_v4, %v2932_v8 }
 0x5d5   :  { %v2950_v40 = vsel %vm2949_vm3, %v2937_v31, %v2948_v54 }
 0x5d6   :  { %v2945_v43 = vrot.slane %v2898_v14, %v9147_v26 }
 0x5d7   :  { %v3858_v60 = vpop.permute.xlu1 %3857  ;;  %v3860_v42 = vpop.permute.xlu0 %3859  ;;  %v5075_v25 = vld [vmem:[#allocation2 + $0x1] sm:$0xff] }
 0x5d8   :  { %3880 = vst.msk [vmem:[#allocation2 + $0x9] sm:$0xff] %vm400_vm7, %v3858_v60  ;;  %3881 = vst.msk [vmem:[#allocation2 + $0x19] sm:$0xff] %vm400_vm7, %v3860_v42  ;;  %5091 = vrot.lane.b32.xlu1 %v5075_v25, %s7242_s30  ;;  %v2946_v28 = vsel %vm11096_vm6, %v2945_v43, %v2941_v50  ;;  %v9173_v22 = vld [vmem:[#allocation2] sm:$0xff]  ;;  %vm2998_vm6 = vcmask 257152  }
 0x5d9   :  { %v2952_v19 = vsel %vm2951_vm4, %v2946_v28, %v2950_v40 }
 0x5da   :  { %2955 = vst.msk [vmem:[#allocation4] sm:$0xf] %vm2954_vm15, %v2952_v19 }
 0x5db   :  { %v3866_v51 = vpop.permute.xlu1 %3865  ;;  %v3868_v16 = vpop.permute.xlu0 %3867  ;;  %v5079_v24 = vld [vmem:[#allocation2 + $0x31] sm:$0xff] }
 0x5dc   :  { %v9175_v35 = vld [vmem:[#allocation2 + $0x30] sm:$0xff]  ;;  %3884 = vst.msk [vmem:[#allocation2 + $0x39] sm:$0xff] %vm400_vm7, %v3866_v51  ;;  %3885 = vst.msk [vmem:[#allocation2 + $0x49] sm:$0xff] %vm400_vm7, %v3868_v16  ;;  %5099 = vrot.lane.b32.xlu1 %v5079_v24, %s7242_s30  ;;  %v4614_v41 = vcombine.high %v5075_v25, %v5079_v24  ;;  %v4613_v45 = vcombine.low %v5075_v25, %v5079_v24 }
 0x5dd   :  { %v3896_v36 = vcombine.high %v9173_v22, %v9175_v35  ;;  %v3895_v58 = vcombine.low %v9173_v22, %v9175_v35 }
 0x5de   :  { %v9196_v2 = vrot.slane %v4614_v41, %v11235_v12  ;;  %v9218_v13 = vrot.slane %v4613_v45, %v11235_v12 }
 0x5df   :  { %v2996_v18 = vpop.permute.xlu1 %2995  ;;  %v3862_v59 = vpop.permute.xlu0 %3861  ;;  %v5077_v11 = vld [vmem:[#allocation2 + $0x19] sm:$0xff]  ;;  %v9193_v39 = vld [vmem:[#allocation2 + $0xa] sm:$0xff]  ;;  %v9199_v63 = vrot.slane %v3895_v58, %v11235_v12  ;;  %v9221_v48 = vrot.slane %v3896_v36, %v11235_v12  ;;  %v9289_v54 = vld [vmem:[#allocation2 + $0x2] sm:$0xff] }
 0x5e0   :  { %2999 = vst.msk [vmem:[#allocation4] sm:$0xf] %vm2998_vm6, %v2996_v18  ;;  %4843 = vrot.lane.b32.xlu1 %v5075_v25, %s7243_s12  ;;  %5095 = vrot.lane.b32.xlu0 %v5077_v11, %s7242_s30  ;;  %v4105_v34 = vld [vmem:[#allocation2 + $0x18] sm:$0xff]  ;;  %v9310_v51 = vld [vmem:[#allocation2 + $0x9] sm:$0xff] }
 0x5e1   :  { %3882 = vst.msk [vmem:[#allocation2 + $0x21] sm:$0xff] %vm400_vm7, %v3862_v59 }
 0x5e3   :  { %v3870_v57 = vpop.permute.xlu0 %3869  ;;  %v5081_v37 = vld [vmem:[#allocation2 + $0x49] sm:$0xff]  ;;  %v9188_v7 = vld [vmem:[#allocation2 + $0x3a] sm:$0xff]  ;;  %v9295_v28 = vld [vmem:[#allocation2 + $0x32] sm:$0xff] }
 0x5e4   :  { %v4109_v47 = vld [vmem:[#allocation2 + $0x48] sm:$0xff]  ;;  %3886 = vst.msk [vmem:[#allocation2 + $0x51] sm:$0xff] %vm400_vm7, %v3870_v57  ;;  %4851 = vrot.lane.b32.xlu1 %v5079_v24, %s7243_s12  ;;  %5103 = vrot.lane.b32.xlu0 %v5081_v37, %s7242_s30  ;;  %v4630_v62 = vcombine.high %v5077_v11, %v5081_v37  ;;  %v4629_v33 = vcombine.low %v5077_v11, %v5081_v37  ;;  %v9316_v16 = vld [vmem:[#allocation2 + $0x39] sm:$0xff]  ;;  %vm3093_vm7 = vcmask 64512  }
 0x5e5   :  { %v3911_v49 = vcombine.low %v4105_v34, %v4109_v47  ;;  %v3912_v10 = vcombine.high %v4105_v34, %v4109_v47  ;;  %v5405_v29 = vcombine.low %v9193_v39, %v9188_v7  ;;  %v5406_v56 = vcombine.high %v9193_v39, %v9188_v7  ;;  %v9332_v41 = vld [vmem:[#allocation2 + $0x38] sm:$0xff] }
 0x5e6   :  { %v9207_v32 = vrot.slane %v4630_v62, %v11235_v12  ;;  %v9213_v27 = vrot.slane %v4629_v33, %v11235_v12 }
 0x5e7   :  { %v9210_v53 = vrot.slane %v3911_v49, %v11235_v12  ;;  %v3000_v0 = vld [vmem:[#allocation4] sm:$0xf]  ;;  %v9224_v9 = vrot.slane %v3912_v10, %v11235_v12  ;;  %v9256_v50 = vrot.slane %v5406_v56, %v11235_v12  ;;  %v9396_v33 = vrot.slane %v5405_v29, %v11235_v12 }
 0x5e8   :  { %7063 = vmatpush3.msk.msra.mxu0 %vm98_vm0, %v3000_v0  ;;  %4123 = vrot.lane.b32.xlu1 %v4105_v34, %s7243_s12  ;;  %v4661_v23 = vcombine.low %v9196_v2, %v9207_v32  ;;  %v4662_v4 = vcombine.high %v9196_v2, %v9207_v32  ;;  %v4646_v8 = vcombine.high %v9218_v13, %v9213_v27  ;;  %v9250_v14 = vld [vmem:[#allocation2 + $0x22] sm:$0xff]  ;;  %v9303_v40 = vld [vmem:[#allocation2 + $0x1a] sm:$0xff] }
 0x5e9   :  { %v3928_v38 = vcombine.high %v9199_v63, %v9210_v53  ;;  %4847 = vrot.lane.b32.xlu0 %v5077_v11, %s7243_s12  ;;  %7065 = vmatmul.mubr.msk.f32.vlgmr.msra.gmra.mxu0 %vm94_vm1, %v78_v1  ;;  %v3943_v55 = vcombine.low %v9221_v48, %v9224_v9  ;;  %v3944_v44 = vcombine.high %v9221_v48, %v9224_v9  ;;  %v5078_v24 = vld [vmem:[#allocation2 + $0x21] sm:$0xff] }
 0x5ea   :  { %v4645_v15 = vcombine.low %v9218_v13, %v9213_v27  ;;  %7067 = vmatprep.subr.mxu0 %v11229_v3  ;;  %7069 = vmatprep.mubr.msk.f32.mxu0 %vm7244_vm5, %v11229_v3  ;;  %v3927_v25 = vcombine.low %v9199_v63, %v9210_v53  ;;  %v9339_v45 = vld [vmem:[#allocation2 + $0x20] sm:$0xff]  ;;  %v9353_v18 = vrot.slane %v4661_v23, %v11236_v21 }
 0x5eb   :  { %v9245_v46 = vld [vmem:[#allocation2 + $0x52] sm:$0xff]  ;;  %v5551_v19 = vld [vmem:[#allocation2 + $0x4a] sm:$0xff]  ;;  %v9363_v59 = vrot.slane %v3928_v38, %v11236_v21  ;;  %v9378_v57 = vrot.slane %v4662_v4, %v11236_v21  ;;  %v4660_v62 = vrot.slane %v4646_v8, %v11236_v21  ;;  %v4681_v2 = vcombine.low %v9310_v51, %v9316_v16 }
 0x5ec   :  { %4131 = vrot.lane.b32.xlu1 %v4109_v47, %s7243_s12  ;;  %v5422_v31 = vcombine.high %v9250_v14, %v9245_v46  ;;  %v9345_v36 = vld [vmem:[#allocation2 + $0x50] sm:$0xff]  ;;  %v5421_v11 = vcombine.low %v9250_v14, %v9245_v46  ;;  %v5353_v58 = vcombine.low %v9303_v40, %v5551_v19  ;;  %v9408_v1 = vrot.slane %v3943_v55, %v11236_v21 }
 0x5ed   :  { %4855 = vrot.lane.b32.xlu0 %v5081_v37, %s7243_s12  ;;  %v5354_v56 = vcombine.high %v9303_v40, %v5551_v19  ;;  %v9427_v0 = vrot.slane %v4681_v2, %v11235_v12  ;;  %v5338_v23 = vcombine.high %v9289_v54, %v9295_v28  ;;  %v9445_v8 = vrot.slane %v4645_v15, %v11236_v21 }
 0x5ee   :  { %v9259_v43 = vrot.slane %v5422_v31, %v11235_v12  ;;  %v9381_v37 = vrot.slane %v5421_v11, %v11235_v12  ;;  %v9388_v49 = vrot.slane %v5353_v58, %v11235_v12 }
 0x5ef   :  { %v5368_v55 = vrot.slane %v5354_v56, %v11235_v12  ;;  %v4677_v13 = vcombine.high %v9445_v8, %v11229_v3 }
 0x5f0   :  { %4377 = vrot.lane.b32.xlu1 %v4105_v34, %s7242_s30  ;;  %v5453_v60 = vcombine.low %v9256_v50, %v9259_v43  ;;  %v5454_v42 = vcombine.high %v9256_v50, %v9259_v43  ;;  %v5337_v34 = vcombine.low %v9289_v54, %v9295_v28  ;;  %v5438_v32 = vcombine.high %v9396_v33, %v9381_v37 }
 0x5f1   :  { %4119 = vrot.lane.b32.xlu0 %v9173_v22, %s7243_s12  ;;  %v9537_v43 = vrot.slane %v3927_v25, %v11236_v21 }
 0x5f2   :  { %v9402_v10 = vrot.slane %v5337_v34, %v11235_v12  ;;  %v9434_v48 = vrot.slane %v5438_v32, %v11236_v21  ;;  %v3980_v32 = vcombine.high %v9339_v45, %v9345_v36 }
 0x5f3   :  { %11242 = vst [vmem:[#allocation38_spill] sm:$0xff] %v9537_v43 }
 0x5f4   :  { %4385 = vrot.lane.b32.xlu1 %v4109_v47, %s7242_s30  ;;  %v5370_v29 = vcombine.high %v9402_v10, %v9388_v49 }
 0x5f5   :  { %4127 = vrot.lane.b32.xlu0 %v9175_v35, %s7243_s12 }
 0x5f6   :  { %v9439_v4 = vrot.slane %v5370_v29, %v11236_v21 }
 0x5f8   :  { %5563 = vrot.lane.b32.xlu1 %v9193_v39, %s7243_s12 }
 0x5f9   :  { %4373 = vrot.lane.b32.xlu0 %v9173_v22, %s7242_s30  ;;  %v5082_v22 = vld [vmem:[#allocation2 + $0x51] sm:$0xff] }
 0x5fa   :  { %v4697_v47 = vcombine.low %v5078_v24, %v5082_v22  ;;  %v4698_v38 = vcombine.high %v5078_v24, %v5082_v22 }
 0x5fc   :  { %5571 = vrot.lane.b32.xlu1 %v9188_v7, %s7243_s12  ;;  %v4712_v27 = vrot.slane %v4698_v38, %v11235_v12  ;;  %v3994_v38 = vrot.slane %v3980_v32, %v11235_v12 }
 0x5fd   :  { %4381 = vrot.lane.b32.xlu0 %v9175_v35, %s7242_s30  ;;  %v9327_v35 = vld [vmem:[#allocation2 + $0x8] sm:$0xff] }
 0x5fe   :  { %v3964_v29 = vcombine.high %v9327_v35, %v9332_v41 }
 0x600   :  { %5817 = vrot.lane.b32.xlu1 %v9193_v39, %s7242_s30  ;;  %v9419_v39 = vrot.slane %v3944_v44, %v11236_v21  ;;  %v4682_v44 = vcombine.high %v9310_v51, %v9316_v16 }
 0x601   :  { %5567 = vrot.lane.b32.xlu0 %v9250_v14, %s7243_s12 }
 0x602   :  { %11241 = vst [vmem:[#allocation36_spill] sm:$0xff] %v9419_v39 }
 0x604   :  { %5825 = vrot.lane.b32.xlu1 %v9188_v7, %s7242_s30  ;;  %v9413_v7 = vrot.slane %v4697_v47, %v11235_v12  ;;  %v4678_v47 = vcombine.high %v4660_v62, %v11229_v3 }
 0x605   :  { %5575 = vrot.lane.b32.xlu0 %v9245_v46, %s7243_s12 }
 0x606   :  { %v4714_v9 = vcombine.high %v9427_v0, %v9413_v7 }
 0x608   :  { %5561 = vrot.lane.b32.xlu1 %v9289_v54, %s7243_s12  ;;  %v9458_v31 = vrot.slane %v4714_v9, %v11236_v21 }
 0x609   :  { %5821 = vrot.lane.b32.xlu0 %v9250_v14, %s7242_s30 }
 0x60c   :  { %5569 = vrot.lane.b32.xlu1 %v9295_v28, %s7243_s12 }
 0x60d   :  { %5829 = vrot.lane.b32.xlu0 %v9245_v46, %s7242_s30  ;;  %v5352_v46 = vrot.slane %v5338_v23, %v11235_v12 }
 0x60f   :  { %v5385_v15 = vcombine.low %v5352_v46, %v5368_v55  ;;  %v5386_v9 = vcombine.high %v5352_v46, %v5368_v55 }
 0x610   :  { %5815 = vrot.lane.b32.xlu1 %v9289_v54, %s7242_s30  ;;  %v3979_v54 = vcombine.low %v9339_v45, %v9345_v36 }
 0x611   :  { %5565 = vrot.lane.b32.xlu0 %v9303_v40, %s7243_s12  ;;  %v9531_v50 = vrot.slane %v5386_v9, %v11236_v21 }
 0x614   :  { %5823 = vrot.lane.b32.xlu1 %v9295_v28, %s7242_s30  ;;  %v4696_v28 = vrot.slane %v4682_v44, %v11235_v12 }
 0x615   :  { %5573 = vrot.lane.b32.xlu0 %v5551_v19, %s7243_s12 }
 0x618   :  { %5093 = vrot.lane.b32.xlu1 %v9310_v51, %s7242_s30 }
 0x619   :  { %5819 = vrot.lane.b32.xlu0 %v9303_v40, %s7242_s30  ;;  %v3963_v40 = vcombine.low %v9327_v35, %v9332_v41 }
 0x61b   :  { %v9490_v11 = vrot.slane %v3963_v40, %v11235_v12 }
 0x61c   :  { %5101 = vrot.lane.b32.xlu1 %v9316_v16, %s7242_s30 }
 0x61d   :  { %5827 = vrot.lane.b32.xlu0 %v5551_v19, %s7242_s30 }
 0x620   :  { %4845 = vrot.lane.b32.xlu1 %v9310_v51, %s7243_s12  ;;  %v9477_v51 = vrot.slane %v5453_v60, %v11236_v21 }
 0x621   :  { %5097 = vrot.lane.b32.xlu0 %v5078_v24, %s7242_s30 }
 0x624   :  { %4853 = vrot.lane.b32.xlu1 %v9316_v16, %s7243_s12  ;;  %v4729_v16 = vcombine.low %v4696_v28, %v4712_v27 }
 0x625   :  { %5105 = vrot.lane.b32.xlu0 %v5082_v22, %s7242_s30 }
 0x626   :  { %v9497_v34 = vrot.slane %v4729_v16, %v11236_v21 }
 0x628   :  { %4121 = vrot.lane.b32.xlu1 %v9327_v35, %s7243_s12 }
 0x629   :  { %4849 = vrot.lane.b32.xlu0 %v5078_v24, %s7243_s12  ;;  %v9480_v24 = vrot.slane %v5385_v15, %v11236_v21 }
 0x62c   :  { %4129 = vrot.lane.b32.xlu1 %v9332_v41, %s7243_s12 }
 0x62d   :  { %4857 = vrot.lane.b32.xlu0 %v5082_v22, %s7243_s12  ;;  %v9483_v22 = vrot.slane %v3979_v54, %v11235_v12  ;;  %v4679_v54 = vcombine.high %v9353_v18, %v11229_v3 }
 0x62f   :  { %v3996_v2 = vcombine.high %v9490_v11, %v9483_v22 }
 0x630   :  { %4375 = vrot.lane.b32.xlu1 %v9327_v35, %s7242_s30  ;;  %v3978_v35 = vrot.slane %v3964_v29, %v11235_v12 }
 0x631   :  { %4125 = vrot.lane.b32.xlu0 %v9339_v45, %s7243_s12 }
 0x632   :  { %v4011_v44 = vcombine.low %v3978_v35, %v3994_v38  ;;  %v4012_v25 = vcombine.high %v3978_v35, %v3994_v38  ;;  %v5437_v38 = vcombine.low %v9396_v33, %v9381_v37 }
 0x634   :  { %4383 = vrot.lane.b32.xlu1 %v9332_v41, %s7242_s30  ;;  %v9555_v53 = vrot.slane %v4011_v44, %v11236_v21  ;;  %v9569_v40 = vrot.slane %v4012_v25, %v11236_v21  ;;  %v9623_v37 = vrot.slane %v5437_v38, %v11236_v21 }
 0x635   :  { %4133 = vrot.lane.b32.xlu0 %v9345_v36, %s7243_s12 }
 0x636   :  { %11243 = vst [vmem:[#allocation35_spill] sm:$0xff] %v9569_v40  ;;  %11246 = vst [vmem:[#allocation15_spill] sm:$0xff] %v9623_v37 }
 0x638   :  { %4762 = vrot.lane.b32.xlu1 %v9353_v18, %s7234_s24 }
 0x639   :  { %4379 = vrot.lane.b32.xlu0 %v9339_v45, %s7242_s30  ;;  %v9520_v45 = vrot.slane %v3996_v2, %v11236_v21 }
 0x63c   :  { %4036 = vrot.lane.b32.xlu1 %v9363_v59, %s7236_s26 }
 0x63d   :  { %4387 = vrot.lane.b32.xlu0 %v9345_v36, %s7242_s30  ;;  %v4730_v36 = vcombine.high %v4696_v28, %v4712_v27  ;;  %v3959_v27 = vcombine.high %v9537_v43, %v11229_v3 }
 0x63f   :  { %v9542_v55 = vrot.slane %v4730_v36, %v11236_v21  ;;  %v4680_v36 = vcombine.high %v9378_v57, %v11229_v3 }
 0x640   :  { %4770 = vrot.lane.b32.xlu1 %v9378_v57, %s7232_s2  ;;  %v3961_v57 = vcombine.high %v9408_v1, %v11229_v3 }
 0x641   :  { %4754 = vrot.lane.b32.xlu0 %v4660_v62, %s7236_s26  ;;  %v9517_v62 = vrot.slane %v5454_v42, %v11236_v21 }
 0x644   :  { %4044 = vrot.lane.b32.xlu1 %v9408_v1, %s7234_s24 }
 0x645   :  { %4052 = vrot.lane.b32.xlu0 %v9419_v39, %s7232_s2 }
 0x648   :  { %5506 = vrot.lane.b32.xlu1 %v9434_v48, %s7236_s26 }
 0x649   :  { %5478 = vrot.lane.b32.xlu0 %v9439_v4, %s7236_s26 }
 0x64a   :  { %v9455_v14 = vpop.permute.xlu1 %5091 }
 0x64c   :  { %4782 = vrot.lane.b32.xlu1 %v9458_v31, %s7236_s26 }
 0x64d   :  { %4750 = vrot.lane.b32.xlu0 %v4677_v13, %s7238_s28  ;;  %v5369_v13 = vcombine.low %v9402_v10, %v9388_v49  ;;  %v4713_v49 = vcombine.low %v9427_v0, %v9413_v7 }
 0x64e   :  { %v9471_v19 = vpop.permute.xlu1 %5099 }
 0x64f   :  { %v9572_v16 = vrot.slane %v5369_v13, %v11236_v21  ;;  %v9590_v7 = vrot.slane %v4713_v49, %v11236_v21  ;;  %v3995_v49 = vcombine.low %v9490_v11, %v9483_v22  ;;  %v5403_v22 = vcombine.high %v9480_v24, %v11229_v3 }
 0x650   :  { %5514 = vrot.lane.b32.xlu1 %v9477_v51, %s7234_s24 }
 0x651   :  { %5486 = vrot.lane.b32.xlu0 %v9480_v24, %s7234_s24  ;;  %11244 = vst [vmem:[#allocation13_spill] sm:$0xff] %v9572_v16  ;;  %v5401_v32 = vcombine.high %v9572_v16, %v11229_v3  ;;  %11245 = vst [vmem:[#allocation14_spill] sm:$0xff] %v9590_v7  ;;  %v4745_v44 = vcombine.high %v9590_v7, %v11229_v3  ;;  %v9650_v11 = vrot.slane %v3995_v49, %v11236_v21 }
 0x652   :  { %v9492_v58 = vpop.permute.xlu1 %4843  ;;  %v9494_v60 = vpop.permute.xlu0 %5095 }
 0x653   :  { %11247 = vst [vmem:[#allocation25_spill] sm:$0xff] %v9650_v11  ;;  %v4027_v24 = vcombine.high %v9650_v11, %v11229_v3 }
 0x654   :  { %4790 = vrot.lane.b32.xlu1 %v9497_v34, %s7234_s24 }
 0x655   :  { %4758 = vrot.lane.b32.xlu0 %v4678_v47, %s7237_s27  ;;  %v3960_v47 = vcombine.high %v9363_v59, %v11229_v3 }
 0x656   :  { %v9509_v56 = vpop.permute.xlu1 %4851  ;;  %v9511_v23 = vpop.permute.xlu0 %5103 }
 0x657   :  { %v5132_v20 = vcombine.high %v9494_v60, %v9511_v23 }
 0x658   :  { %5522 = vrot.lane.b32.xlu1 %v9517_v62, %s7232_s2 }
 0x659   :  { %4064 = vrot.lane.b32.xlu0 %v9520_v45, %s7236_s26 }
 0x65a   :  { %v9528_v41 = vpop.permute.xlu1 %4123 }
 0x65b   :  { %v9539_v42 = vpop.permute.xlu0 %4847 }
 0x65c   :  { %5494 = vrot.lane.b32.xlu1 %v9531_v50, %s7232_s2 }
 0x65d   :  { %4798 = vrot.lane.b32.xlu0 %v9542_v55, %s7232_s2 }
 0x65e   :  { %v9548_v46 = vpop.permute.xlu1 %4131 }
 0x65f   :  { %v9552_v63 = vpop.permute.xlu0 %4855  ;;  %v4159_v10 = vcombine.low %v9528_v41, %v9548_v46 }
 0x660   :  { %4032 = vrot.lane.b32.xlu1 %v3959_v27, %s7238_s28  ;;  %v5472_v27 = vcombine.high %v9517_v62, %v11229_v3 }
 0x661   :  { %4072 = vrot.lane.b32.xlu0 %v9555_v53, %s7234_s24  ;;  %v9597_v29 = vrot.slane %v4159_v10, %v11235_v12 }
 0x662   :  { %v9562_v15 = vpop.permute.xlu1 %4377 }
 0x663   :  { %v9566_v28 = vpop.permute.xlu0 %4119 }
 0x664   :  { %4766 = vrot.lane.b32.xlu1 %v4679_v54, %s7235_s25  ;;  %v5402_v54 = vcombine.high %v9439_v4, %v11229_v3  ;;  %v5469_v4 = vcombine.high %v9623_v37, %v11229_v3 }
 0x665   :  { %4080 = vrot.lane.b32.xlu0 %v9569_v40, %s7232_s2 }
 0x666   :  { %v9581_v18 = vpop.permute.xlu1 %4385 }
 0x667   :  { %v9585_v2 = vpop.permute.xlu0 %4127  ;;  %v4413_v25 = vcombine.low %v9562_v15, %v9581_v18 }
 0x668   :  { %v4143_v0 = vcombine.low %v9566_v28, %v9585_v2  ;;  %4040 = vrot.lane.b32.xlu1 %v3960_v47, %s7237_s27 }
 0x669   :  { %5474 = vrot.lane.b32.xlu0 %v5401_v32, %s7238_s28  ;;  %v9636_v1 = vrot.slane %v4413_v25, %v11235_v12  ;;  %v5470_v25 = vcombine.high %v9434_v48, %v11229_v3  ;;  %v4746_v48 = vcombine.high %v9458_v31, %v11229_v3 }
 0x66a   :  { %v9600_v59 = vrot.slane %v4143_v0, %v11235_v12  ;;  %v9602_v9 = vpop.permute.xlu1 %5563 }
 0x66b   :  { %v9608_v35 = vpop.permute.xlu0 %4373 }
 0x66c   :  { %4774 = vrot.lane.b32.xlu1 %v4680_v36, %s7233_s23  ;;  %v4747_v36 = vcombine.high %v9497_v34, %v11229_v3  ;;  %v5471_v34 = vcombine.high %v9477_v51, %v11229_v3 }
 0x66d   :  { %4778 = vrot.lane.b32.xlu0 %v4745_v44, %s7238_s28 }
 0x66e   :  { %v9618_v13 = vpop.permute.xlu1 %5571 }
 0x66f   :  { %v9625_v33 = vpop.permute.xlu0 %4381  ;;  %v5653_v38 = vcombine.low %v9602_v9, %v9618_v13 }
 0x670   :  { %v4397_v10 = vcombine.low %v9608_v35, %v9625_v33  ;;  %4048 = vrot.lane.b32.xlu1 %v3961_v57, %s7235_s25 }
 0x671   :  { %5482 = vrot.lane.b32.xlu0 %v5402_v54, %s7237_s27  ;;  %v9671_v49 = vrot.slane %v5653_v38, %v11235_v12  ;;  %v4884_v38 = vcombine.high %v9539_v42, %v9552_v63 }
 0x672   :  { %v9639_v47 = vrot.slane %v4397_v10, %v11235_v12  ;;  %v9641_v32 = vpop.permute.xlu1 %5817 }
 0x673   :  { %v9645_v0 = vpop.permute.xlu0 %5567  ;;  %v9710_v5 = vrot.slane %v4884_v38, %v11235_v12  ;;  %v5116_v38 = vcombine.high %v9455_v14, %v9471_v19 }
 0x674   :  { %5502 = vrot.lane.b32.xlu1 %v5469_v4, %s7238_s28  ;;  %v4430_v51 = vcombine.high %v9639_v47, %v9636_v1 }
 0x675   :  { %5490 = vrot.lane.b32.xlu0 %v5403_v22, %s7235_s25  ;;  %v9755_v43 = vrot.slane %v5116_v38, %v11235_v12 }
 0x676   :  { %v9658_v44 = vpop.permute.xlu1 %5825 }
 0x677   :  { %v9662_v57 = vpop.permute.xlu0 %5575  ;;  %v5907_v31 = vcombine.low %v9641_v32, %v9658_v44 }
 0x678   :  { %v5669_v54 = vcombine.low %v9645_v0, %v9662_v57  ;;  %5510 = vrot.lane.b32.xlu1 %v5470_v25, %s7237_s27  ;;  %v4868_v25 = vcombine.high %v9492_v58, %v9509_v56 }
 0x679   :  { %4060 = vrot.lane.b32.xlu0 %v4027_v24, %s7238_s28  ;;  %v4176_v24 = vcombine.high %v9600_v59, %v9597_v29  ;;  %v9716_v30 = vrot.slane %v5907_v31, %v11235_v12  ;;  %v5404_v31 = vcombine.high %v9531_v50, %v11229_v3 }
 0x67a   :  { %v9674_v10 = vrot.slane %v5669_v54, %v11235_v12  ;;  %v9676_v4 = vpop.permute.xlu1 %5561  ;;  %v9729_v6 = vrot.slane %v4868_v25, %v11235_v12  ;;  %v4144_v25 = vcombine.high %v9566_v28, %v9585_v2  ;;  %v4160_v28 = vcombine.high %v9528_v41, %v9548_v46 }
 0x67b   :  { %v9680_v22 = vpop.permute.xlu0 %5821  ;;  %v4398_v41 = vcombine.high %v9608_v35, %v9625_v33  ;;  %v4414_v33 = vcombine.high %v9562_v15, %v9581_v18 }
 0x67c   :  { %4786 = vrot.lane.b32.xlu1 %v4746_v48, %s7237_s27  ;;  %v4915_v26 = vcombine.low %v9729_v6, %v9710_v5  ;;  %v4174_v35 = vrot.slane %v4160_v28, %v11235_v12 }
 0x67d   :  { %4794 = vrot.lane.b32.xlu0 %v4747_v36, %s7235_s25 }
 0x67e   :  { %v9694_v54 = vpop.permute.xlu1 %5569 }
 0x67f   :  { %v9700_v48 = vpop.permute.xlu0 %5829  ;;  %v5585_v50 = vcombine.low %v9676_v4, %v9694_v54 }
 0x680   :  { %v5923_v36 = vcombine.low %v9680_v22, %v9700_v48  ;;  %5518 = vrot.lane.b32.xlu1 %v5471_v34, %s7235_s25  ;;  %v9724_v34 = vrot.slane %v4176_v24, %v11236_v21  ;;  %v9740_v24 = vrot.slane %v5132_v20, %v11235_v12  ;;  %v5131_v20 = vcombine.low %v9494_v60, %v9511_v23 }
 0x681   :  { %5526 = vrot.lane.b32.xlu0 %v5472_v27, %s7233_s23  ;;  %v9775_v23 = vrot.slane %v4915_v26, %v11236_v21  ;;  %v9783_v46 = vrot.slane %v5585_v50, %v11235_v12  ;;  %v4883_v26 = vcombine.low %v9539_v42, %v9552_v63  ;;  %v4867_v42 = vcombine.low %v9492_v58, %v9509_v56 }
 0x682   :  { %v9719_v62 = vrot.slane %v5923_v36, %v11235_v12  ;;  %v9721_v61 = vpop.permute.xlu1 %5815  ;;  %v9752_v36 = vrot.slane %v4430_v51, %v11236_v21  ;;  %v5115_v51 = vcombine.low %v9455_v14, %v9471_v19  ;;  %v5164_v60 = vcombine.high %v9755_v43, %v9740_v24 }
 0x683   :  { %v9731_v27 = vpop.permute.xlu0 %5565  ;;  %11249 = vst [vmem:[#allocation34_spill] sm:$0xff] %v9783_v46  ;;  %v9791_v19 = vrot.slane %v5131_v20, %v11235_v12  ;;  %v9814_v63 = vrot.slane %v4398_v41, %v11235_v12  ;;  %v9826_v58 = vrot.slane %v4883_v26, %v11235_v12  ;;  %v4428_v41 = vrot.slane %v4414_v33, %v11235_v12 }
 0x684   :  { %11248 = vst [vmem:[#allocation30_spill] sm:$0xff] %v9719_v62  ;;  %4284 = vrot.lane.b32.xlu1 %v9724_v34, %s7236_s26  ;;  %v9807_v20 = vrot.slane %v5115_v51, %v11235_v12  ;;  %v9821_v28 = vrot.slane %v5164_v60, %v11236_v21  ;;  %v4029_v51 = vcombine.high %v9555_v53, %v11229_v3 }
 0x685   :  { %5498 = vrot.lane.b32.xlu0 %v5404_v31, %s7233_s23  ;;  %v4028_v31 = vcombine.high %v9520_v45, %v11229_v3  ;;  %v9778_v45 = vrot.slane %v4144_v25, %v11235_v12  ;;  %v4748_v25 = vcombine.high %v9542_v55, %v11229_v3  ;;  %v9838_v60 = vrot.slane %v4867_v42, %v11235_v12 }
 0x686   :  { %v9749_v52 = vpop.permute.xlu1 %5823  ;;  %11251 = vst [vmem:[#allocation18_spill] sm:$0xff] %v9821_v28  ;;  %v4445_v26 = vcombine.low %v9814_v63, %v4428_v41 }
 0x687   :  { %v9759_v11 = vpop.permute.xlu0 %5573  ;;  %v4191_v55 = vcombine.low %v9778_v45, %v4174_v35  ;;  %v5839_v15 = vcombine.low %v9721_v61, %v9749_v52  ;;  %v4900_v40 = vcombine.high %v9838_v60, %v9826_v58 }
 0x688   :  { %v5601_v2 = vcombine.low %v9731_v27, %v9759_v11  ;;  %4538 = vrot.lane.b32.xlu1 %v9752_v36, %s7236_s26 }
 0x689   :  { %4068 = vrot.lane.b32.xlu0 %v4028_v31, %s7237_s27  ;;  %v9843_v50 = vrot.slane %v5839_v15, %v11235_v12  ;;  %v9851_v39 = vrot.slane %v4191_v55, %v11236_v21  ;;  %v4916_v55 = vcombine.high %v9729_v6, %v9710_v5  ;;  %v5163_v15 = vcombine.low %v9755_v43, %v9740_v24 }
 0x68a   :  { %v9786_v38 = vrot.slane %v5601_v2, %v11235_v12  ;;  %v9788_v14 = vpop.permute.xlu1 %5093  ;;  %v5148_v2 = vcombine.high %v9807_v20, %v9791_v19  ;;  %v9880_v37 = vrot.slane %v4900_v40, %v11236_v21  ;;  %v4192_v5 = vcombine.high %v9778_v45, %v4174_v35 }
 0x68b   :  { %v9795_v31 = vpop.permute.xlu0 %5819  ;;  %11252 = vst [vmem:[#allocation17_spill] sm:$0xff] %v9843_v50  ;;  %11254 = vst [vmem:[#allocation26_spill] sm:$0xff] %v9851_v39  ;;  %v9898_v40 = vrot.slane %v4916_v55, %v11236_v21  ;;  %v5602_v45 = vcombine.high %v9731_v27, %v9759_v11  ;;  %v5686_v11 = vcombine.high %v9671_v49, %v9674_v10 }
 0x68c   :  { %11250 = vst [vmem:[#allocation39_spill] sm:$0xff] %v9786_v38  ;;  %5016 = vrot.lane.b32.xlu1 %v9775_v23, %s7234_s24 }
 0x68d   :  { %4802 = vrot.lane.b32.xlu0 %v4748_v25, %s7233_s23 }
 0x68e   :  { %v9818_v18 = vpop.permute.xlu1 %5101 }
 0x68f   :  { %v9828_v56 = vpop.permute.xlu0 %5827 }
 0x690   :  { %v5855_v25 = vcombine.low %v9795_v31, %v9828_v56  ;;  %5272 = vrot.lane.b32.xlu1 %v9821_v28, %s7232_s2  ;;  %v9905_v28 = vrot.slane %v5163_v15, %v11236_v21  ;;  %v5147_v15 = vcombine.low %v9807_v20, %v9791_v19  ;;  %v5586_v19 = vcombine.high %v9676_v4, %v9694_v54 }
 0x691   :  { %4076 = vrot.lane.b32.xlu0 %v4029_v51, %s7235_s25  ;;  %v9858_v51 = vrot.slane %v5148_v2, %v11236_v21  ;;  %v9873_v2 = vrot.slane %v4445_v26, %v11236_v21  ;;  %v5618_v26 = vcombine.high %v9783_v46, %v9786_v38  ;;  %v5856_v4 = vcombine.high %v9795_v31, %v9828_v56 }
 0x692   :  { %v9846_v53 = vrot.slane %v5855_v25, %v11235_v12  ;;  %v9848_v33 = vpop.permute.xlu1 %4845  ;;  %v5183_v25 = vcombine.low %v9788_v14, %v9818_v18  ;;  %v5940_v31 = vcombine.high %v9716_v30, %v9719_v62 }
 0x693   :  { %v9855_v42 = vpop.permute.xlu0 %5097  ;;  %11255 = vst [vmem:[#allocation16_spill] sm:$0xff] %v9873_v2 }
 0x694   :  { %11253 = vst [vmem:[#allocation19_spill] sm:$0xff] %v9846_v53  ;;  %4292 = vrot.lane.b32.xlu1 %v9851_v39, %s7234_s24  ;;  %v9890_v6 = vrot.slane %v5183_v25, %v11235_v12  ;;  %v9919_v25 = vrot.slane %v4192_v5, %v11236_v21  ;;  %v5872_v38 = vcombine.high %v9843_v50, %v9846_v53 }
 0x695   :  { %5256 = vrot.lane.b32.xlu0 %v9858_v51, %s7236_s26  ;;  %v9954_v53 = vrot.slane %v5602_v45, %v11235_v12  ;;  %v5670_v45 = vcombine.high %v9645_v0, %v9662_v57  ;;  %v5654_v0 = vcombine.high %v9602_v9, %v9618_v13  ;;  %v5924_v9 = vcombine.high %v9680_v22, %v9700_v48 }
 0x696   :  { %v9870_v7 = vpop.permute.xlu1 %4853  ;;  %11256 = vst [vmem:[#allocation22_spill] sm:$0xff] %v9890_v6 }
 0x697   :  { %v9877_v16 = vpop.permute.xlu0 %5105  ;;  %v4935_v35 = vcombine.low %v9848_v33, %v9870_v7 }
 0x698   :  { %v5199_v39 = vcombine.low %v9855_v42, %v9877_v16  ;;  %4546 = vrot.lane.b32.xlu1 %v9873_v2, %s7234_s24 }
 0x699   :  { %5008 = vrot.lane.b32.xlu0 %v9880_v37, %s7236_s26  ;;  %v9943_v27 = vrot.slane %v4935_v35, %v11235_v12  ;;  %v9964_v35 = vrot.slane %v5147_v15, %v11236_v21 }
 0x69a   :  { %v9893_v43 = vrot.slane %v5199_v39, %v11235_v12  ;;  %v9895_v24 = vpop.permute.xlu1 %4121  ;;  %v4446_v39 = vcombine.high %v9814_v63, %v4428_v41  ;;  %v9930_v63 = vrot.slane %v5618_v26, %v11236_v21 }
 0x69b   :  { %v9902_v2 = vpop.permute.xlu0 %4849  ;;  %11260 = vst [vmem:[#allocation28_spill] sm:$0xff] %v9964_v35 }
 0x69c   :  { %11257 = vst [vmem:[#allocation33_spill] sm:$0xff] %v9893_v43  ;;  %5024 = vrot.lane.b32.xlu1 %v9898_v40, %s7232_s2  ;;  %11258 = vst [vmem:[#allocation42_spill] sm:$0xff] %v9930_v63  ;;  %v9951_v26 = vrot.slane %v4446_v39, %v11236_v21  ;;  %v9973_v39 = vrot.slane %v5586_v19, %v11235_v12  ;;  %v9993_v19 = vrot.slane %v5856_v4, %v11235_v12 }
 0x69d   :  { %5264 = vrot.lane.b32.xlu0 %v9905_v28, %s7234_s24  ;;  %v5216_v50 = vcombine.high %v9890_v6, %v9893_v43 }
 0x69e   :  { %v9916_v55 = vpop.permute.xlu1 %4129  ;;  %v5633_v57 = vcombine.low %v9973_v39, %v9954_v53 }
 0x69f   :  { %v9927_v46 = vpop.permute.xlu0 %4857  ;;  %v4211_v56 = vcombine.low %v9895_v24, %v9916_v55 }
 0x6a0   :  { %v4951_v41 = vcombine.low %v9902_v2, %v9927_v46  ;;  %4300 = vrot.lane.b32.xlu1 %v9919_v25, %s7232_s2 }
 0x6a1   :  { %5726 = vrot.lane.b32.xlu0 %v9930_v63, %s7236_s26  ;;  %v9961_v63 = vrot.slane %v5872_v38, %v11236_v21  ;;  %v5840_v38 = vcombine.high %v9721_v61, %v9749_v52  ;;  %v5179_v61 = vcombine.high %v9964_v35, %v11229_v3  ;;  %v10013_v35 = vrot.slane %v5940_v31, %v11236_v21 }
 0x6a2   :  { %v9946_v20 = vrot.slane %v4951_v41, %v11235_v12  ;;  %v9948_v5 = vpop.permute.xlu1 %4375  ;;  %v9986_v41 = vrot.slane %v5686_v11, %v11236_v21  ;;  %v10004_v11 = vrot.slane %v5670_v45, %v11235_v12 }
 0x6a3   :  { %v9958_v54 = vpop.permute.xlu0 %4125  ;;  %11259 = vst [vmem:[#allocation40_spill] sm:$0xff] %v9961_v63  ;;  %v10009_v13 = vrot.slane %v5840_v38, %v11235_v12  ;;  %11262 = vst [vmem:[#allocation37_spill] sm:$0xff] %v10013_v35  ;;  %v4899_v38 = vcombine.low %v9838_v60, %v9826_v58 }
 0x6a4   :  { %4554 = vrot.lane.b32.xlu1 %v9951_v26, %s7232_s2  ;;  %11261 = vst [vmem:[#allocation24_spill] sm:$0xff] %v9986_v41 }
 0x6a5   :  { %5980 = vrot.lane.b32.xlu0 %v9961_v63, %s7236_s26  ;;  %v5887_v31 = vcombine.low %v10009_v13, %v9993_v19  ;;  %v10064_v6 = vrot.slane %v4899_v38, %v11236_v21  ;;  %v5200_v38 = vcombine.high %v9855_v42, %v9877_v16 }
 0x6a6   :  { %v9983_v15 = vpop.permute.xlu1 %4383 }
 0x6a7   :  { %v9995_v52 = vpop.permute.xlu0 %4133 }
 0x6a8   :  { %v4227_v63 = vcombine.low %v9958_v54, %v9995_v52  ;;  %5754 = vrot.lane.b32.xlu1 %v9986_v41, %s7236_s26  ;;  %v10018_v41 = vrot.slane %v4211_v56, %v11235_v12  ;;  %v10036_v56 = vrot.slane %v5633_v57, %v11236_v21  ;;  %v4465_v57 = vcombine.low %v9948_v5, %v9983_v15 }
 0x6a9   :  { %5252 = vrot.lane.b32.xlu0 %v5179_v61, %s7238_s28  ;;  %v3078_v4 = vpop.f32.mrf.mxu0  ;;  %v10029_v61 = vrot.slane %v5654_v0, %v11235_v12  ;;  %v10049_v0 = vrot.slane %v5924_v9, %v11235_v12 }
 0x6aa   :  { %v10021_v45 = vrot.slane %v4227_v63, %v11235_v12  ;;  %v3079_v22 = vadd.f32 %v3078_v4, %v9083_v17  ;;  %v10024_v48 = vpop.permute.xlu1 %4762  ;;  %11263 = vst [vmem:[#allocation43_spill] sm:$0xff] %v10036_v56  ;;  %v5908_v4 = vcombine.high %v9641_v32, %v9658_v44  ;;  %v10056_v44 = vrot.slane %v5216_v50, %v11236_v21 }
 0x6ab   :  { %v10033_v43 = vpop.permute.xlu0 %4379  ;;  %v7066_v63 = vpop.f32.mrf.mxu0  ;;  %v5701_v58 = vcombine.low %v10029_v61, %v10004_v11 }
 0x6ac   :  { %6008 = vrot.lane.b32.xlu1 %v10013_v35, %s7236_s26  ;;  %v3082_v60 = vadd.f32 3.0, %v3079_v22  ;;  %11265 = vst [vmem:[#allocation9_spill] sm:$0xff] %v10056_v44  ;;  %v10061_v35 = vrot.slane %v5887_v31, %v11236_v21  ;;  %v5922_v9 = vrot.slane %v5908_v4, %v11235_v12  ;;  %v10080_v4 = vrot.slane %v4465_v57, %v11235_v12 }
 0x6ad   :  { %5734 = vrot.lane.b32.xlu0 %v10036_v56, %s7234_s24  ;;  %v10074_v50 = vrot.slane %v5701_v58, %v11236_v21  ;;  %v4931_v58 = vcombine.high %v10064_v6, %v11229_v3  ;;  %v4968_v57 = vcombine.high %v9943_v27, %v9946_v20 }
 0x6ae   :  { %v10053_v32 = vpop.permute.xlu1 %4036  ;;  %v3083_v63 = vmax.f32 %v3082_v60, 0.0  ;;  %11266 = vst [vmem:[#allocation44_spill] sm:$0xff] %v10061_v35  ;;  %v5955_v31 = vcombine.low %v5922_v9, %v10049_v0 }
 0x6af   :  { %11264 = vst [vmem:[#allocation41_spill] sm:$0xff] %v10053_v32  ;;  %v10058_v17 = vpop.permute.xlu0 %4387 }
 0x6b0   :  { %v4481_v56 = vcombine.low %v10033_v43, %v10058_v17  ;;  %5284 = vrot.lane.b32.xlu1 %v10056_v44, %s7236_s26  ;;  %v3084_v32 = vmin.f32 %v3083_v63, 6.0 }
 0x6b1   :  { %5988 = vrot.lane.b32.xlu0 %v10061_v35, %s7234_s24  ;;  %v5184_v35 = vcombine.high %v9788_v14, %v9818_v18  ;;  %v10108_v14 = vrot.slane %v5955_v31, %v11236_v21  ;;  %v5634_v18 = vcombine.high %v9973_v39, %v9954_v53  ;;  %v10129_v31 = vrot.slane %v4968_v57, %v11236_v21 }
 0x6b2   :  { %v10083_v60 = vrot.slane %v4481_v56, %v11235_v12  ;;  %v10085_v62 = vpop.permute.xlu1 %4770  ;;  %v3086_v63 = vmul.f32 0.16666667, %v3084_v32  ;;  %v10101_v56 = vrot.slane %v5200_v38, %v11235_v12 }
 0x6b3   :  { %v10087_v44 = vpop.permute.xlu0 %4754  ;;  %v10118_v38 = vrot.slane %v5184_v35, %v11235_v12 }
 0x6b4   :  { %5762 = vrot.lane.b32.xlu1 %v10074_v50, %s7234_s24  ;;  %v10097_v42 = vmul.f32 %v3086_v63, %v3079_v22  ;;  %v5180_v63 = vcombine.high %v9858_v51, %v11229_v3  ;;  %v5888_v51 = vcombine.high %v10009_v13, %v9993_v19 }
 0x6b5   :  { %5004 = vrot.lane.b32.xlu0 %v4931_v58, %s7238_s28  ;;  %v5231_v53 = vcombine.low %v10118_v38, %v10101_v56  ;;  %v10136_v58 = vrot.slane %v5634_v18, %v11236_v21  ;;  %v11269_v18 = vcombine.low %v9600_v59, %v9597_v29  ;;  %v11271_v59 = vcombine.low %v9639_v47, %v9636_v1 }
 0x6b6   :  { %v10105_v32 = vpop.permute.xlu1 %4044  ;;  %7068 = vmatpush3.msra.mxu0 %v10097_v42  ;;  %v10150_v13 = vrot.slane %v5888_v51, %v11236_v21  ;;  %v4228_v1 = vcombine.high %v9958_v54, %v9995_v52  ;;  %v4498_v54 = vcombine.high %v10080_v4, %v10083_v60 }
 0x6b7   :  { %11267 = vst [vmem:[#allocation45_spill] sm:$0xff] %v10105_v32  ;;  %v10113_v22 = vpop.permute.xlu0 %4052  ;;  %7072 = vmatprep.subr.mxu0 %v11229_v3  ;;  %v10147_v57 = vrot.slane %v5231_v53, %v11236_v21 }
 0x6b8   :  { %11268 = vst [vmem:[#allocation46_spill] sm:$0xff] %v10113_v22  ;;  %6016 = vrot.lane.b32.xlu1 %v10108_v14, %s7234_s24  ;;  %v10156_v22 = vrot.slane %v11269_v18, %v11236_v21  ;;  %v10176_v18 = vrot.slane %v11271_v59, %v11236_v21 }
 0x6b9   :  { %5260 = vrot.lane.b32.xlu0 %v5180_v63, %s7237_s27  ;;  %v5702_v63 = vcombine.high %v10029_v61, %v10004_v11  ;;  %v5956_v11 = vcombine.high %v5922_v9, %v10049_v0  ;;  %v4952_v0 = vcombine.high %v9902_v2, %v9927_v46  ;;  %v4244_v9 = vcombine.high %v10018_v41, %v10021_v45 }
 0x6ba   :  { %v10126_v39 = vpop.permute.xlu1 %5506  ;;  %11270 = vst [vmem:[#allocation47_spill] sm:$0xff] %v10156_v22  ;;  %v4207_v29 = vcombine.high %v10156_v22, %v11229_v3  ;;  %11272 = vst [vmem:[#allocation48_spill] sm:$0xff] %v10176_v18  ;;  %v4461_v59 = vcombine.high %v10176_v18, %v11229_v3  ;;  %v4212_v46 = vcombine.high %v9895_v24, %v9916_v55 }
 0x6bb   :  { %v10133_v35 = vpop.permute.xlu0 %5478  ;;  %v10166_v53 = vrot.slane %v5702_v63, %v11236_v21  ;;  %v10188_v32 = vrot.slane %v5956_v11, %v11236_v21  ;;  %v4966_v2 = vrot.slane %v4952_v0, %v11235_v12  ;;  %v10207_v11 = vrot.slane %v4244_v9, %v11236_v21 }
 0x6bc   :  { %5036 = vrot.lane.b32.xlu1 %v10129_v31, %s7236_s26  ;;  %v4932_v24 = vcombine.high %v9880_v37, %v11229_v3  ;;  %v4226_v0 = vrot.slane %v4212_v46, %v11235_v12  ;;  %v4466_v9 = vcombine.high %v9948_v5, %v9983_v15  ;;  %v5232_v15 = vcombine.high %v10118_v38, %v10101_v56 }
 0x6bd   :  { %5742 = vrot.lane.b32.xlu0 %v10136_v58, %s7232_s2 }
 0x6be   :  { %v10144_v16 = vpop.permute.xlu1 %4782  ;;  %v4480_v5 = vrot.slane %v4466_v9, %v11235_v12 }
 0x6bf   :  { %v4751_v19 = vpop.permute.xlu0 %4750 }
 0x6c0   :  { %5292 = vrot.lane.b32.xlu1 %v10147_v57, %s7234_s24 }
 0x6c1   :  { %5996 = vrot.lane.b32.xlu0 %v10150_v13, %s7232_s2 }
 0x6c2   :  { %v10163_v61 = vpop.permute.xlu1 %5514 }
 0x6c3   :  { %v10168_v51 = vpop.permute.xlu0 %5486 }
 0x6c4   :  { %5770 = vrot.lane.b32.xlu1 %v10166_v53, %s7232_s2 }
 0x6c5   :  { %4280 = vrot.lane.b32.xlu0 %v4207_v29, %s7238_s28  ;;  %v4936_v29 = vcombine.high %v9848_v33, %v9870_v7  ;;  %v4242_v7 = vrot.slane %v4228_v1, %v11235_v12  ;;  %v4482_v33 = vcombine.high %v10033_v43, %v10058_v17  ;;  %v10226_v17 = vrot.slane %v4498_v54, %v11236_v21 }
 0x6c6   :  { %v10185_v63 = vpop.permute.xlu1 %4790 }
 0x6c7   :  { %v4759_v47 = vpop.permute.xlu0 %4758  ;;  %v4950_v55 = vrot.slane %v4936_v29, %v11235_v12  ;;  %v4259_v43 = vcombine.low %v4226_v0, %v4242_v7  ;;  %v4496_v37 = vrot.slane %v4482_v33, %v11235_v12 }
 0x6c8   :  { %6024 = vrot.lane.b32.xlu1 %v10188_v32, %s7232_s2 }
 0x6c9   :  { %4534 = vrot.lane.b32.xlu0 %v4461_v59, %s7238_s28  ;;  %v4983_v1 = vcombine.low %v4950_v55, %v4966_v2  ;;  %v4513_v33 = vcombine.low %v4480_v5, %v4496_v37  ;;  %v10249_v22 = vrot.slane %v4259_v43, %v11236_v21  ;;  %v4984_v9 = vcombine.high %v4950_v55, %v4966_v2 }
 0x6ca   :  { %v10204_v52 = vpop.permute.xlu1 %5522  ;;  %v4208_v2 = vcombine.high %v9724_v34, %v11229_v3  ;;  %v4514_v34 = vcombine.high %v4480_v5, %v4496_v37 }
 0x6cb   :  { %v10212_v18 = vpop.permute.xlu0 %4064  ;;  %v10242_v54 = vrot.slane %v4983_v1, %v11236_v21  ;;  %v10264_v1 = vrot.slane %v4513_v33, %v11236_v21  ;;  %v10278_v33 = vrot.slane %v4984_v9, %v11236_v21 }
 0x6cc   :  { %11273 = vst [vmem:[#allocation49_spill] sm:$0xff] %v10212_v18  ;;  %4312 = vrot.lane.b32.xlu1 %v10207_v11, %s7236_s26  ;;  %v5181_v18 = vcombine.high %v9905_v28, %v11229_v3  ;;  %v10299_v37 = vrot.slane %v4514_v34, %v11236_v21 }
 0x6cd   :  { %5012 = vrot.lane.b32.xlu0 %v4932_v24, %s7237_s27  ;;  %v4805_v24 = vsel %vm609_vm8, %v9445_v8, %v4751_v19 }
 0x6ce   :  { %v10223_v59 = vpop.permute.xlu1 %5494  ;;  %v4806_v56 = vsel %vm611_vm9, %v4805_v24, %v10087_v44 }
 0x6cf   :  { %v10229_v29 = vpop.permute.xlu0 %4798  ;;  %v4807_v8 = vsel %vm613_vm10, %v4806_v56, %v4759_v47  ;;  %v4260_v47 = vcombine.high %v4226_v0, %v4242_v7  ;;  %v4462_v56 = vcombine.high %v9752_v36, %v11229_v3 }
 0x6d0   :  { %4566 = vrot.lane.b32.xlu1 %v10226_v17, %s7236_s26  ;;  %v4808_v44 = vsel %vm11141_vm11, %v4807_v8, %v10024_v48 }
 0x6d1   :  { %5268 = vrot.lane.b32.xlu0 %v5181_v18, %s7235_s25  ;;  %v10258_v18 = vrot.slane %v5232_v15, %v11236_v21 }
 0x6d2   :  { %v10239_v46 = vpop.permute.xlu1 %4032 }
 0x6d3   :  { %11274 = vst [vmem:[#allocation50_spill] sm:$0xff] %v10239_v46  ;;  %v10246_v28 = vpop.permute.xlu0 %4072 }
 0x6d4   :  { %5044 = vrot.lane.b32.xlu1 %v10242_v54, %s7234_s24 }
 0x6d5   :  { %4320 = vrot.lane.b32.xlu0 %v10249_v22, %s7234_s24 }
 0x6d6   :  { %v4767_v38 = vpop.permute.xlu1 %4766 }
 0x6d7   :  { %v10261_v19 = vpop.permute.xlu0 %4080  ;;  %v4809_v55 = vsel %vm11138_vm12, %v4808_v44, %v4767_v38  ;;  %v10289_v38 = vrot.slane %v4260_v47, %v11236_v21  ;;  %v11277_v44 = vld [vmem:[#allocation18_spill] sm:$0xff] }
 0x6d8   :  { %5300 = vrot.lane.b32.xlu1 %v10258_v18, %s7232_s2  ;;  %v4810_v48 = vsel %vm11140_vm13, %v4809_v55, %v10085_v62  ;;  %v4933_v62 = vcombine.high %v9775_v23, %v11229_v3  ;;  %v4934_v55 = vcombine.high %v9898_v40, %v11229_v3  ;;  %v11280_v40 = vcombine.low %v9671_v49, %v9674_v10 }
 0x6d9   :  { %4574 = vrot.lane.b32.xlu0 %v10264_v1, %s7234_s24 }
 0x6da   :  { %v10272_v43 = vpop.permute.xlu1 %4040 }
 0x6db   :  { %11275 = vst [vmem:[#allocation51_spill] sm:$0xff] %v10272_v43  ;;  %v5475_v15 = vpop.permute.xlu0 %5474 }
 0x6dc   :  { %4288 = vrot.lane.b32.xlu1 %v4208_v2, %s7237_s27  ;;  %v5182_v2 = vcombine.high %v11277_v44, %v11229_v3  ;;  %v11281_v44 = vld [vmem:[#allocation13_spill] sm:$0xff] }
 0x6dd   :  { %5052 = vrot.lane.b32.xlu0 %v10278_v33, %s7232_s2 }
 0x6de   :  { %v4775_v24 = vpop.permute.xlu1 %4774 }
 0x6df   :  { %v4811_v7 = vsel %vm11139_vm14, %v4810_v48, %v4775_v24  ;;  %v4779_v0 = vpop.permute.xlu0 %4778  ;;  %v11278_v24 = vld [vmem:[#allocation26_spill] sm:$0xff] }
 0x6e0   :  { %v4821_v9 = vrot.slane %v4811_v7, 4  ;;  %4542 = vrot.lane.b32.xlu1 %v4462_v56, %s7237_s27  ;;  %v4209_v48 = vcombine.high %v11278_v24, %v11229_v3  ;;  %v11279_v56 = vld [vmem:[#allocation15_spill] sm:$0xff]  ;;  %v11282_v24 = vld [vmem:[#allocation16_spill] sm:$0xff] }
 0x6e1   :  { %4328 = vrot.lane.b32.xlu0 %v10289_v38, %s7232_s2 }
 0x6e2   :  { %4825 = vst [vmem:[#allocation3 + $0x18] sm:$0xf0] %v4821_v9  ;;  %v10294_v8 = vpop.permute.xlu1 %4048  ;;  %v4464_v9 = vcombine.high %v9951_v26, %v11229_v3  ;;  %v4463_v26 = vcombine.high %v11282_v24, %v11229_v3  ;;  %v11287_v24 = vld [vmem:[#allocation30_spill] sm:$0xff] }
 0x6e3   :  { %11276 = vst [vmem:[#allocation52_spill] sm:$0xff] %v10294_v8  ;;  %v5483_v36 = vpop.permute.xlu0 %5482 }
 0x6e4   :  { %5020 = vrot.lane.b32.xlu1 %v4933_v62, %s7235_s25  ;;  %v10322_v62 = vrot.slane %v11280_v40, %v11236_v21  ;;  %v11284_v40 = vld [vmem:[#allocation39_spill] sm:$0xff] }
 0x6e5   :  { %4582 = vrot.lane.b32.xlu0 %v10299_v37, %s7232_s2 }
 0x6e6   :  { %v5503_v5 = vpop.permute.xlu1 %5502 }
 0x6e7   :  { %v5491_v47 = vpop.permute.xlu0 %5490  ;;  %v5536_v34 = vsel %vm609_vm8, %v11279_v56, %v5503_v5 }
 0x6e8   :  { %5276 = vrot.lane.b32.xlu1 %v5182_v2, %s7233_s23  ;;  %v5529_v2 = vsel %vm609_vm8, %v11281_v44, %v5475_v15  ;;  %v5537_v5 = vsel %vm611_vm9, %v5536_v34, %v10126_v39  ;;  %v5717_v15 = vcombine.high %v10322_v62, %v11229_v3  ;;  %v11286_v34 = vld [vmem:[#allocation14_spill] sm:$0xff] }
 0x6e9   :  { %5028 = vrot.lane.b32.xlu0 %v4934_v55, %s7233_s23  ;;  %v5530_v56 = vsel %vm611_vm9, %v5529_v2, %v10133_v35  ;;  %v4812_v35 = vsel %vm609_vm8, %v11286_v34, %v4779_v0 }
 0x6ea   :  { %v5511_v23 = vpop.permute.xlu1 %5510  ;;  %v5531_v39 = vsel %vm613_vm10, %v5530_v56, %v5483_v36 }
 0x6eb   :  { %v10314_v7 = vpop.permute.xlu0 %4060  ;;  %v5538_v49 = vsel %vm613_vm10, %v5537_v5, %v5511_v23  ;;  %v4210_v5 = vcombine.high %v9919_v25, %v11229_v3  ;;  %v5532_v36 = vsel %vm11141_vm11, %v5531_v39, %v10168_v51  ;;  %v4813_v51 = vsel %vm611_vm9, %v4812_v35, %v10144_v16  ;;  %v11292_v16 = vld [vmem:[#allocation22_spill] sm:$0xff]  ;;  %v11293_v35 = vld [vmem:[#allocation33_spill] sm:$0xff] }
 0x6ec   :  { %4296 = vrot.lane.b32.xlu1 %v4209_v48, %s7235_s25  ;;  %v11283_v48 = vld [vmem:[#allocation34_spill] sm:$0xff]  ;;  %v5539_v23 = vsel %vm11141_vm11, %v5538_v49, %v10163_v61  ;;  %v11289_v61 = vld [vmem:[#allocation17_spill] sm:$0xff]  ;;  %v11290_v49 = vld [vmem:[#allocation19_spill] sm:$0xff] }
 0x6ed   :  { %4558 = vrot.lane.b32.xlu0 %v4464_v9, %s7233_s23  ;;  %v11285_v9 = vcombine.low %v11283_v48, %v11284_v40  ;;  %v11288_v48 = vcombine.low %v9716_v30, %v11287_v24  ;;  %v11294_v24 = vcombine.low %v11292_v16, %v11293_v35 }
 0x6ee   :  { %v4787_v55 = vpop.permute.xlu1 %4786 }
 0x6ef   :  { %v4795_v10 = vpop.permute.xlu0 %4794  ;;  %v10341_v44 = vrot.slane %v11285_v9, %v11236_v21  ;;  %v10356_v40 = vrot.slane %v11288_v48, %v11236_v21  ;;  %v5533_v9 = vsel %vm11138_vm12, %v5532_v36, %v5491_v47  ;;  %v4814_v34 = vsel %vm613_vm10, %v4813_v51, %v4787_v55 }
 0x6f0   :  { %4550 = vrot.lane.b32.xlu1 %v4463_v26, %s7235_s25  ;;  %v10390_v48 = vrot.slane %v11294_v24, %v11236_v21  ;;  %v4815_v36 = vsel %vm11141_vm11, %v4814_v34, %v10185_v63  ;;  %v11300_v24 = vld [vmem:[#allocation9_spill] sm:$0xff] }
 0x6f1   :  { %5750 = vrot.lane.b32.xlu0 %v5717_v15, %s7238_s28  ;;  %v5649_v0 = vcombine.high %v10341_v44, %v11229_v3  ;;  %v11291_v15 = vcombine.low %v11289_v61, %v11290_v49  ;;  %v5971_v47 = vcombine.high %v10356_v40, %v11229_v3  ;;  %v4816_v49 = vsel %vm11138_vm12, %v4815_v36, %v4795_v10  ;;  %v11298_v10 = vld [vmem:[#allocation42_spill] sm:$0xff] }
 0x6f2   :  { %v5519_v2 = vpop.permute.xlu1 %5518  ;;  %v5247_v61 = vcombine.high %v10390_v48, %v11229_v3 }
 0x6f3   :  { %v5540_v26 = vsel %vm11138_vm12, %v5539_v23, %v5519_v2  ;;  %v5527_v56 = vpop.permute.xlu0 %5526  ;;  %v10367_v25 = vrot.slane %v11291_v15, %v11236_v21  ;;  %v11296_v15 = vld [vmem:[#allocation37_spill] sm:$0xff] }
 0x6f4   :  { %v5541_v30 = vsel %vm11140_vm13, %v5540_v26, %v10204_v52  ;;  %4304 = vrot.lane.b32.xlu1 %v4210_v5, %s7233_s23  ;;  %v5534_v52 = vsel %vm11140_vm13, %v5533_v9, %v10223_v59  ;;  %v11295_v26 = vld [vmem:[#allocation24_spill] sm:$0xff]  ;;  %v5972_v9 = vcombine.high %v11296_v15, %v11229_v3 }
 0x6f5   :  { %v5542_v39 = vsel %vm11139_vm14, %v5541_v30, %v5527_v56  ;;  %5722 = vrot.lane.b32.xlu0 %v5649_v0, %s7238_s28  ;;  %v5903_v5 = vcombine.high %v10367_v25, %v11229_v3  ;;  %v5718_v56 = vcombine.high %v11295_v26, %v11229_v3  ;;  %v11297_v30 = vcombine.low %v9943_v27, %v9946_v20  ;;  %v11301_v26 = vld [vmem:[#allocation43_spill] sm:$0xff] }
 0x6f6   :  { %5544 = vst [vmem:[#allocation3 + $0x20] sm:$0xf] %v5542_v39  ;;  %v10378_v23 = vpop.permute.xlu1 %4284  ;;  %v4817_v39 = vsel %vm11140_vm13, %v4816_v49, %v10229_v29  ;;  %v11299_v29 = vld [vmem:[#allocation40_spill] sm:$0xff]  ;;  %v5719_v49 = vcombine.high %v10074_v50, %v11229_v3  ;;  %v5973_v50 = vcombine.high %v10108_v14, %v11229_v3 }
 0x6f7   :  { %v5499_v2 = vpop.permute.xlu0 %5498  ;;  %v10416_v51 = vrot.slane %v11297_v30, %v11236_v21  ;;  %v5904_v16 = vcombine.high %v11299_v29, %v11229_v3  ;;  %v5000_v29 = vcombine.high %v10129_v31, %v11229_v3 }
 0x6f8   :  { %v5535_v55 = vsel %vm11139_vm14, %v5534_v52, %v5499_v2  ;;  %6004 = vrot.lane.b32.xlu1 %v5971_v47, %s7238_s28  ;;  %v5650_v47 = vcombine.high %v11298_v10, %v11229_v3 }
 0x6f9   :  { %5543 = vst [vmem:[#allocation3 + $0x8] sm:$0xf] %v5535_v55  ;;  %5976 = vrot.lane.b32.xlu0 %v5903_v5, %s7238_s28  ;;  %v4999_v27 = vcombine.high %v10416_v51, %v11229_v3  ;;  %v5248_v55 = vcombine.high %v11300_v24, %v11229_v3  ;;  %v4276_v24 = vcombine.high %v10207_v11, %v11229_v3 }
 0x6fa   :  { %v10397_v59 = vpop.permute.xlu1 %4538  ;;  %v5720_v11 = vcombine.high %v10166_v53, %v11229_v3  ;;  %v5974_v53 = vcombine.high %v10188_v32, %v11229_v3  ;;  %v4277_v32 = vcombine.high %v10249_v22, %v11229_v3 }
 0x6fb   :  { %v10401_v0 = vpop.permute.xlu0 %4068 }
 0x6fc   :  { %5758 = vrot.lane.b32.xlu1 %v5718_v56, %s7237_s27  ;;  %v5651_v56 = vcombine.high %v11301_v26, %v11229_v3 }
 0x6fd   :  { %5280 = vrot.lane.b32.xlu0 %v5247_v61, %s7238_s28 }
 0x6fe   :  { %v10408_v63 = vpop.permute.xlu1 %5016 }
 0x6ff   :  { %v4803_v34 = vpop.permute.xlu0 %4802 }
 0x700   :  { %v4818_v52 = vsel %vm11139_vm14, %v4817_v39, %v4803_v34  ;;  %6012 = vrot.lane.b32.xlu1 %v5972_v9, %s7237_s27  ;;  %v11302_v9 = vld [vmem:[#allocation44_spill] sm:$0xff]  ;;  %v11303_v39 = vcombine.low %v10018_v41, %v10021_v45 }
 0x701   :  { %v4822_v2 = vrot.slane %v4818_v52, 4  ;;  %5730 = vrot.lane.b32.xlu0 %v5650_v47, %s7237_s27  ;;  %v5905_v30 = vcombine.high %v11302_v9, %v11229_v3  ;;  %v11304_v47 = vcombine.low %v10080_v4, %v10083_v60  ;;  %v5652_v4 = vcombine.high %v10136_v58, %v11229_v3 }
 0x702   :  { %v10425_v5 = vpop.permute.xlu1 %5272  ;;  %v10457_v34 = vrot.slane %v11303_v39, %v11236_v21  ;;  %v5249_v58 = vcombine.high %v10147_v57, %v11229_v3  ;;  %v5001_v9 = vcombine.high %v10242_v54, %v11229_v3  ;;  %v10517_v57 = vld [vmem:[%s11052_s7] sm:$0xf] }
 0x703   :  { %4826 = vst [vmem:[#allocation3 + $0x10] sm:$0xf0] %v4822_v2  ;;  %v10429_v20 = vpop.permute.xlu0 %4076  ;;  %v10469_v52 = vrot.slane %v11304_v47, %v11236_v21  ;;  %11305 = vst [vmem:[#allocation18_spill] sm:$0xff] %v10517_v57  ;;  %7070 = vmatmul.mubr.msk.f32.vlgmr.msra.gmra.mxu0 %vm3093_vm7, %v10517_v57  ;;  %v11310_v57 = vld [vmem:[#allocation28_spill] sm:$0xff] }
 0x704   :  { %5032 = vrot.lane.b32.xlu1 %v4999_v27, %s7238_s28  ;;  %v4275_v41 = vcombine.high %v10457_v34, %v11229_v3  ;;  %7074 = vmatprep.mubr.msk.f32.mxu0 %vm7244_vm5, %v11229_v3 }
 0x705   :  { %5984 = vrot.lane.b32.xlu0 %v5904_v16, %s7237_s27  ;;  %v4529_v14 = vcombine.high %v10469_v52, %v11229_v3 }
 0x706   :  { %v10435_v35 = vpop.permute.xlu1 %4292 }
 0x707   :  { %v10439_v36 = vpop.permute.xlu0 %5256 }
 0x708   :  { %5288 = vrot.lane.b32.xlu1 %v5248_v55, %s7237_s27 }
 0x709   :  { %5738 = vrot.lane.b32.xlu0 %v5651_v56, %s7235_s25  ;;  %v4530_v56 = vcombine.high %v10226_v17, %v11229_v3 }
 0x70a   :  { %v10445_v61 = vpop.permute.xlu1 %4546 }
 0x70b   :  { %v10449_v15 = vpop.permute.xlu0 %5008 }
 0x70c   :  { %5766 = vrot.lane.b32.xlu1 %v5719_v49, %s7235_s25 }
 0x70d   :  { %5992 = vrot.lane.b32.xlu0 %v5905_v30, %s7235_s25  ;;  %v5250_v30 = vcombine.high %v10258_v18, %v11229_v3 }
 0x70e   :  { %v10461_v10 = vpop.permute.xlu1 %5024 }
 0x70f   :  { %v10471_v2 = vpop.permute.xlu0 %5264 }
 0x710   :  { %6020 = vrot.lane.b32.xlu1 %v5973_v50, %s7235_s25  ;;  %v5906_v50 = vcombine.high %v10150_v13, %v11229_v3 }
 0x711   :  { %4308 = vrot.lane.b32.xlu0 %v4275_v41, %s7238_s28 }
 0x712   :  { %v10477_v45 = vpop.permute.xlu1 %4300 }
 0x713   :  { %v10481_v27 = vpop.permute.xlu0 %5726 }
 0x714   :  { %4562 = vrot.lane.b32.xlu1 %v4529_v14, %s7238_s28  ;;  %v4531_v14 = vcombine.high %v10264_v1, %v11229_v3 }
 0x715   :  { %5746 = vrot.lane.b32.xlu0 %v5652_v4, %s7233_s23  ;;  %v11306_v4 = vld [vmem:[#allocation35_spill] sm:$0xff] }
 0x716   :  { %v10487_v60 = vpop.permute.xlu1 %4554  ;;  %v4030_v22 = vcombine.high %v11306_v4, %v11229_v3 }
 0x717   :  { %v10491_v16 = vpop.permute.xlu0 %5980 }
 0x718   :  { %5040 = vrot.lane.b32.xlu1 %v5000_v29, %s7237_s27 }
 0x719   :  { %4316 = vrot.lane.b32.xlu0 %v4276_v24, %s7237_s27  ;;  %v5002_v24 = vcombine.high %v10278_v33, %v11229_v3 }
 0x71a   :  { %v10497_v55 = vpop.permute.xlu1 %5754 }
 0x71b   :  { %v5253_v26 = vpop.permute.xlu0 %5252 }
 0x71c   :  { %5296 = vrot.lane.b32.xlu1 %v5249_v58, %s7235_s25 }
 0x71d   :  { %4570 = vrot.lane.b32.xlu0 %v4530_v56, %s7237_s27 }
 0x71e   :  { %v10505_v31 = vpop.permute.xlu1 %6008 }
 0x71f   :  { %v10509_v49 = vpop.permute.xlu0 %5734 }
 0x720   :  { %5774 = vrot.lane.b32.xlu1 %v5720_v11, %s7233_s23 }
 0x721   :  { %5048 = vrot.lane.b32.xlu0 %v5001_v9, %s7235_s25  ;;  %v4532_v9 = vcombine.high %v10299_v37, %v11229_v3 }
 0x722   :  { %v10522_v17 = vpop.permute.xlu1 %5284 }
 0x723   :  { %v10528_v54 = vpop.permute.xlu0 %5988 }
 0x724   :  { %6028 = vrot.lane.b32.xlu1 %v5974_v53, %s7233_s23 }
 0x725   :  { %5304 = vrot.lane.b32.xlu0 %v5250_v30, %s7233_s23  ;;  %v11307_v30 = vld [vmem:[#allocation36_spill] sm:$0xff] }
 0x726   :  { %v10534_v39 = vpop.permute.xlu1 %5762 }
 0x727   :  { %v5005_v47 = vpop.permute.xlu0 %5004 }
 0x728   :  { %6000 = vrot.lane.b32.xlu1 %v5906_v50, %s7233_s23  ;;  %v3962_v50 = vcombine.high %v11307_v30, %v11229_v3  ;;  %v5307_v30 = vsel %vm609_vm8, %v11310_v57, %v5253_v26 }
 0x729   :  { %4324 = vrot.lane.b32.xlu0 %v4277_v32, %s7235_s25  ;;  %v5308_v12 = vsel %vm611_vm9, %v5307_v30, %v10439_v36 }
 0x72a   :  { %v10542_v41 = vpop.permute.xlu1 %6016 }
 0x72b   :  { %v5261_v18 = vpop.permute.xlu0 %5260 }
 0x72c   :  { %3179 = vrot.lane.b32.xlu1 %v10097_v42, %s7233_s23  ;;  %v4278_v42 = vcombine.high %v10289_v38, %v11229_v3  ;;  %v5309_v43 = vsel %vm613_vm10, %v5308_v12, %v5261_v18  ;;  %v11312_v18 = vld [vmem:[#allocation47_spill] sm:$0xff] }
 0x72d   :  { %4578 = vrot.lane.b32.xlu0 %v4531_v14, %s7235_s25  ;;  %v5310_v26 = vsel %vm11141_vm11, %v5309_v43, %v10471_v2 }
 0x72e   :  { %v10549_v13 = vpop.permute.xlu1 %5036 }
 0x72f   :  { %v10553_v29 = vpop.permute.xlu0 %5742 }
 0x730   :  { %4084 = vrot.lane.b32.xlu1 %v4030_v22, %s7233_s23 }
 0x731   :  { %5056 = vrot.lane.b32.xlu0 %v5002_v24, %s7233_s23 }
 0x732   :  { %v10559_v1 = vpop.permute.xlu1 %5292 }
 0x733   :  { %v10561_v58 = vpop.permute.xlu0 %5996 }
 0x735   :  { %4332 = vrot.lane.b32.xlu0 %v4278_v42, %s7233_s23 }
 0x736   :  { %v10566_v56 = vpop.permute.xlu1 %5770 }
 0x737   :  { %v4281_v11 = vpop.permute.xlu0 %4280 }
 0x739   :  { %4586 = vrot.lane.b32.xlu0 %v4532_v9, %s7233_s23 }
 0x73a   :  { %v10571_v33 = vpop.permute.xlu1 %6024 }
 0x73b   :  { %v4535_v53 = vpop.permute.xlu0 %4534 }
 0x73d   :  { %4056 = vrot.lane.b32.xlu0 %v3962_v50, %s7233_s23  ;;  %v5059_v50 = vsel %vm609_vm8, %v10064_v6, %v5005_v47 }
 0x73e   :  { %v10576_v32 = vpop.permute.xlu1 %4312  ;;  %v5060_v46 = vsel %vm611_vm9, %v5059_v50, %v10449_v15 }
 0x73f   :  { %v5013_v38 = vpop.permute.xlu0 %5012 }
 0x742   :  { %v10578_v14 = vpop.permute.xlu1 %4566 }
 0x743   :  { %v5269_v4 = vpop.permute.xlu0 %5268 }
 0x746   :  { %v10580_v22 = vpop.permute.xlu1 %5044 }
 0x747   :  { %v10582_v24 = vpop.permute.xlu0 %4320 }
 0x748   :  { %11308 = vst [vmem:[#allocation26_spill] sm:$0xff] %v10582_v24 }
 0x74a   :  { %v10584_v37 = vpop.permute.xlu1 %5300 }
 0x74b   :  { %v10586_v42 = vpop.permute.xlu0 %4574 }
 0x74c   :  { %11309 = vst [vmem:[#allocation15_spill] sm:$0xff] %v10586_v42  ;;  %v5061_v42 = vsel %vm613_vm10, %v5060_v46, %v5013_v38  ;;  %v4335_v46 = vsel %vm609_vm8, %v11312_v18, %v4281_v11  ;;  %v11313_v38 = vld [vmem:[#allocation48_spill] sm:$0xff] }
 0x74d   :  { %v5062_v6 = vsel %vm11141_vm11, %v5061_v42, %v10408_v63  ;;  %v4589_v43 = vsel %vm609_vm8, %v11313_v38, %v4535_v53  ;;  %v4336_v50 = vsel %vm611_vm9, %v4335_v46, %v10378_v23 }
 0x74e   :  { %v4289_v9 = vpop.permute.xlu1 %4288 }
 0x74f   :  { %v10590_v21 = vpop.permute.xlu0 %5052  ;;  %v4337_v11 = vsel %vm613_vm10, %v4336_v50, %v4289_v9 }
 0x750   :  { %11311 = vst [vmem:[#allocation13_spill] sm:$0xff] %v10590_v21  ;;  %v5311_v21 = vsel %vm11138_vm12, %v5310_v26, %v5269_v4 }
 0x751   :  { %v5312_v15 = vsel %vm11140_vm13, %v5311_v21, %v10425_v5  ;;  %v4590_v21 = vsel %vm611_vm9, %v4589_v43, %v10397_v59 }
 0x752   :  { %v4543_v8 = vpop.permute.xlu1 %4542 }
 0x753   :  { %v10599_v24 = vpop.permute.xlu0 %4328  ;;  %v4591_v53 = vsel %vm613_vm10, %v4590_v21, %v4543_v8 }
 0x756   :  { %v5021_v57 = vpop.permute.xlu1 %5020 }
 0x757   :  { %v10607_v36 = vpop.permute.xlu0 %4582  ;;  %v5063_v12 = vsel %vm11138_vm12, %v5062_v6, %v5021_v57  ;;  %v4592_v6 = vsel %vm11141_vm11, %v4591_v53, %v10445_v61 }
 0x758   :  { %v5064_v4 = vsel %vm11140_vm13, %v5063_v12, %v10461_v10  ;;  %v4338_v10 = vsel %vm11141_vm11, %v4337_v11, %v10435_v35 }
 0x75a   :  { %v5277_v47 = vpop.permute.xlu1 %5276 }
 0x75b   :  { %v5313_v2 = vsel %vm11139_vm14, %v5312_v15, %v5277_v47  ;;  %v5029_v63 = vpop.permute.xlu0 %5028 }
 0x75c   :  { %v5323_v42 = vrot.slane %v5313_v2, 4  ;;  %v5065_v30 = vsel %vm11139_vm14, %v5064_v4, %v5029_v63 }
 0x75d   :  { %5073 = vst [vmem:[#allocation3 + $0x48] sm:$0xf] %v5065_v30 }
 0x75e   :  { %5327 = vst [vmem:[#allocation3 + $0x48] sm:$0xf0] %v5323_v42  ;;  %v4297_v5 = vpop.permute.xlu1 %4296 }
 0x75f   :  { %v4559_v26 = vpop.permute.xlu0 %4558  ;;  %v4339_v12 = vsel %vm11138_vm12, %v4338_v10, %v4297_v5 }
 0x760   :  { %v4340_v15 = vsel %vm11140_vm13, %v4339_v12, %v10477_v45 }
 0x762   :  { %v4551_v57 = vpop.permute.xlu1 %4550 }
 0x763   :  { %v4593_v23 = vsel %vm11138_vm12, %v4592_v6, %v4551_v57  ;;  %v5751_v47 = vpop.permute.xlu0 %5750 }
 0x764   :  { %v4594_v59 = vsel %vm11140_vm13, %v4593_v23, %v10487_v60  ;;  %v5784_v23 = vsel %vm609_vm8, %v10322_v62, %v5751_v47 }
 0x765   :  { %v4595_v9 = vsel %vm11139_vm14, %v4594_v59, %v4559_v26 }
 0x766   :  { %4603 = vst [vmem:[#allocation3 + $0x18] sm:$0xf] %v4595_v9  ;;  %v4305_v8 = vpop.permute.xlu1 %4304 }
 0x767   :  { %v4341_v35 = vsel %vm11139_vm14, %v4340_v15, %v4305_v8  ;;  %v5723_v18 = vpop.permute.xlu0 %5722  ;;  %v5785_v8 = vsel %vm611_vm9, %v5784_v23, %v10497_v55  ;;  %v11315_v23 = vld [vmem:[#allocation49_spill] sm:$0xff] }
 0x768   :  { %v4351_v46 = vrot.slane %v4341_v35, 4  ;;  %v5777_v21 = vsel %vm609_vm8, %v10341_v44, %v5723_v18 }
 0x769   :  { %v5778_v45 = vsel %vm611_vm9, %v5777_v21, %v10481_v27 }
 0x76a   :  { %4355 = vst [vmem:[#allocation3 + $0x30] sm:$0xf0] %v4351_v46  ;;  %v6005_v61 = vpop.permute.xlu1 %6004 }
 0x76b   :  { %v5977_v38 = vpop.permute.xlu0 %5976 }
 0x76c   :  { %v6031_v55 = vsel %vm609_vm8, %v10367_v25, %v5977_v38 }
 0x76e   :  { %v5759_v43 = vpop.permute.xlu1 %5758 }
 0x76f   :  { %v5281_v2 = vpop.permute.xlu0 %5280  ;;  %v5786_v35 = vsel %vm613_vm10, %v5785_v8, %v5759_v43 }
 0x770   :  { %v5314_v62 = vsel %vm609_vm8, %v10390_v48, %v5281_v2  ;;  %v5787_v47 = vsel %vm11141_vm11, %v5786_v35, %v10534_v39 }
 0x772   :  { %v6013_v4 = vpop.permute.xlu1 %6012 }
 0x773   :  { %v5731_v63 = vpop.permute.xlu0 %5730 }
 0x774   :  { %v5779_v53 = vsel %vm613_vm10, %v5778_v45, %v5731_v63 }
 0x775   :  { %v5780_v10 = vsel %vm11141_vm11, %v5779_v53, %v10509_v49  ;;  %v6038_v49 = vsel %vm609_vm8, %v10356_v40, %v6005_v61  ;;  %v5315_v40 = vsel %vm611_vm9, %v5314_v62, %v10522_v17 }
 0x776   :  { %v5033_v42 = vpop.permute.xlu1 %5032 }
 0x777   :  { %v5985_v60 = vpop.permute.xlu0 %5984 }
 0x77a   :  { %v5289_v30 = vpop.permute.xlu1 %5288 }
 0x77b   :  { %v5739_v50 = vpop.permute.xlu0 %5738  ;;  %v5316_v48 = vsel %vm613_vm10, %v5315_v40, %v5289_v30  ;;  %v11319_v40 = vld [vmem:[#allocation38_spill] sm:$0xff] }
 0x77c   :  { %v5781_v6 = vsel %vm11138_vm12, %v5780_v10, %v5739_v50  ;;  %v5317_v17 = vsel %vm11141_vm11, %v5316_v48, %v10559_v1 }
 0x77d   :  { %v5782_v44 = vsel %vm11140_vm13, %v5781_v6, %v10553_v29  ;;  %v6039_v29 = vsel %vm611_vm9, %v6038_v49, %v10505_v31  ;;  %v6032_v31 = vsel %vm611_vm9, %v6031_v55, %v10491_v16 }
 0x77e   :  { %v5767_v5 = vpop.permute.xlu1 %5766  ;;  %v6040_v63 = vsel %vm613_vm10, %v6039_v29, %v6013_v4  ;;  %v6033_v38 = vsel %vm613_vm10, %v6032_v31, %v5985_v60  ;;  %v11314_v60 = vld [vmem:[#allocation25_spill] sm:$0xff]  ;;  %v11316_v29 = vld [vmem:[#allocation26_spill] sm:$0xff] }
 0x77f   :  { %v5993_v11 = vpop.permute.xlu0 %5992  ;;  %v5788_v61 = vsel %vm11138_vm12, %v5787_v47, %v5767_v5  ;;  %v6041_v39 = vsel %vm11141_vm11, %v6040_v63, %v10542_v41  ;;  %v6034_v41 = vsel %vm11141_vm11, %v6033_v38, %v10528_v54  ;;  %v4094_v45 = vsel %vm609_vm8, %v11314_v60, %v10314_v7  ;;  %v11318_v63 = vld [vmem:[#allocation50_spill] sm:$0xff]  ;;  %v11321_v38 = vld [vmem:[#allocation15_spill] sm:$0xff] }
 0x780   :  { %v5789_v25 = vsel %vm11140_vm13, %v5788_v61, %v10566_v56  ;;  %v6035_v1 = vsel %vm11138_vm12, %v6034_v41, %v5993_v11  ;;  %v5066_v54 = vsel %vm609_vm8, %v10416_v51, %v5033_v42  ;;  %v4087_v61 = vsel %vm609_vm8, %v11319_v40, %v11318_v63 }
 0x781   :  { %v6036_v7 = vsel %vm11140_vm13, %v6035_v1, %v10561_v58  ;;  %v10712_v58 = vld [vmem:[%s11054_s9] sm:$0xf]  ;;  %v11324_v1 = vld [vmem:[#allocation52_spill] sm:$0xff] }
 0x782   :  { %v6021_v26 = vpop.permute.xlu1 %6020 }
 0x783   :  { %v4309_v57 = vpop.permute.xlu0 %4308  ;;  %v6042_v4 = vsel %vm11138_vm12, %v6041_v39, %v6021_v26 }
 0x784   :  { %v6043_v56 = vsel %vm11140_vm13, %v6042_v4, %v10571_v33 }
 0x786   :  { %v10646_v12 = vpop.permute.xlu1 %4562 }
 0x787   :  { %v5747_v59 = vpop.permute.xlu0 %5746  ;;  %v4596_v35 = vsel %vm609_vm8, %v10469_v52, %v10646_v12 }
 0x788   :  { %v5783_v27 = vsel %vm11139_vm14, %v5782_v44, %v5747_v59  ;;  %v4095_v44 = vsel %vm611_vm9, %v4094_v45, %v11315_v23 }
 0x789   :  { %v5793_v9 = vrot.slane %v5783_v27, 4  ;;  %v4096_v11 = vsel %vm613_vm10, %v4095_v44, %v10401_v0  ;;  %v4342_v27 = vsel %vm609_vm8, %v10457_v34, %v4309_v57 }
 0x78a   :  { %v5041_v15 = vpop.permute.xlu1 %5040  ;;  %v4097_v0 = vsel %vm11141_vm11, %v4096_v11, %v10246_v28  ;;  %v4343_v49 = vsel %vm611_vm9, %v4342_v27, %v10576_v32  ;;  %v7204_v11 = vld [vmem:[%s11048_s3] sm:$0xf] }
 0x78b   :  { %5797 = vst [vmem:[#allocation3 + $0x8] sm:$0xf0] %v5793_v9  ;;  %v4317_v18 = vpop.permute.xlu0 %4316 }
 0x78c   :  { %v4344_v62 = vsel %vm613_vm10, %v4343_v49, %v4317_v18  ;;  %v11317_v18 = vld [vmem:[#allocation13_spill] sm:$0xff] }
 0x78d   :  { %v4345_v52 = vsel %vm11141_vm11, %v4344_v62, %v11316_v29 }
 0x78e   :  { %v5297_v46 = vpop.permute.xlu1 %5296 }
 0x78f   :  { %v4571_v43 = vpop.permute.xlu0 %4570  ;;  %v5318_v21 = vsel %vm11138_vm12, %v5317_v17, %v5297_v46 }
 0x790   :  { %v5319_v26 = vsel %vm11140_vm13, %v5318_v21, %v10584_v37  ;;  %v5067_v37 = vsel %vm611_vm9, %v5066_v54, %v10549_v13  ;;  %v4098_v13 = vsel %vm11138_vm12, %v4097_v0, %v10429_v20  ;;  %v11325_v54 = vld [vmem:[#allocation46_spill] sm:$0xff]  ;;  %v11327_v0 = vld [vmem:[#allocation21_spill] sm:$0xff] }
 0x791   :  { %v5068_v9 = vsel %vm613_vm10, %v5067_v37, %v5041_v15  ;;  %v4099_v32 = vsel %vm11140_vm13, %v4098_v13, %v10261_v19 }
 0x792   :  { %v5775_v2 = vpop.permute.xlu1 %5774  ;;  %v5069_v34 = vsel %vm11141_vm11, %v5068_v9, %v10580_v22  ;;  %v4597_v22 = vsel %vm611_vm9, %v4596_v35, %v10578_v14  ;;  %v6053_v39 = vld [vmem:[#allocation3 + $0x8] sm:$0xff] }
 0x793   :  { %v5790_v50 = vsel %vm11139_vm14, %v5789_v25, %v5775_v2  ;;  %v5049_v30 = vpop.permute.xlu0 %5048  ;;  %v4598_v48 = vsel %vm613_vm10, %v4597_v22, %v4571_v43  ;;  %v11320_v2 = vld [vmem:[#allocation41_spill] sm:$0xff] }
 0x794   :  { %v5794_v16 = vrot.slane %v5790_v50, 4  ;;  %v5070_v28 = vsel %vm11138_vm12, %v5069_v34, %v5049_v30  ;;  %v4088_v25 = vsel %vm611_vm9, %v4087_v61, %v11320_v2  ;;  %v4599_v4 = vsel %vm11141_vm11, %v4598_v48, %v11321_v38  ;;  %v11322_v50 = vld [vmem:[#allocation51_spill] sm:$0xff] }
 0x795   :  { %v5071_v47 = vsel %vm11140_vm13, %v5070_v28, %v11317_v18  ;;  %v4089_v30 = vsel %vm613_vm10, %v4088_v25, %v11322_v50  ;;  %v11328_v61 = vld [vmem:[#allocation11_spill] sm:$0xff] }
 0x796   :  { %5798 = vst [vmem:[#allocation3 + $0x20] sm:$0xf0] %v5794_v16  ;;  %v6029_v5 = vpop.permute.xlu1 %6028 }
 0x797   :  { %v6044_v53 = vsel %vm11139_vm14, %v6043_v56, %v6029_v5  ;;  %v5305_v10 = vpop.permute.xlu0 %5304  ;;  %v11323_v56 = vld [vmem:[#allocation45_spill] sm:$0xff] }
 0x798   :  { %6046 = vst [vmem:[#allocation3 + $0x38] sm:$0xf] %v6044_v53  ;;  %v5320_v6 = vsel %vm11139_vm14, %v5319_v26, %v5305_v10  ;;  %v4090_v5 = vsel %vm11141_vm11, %v4089_v30, %v11323_v56  ;;  %v6051_v10 = vld [vmem:[#allocation3 + $0x48] sm:$0xff] }
 0x799   :  { %v5324_v33 = vrot.slane %v5320_v6, 4  ;;  %v11329_v56 = vld [vmem:[#allocation12_spill] sm:$0xff] }
 0x79a   :  { %v6001_v59 = vpop.permute.xlu1 %6000 }
 0x79b   :  { %5328 = vst [vmem:[#allocation3 + $0x28] sm:$0xf0] %v5324_v33  ;;  %v6037_v51 = vsel %vm11139_vm14, %v6036_v7, %v6001_v59  ;;  %v4325_v42 = vpop.permute.xlu0 %4324 }
 0x79c   :  { %6045 = vst [vmem:[#allocation3 + $0x40] sm:$0xf] %v6037_v51  ;;  %v4346_v19 = vsel %vm11138_vm12, %v4345_v52, %v4325_v42 }
 0x79d   :  { %v6054_v31 = vld [vmem:[#allocation3 + $0x20] sm:$0xff]  ;;  %v4347_v43 = vsel %vm11140_vm13, %v4346_v19, %v10599_v24  ;;  %v4091_v24 = vsel %vm11138_vm12, %v4090_v5, %v11324_v1 }
 0x79e   :  { %v3180_v8 = vpop.permute.xlu1 %3179  ;;  %v4092_v6 = vsel %vm11140_vm13, %v4091_v24, %v11325_v54 }
 0x79f   :  { %v4579_v57 = vpop.permute.xlu0 %4578  ;;  %7073 = vmatpush3.msra.mxu0 %v3180_v8  ;;  %v6056_v15 = vld [vmem:[#allocation3 + $0x38] sm:$0xf] }
 0x7a0   :  { %7039 = vmatprep.subr.msk.mxu0 %vm98_vm0, %v6056_v15  ;;  %7075 = vmatmul.mubr.msk.f32.vlgmr.msra.gmra.mxu0 %vm3093_vm7, %v10712_v58  ;;  %v4600_v21 = vsel %vm11138_vm12, %v4599_v4, %v4579_v57  ;;  %vm11326_vm12 = vcmask 293888  }
 0x7a1   :  { %6127 = vmatprep.mubr.f32.mxu0 %v11229_v3  ;;  %v4601_v60 = vsel %vm11140_vm13, %v4600_v21, %v10607_v36  ;;  %v6049_v36 = vld [vmem:[#allocation3 + $0x18] sm:$0xff] }
 0x7a2   :  { %v4085_v20 = vpop.permute.xlu1 %4084 }
 0x7a3   :  { %v4100_v12 = vsel %vm11139_vm14, %v4099_v32, %v4085_v20  ;;  %v5057_v46 = vpop.permute.xlu0 %5056  ;;  %v6055_v55 = vld [vmem:[#allocation3 + $0x40] sm:$0xf] }
 0x7a4   :  { %4102 = vst [vmem:[#allocation3] sm:$0xf] %v4100_v12  ;;  %v5072_v14 = vsel %vm11139_vm14, %v5071_v47, %v5057_v46  ;;  %7040 = vmatpush1.msk.msra.mxu0 %vm98_vm0, %v6055_v55 }
 0x7a5   :  { %5074 = vst [vmem:[#allocation3 + $0x28] sm:$0xf] %v5072_v14  ;;  %6087 = vmatprep.subr.mxu0 %v6054_v31 }
 0x7a6   :  { %6088 = vmatpush1.msra.mxu0 %v6053_v39 }
 0x7a7   :  { %v4333_v17 = vpop.permute.xlu0 %4332 }
 0x7a8   :  { %v4348_v16 = vsel %vm11139_vm14, %v4347_v43, %v4333_v17 }
 0x7a9   :  { %v4352_v41 = vrot.slane %v4348_v16, 4 }
 0x7ab   :  { %4356 = vst [vmem:[#allocation3] sm:$0xf0] %v4352_v41  ;;  %v4587_v45 = vpop.permute.xlu0 %4586 }
 0x7ac   :  { %v4602_v53 = vsel %vm11139_vm14, %v4601_v60, %v4587_v45  ;;  %v6052_v26 = vld [vmem:[#allocation3 + $0x28] sm:$0xff] }
 0x7ad   :  { %4604 = vst [vmem:[#allocation3 + $0x10] sm:$0xf] %v4602_v53  ;;  %6089 = vmatprep.subr.mxu0 %v6052_v26 }
 0x7ae   :  { %6090 = vmatpush1.msra.mxu0 %v6051_v10 }
 0x7af   :  { %v4057_v33 = vpop.permute.xlu0 %4056 }
 0x7b0   :  { %v4093_v23 = vsel %vm11139_vm14, %v4092_v6, %v4057_v33 }
 0x7b1   :  { %4101 = vst [vmem:[#allocation3 + $0x30] sm:$0xf] %v4093_v23 }
 0x7b2   :  { %v6048_v59 = vld [vmem:[#allocation3] sm:$0xff] }
 0x7b4   :  { %v6050_v44 = vld [vmem:[#allocation3 + $0x10] sm:$0xff] }
 0x7b5   :  { %6091 = vmatprep.subr.mxu0 %v6050_v44 }
 0x7b6   :  { %6092 = vmatpush1.msra.mxu0 %v6049_v36 }
 0x7b7   :  { %6093 = vmatprep.subr.mxu0 %v6048_v59 }
 0x7b8   :  { %v6047_v7 = vld [vmem:[#allocation3 + $0x30] sm:$0xff] }
 0x7b9   :  { %6094 = vmatpush1.msra.mxu0 %v6047_v7 }
 0x7ba   :  { %7041 = vmatmul.mubr.msk.f32.vlgmr.msra.gmra.mxu0 %vm11326_vm12, %v7204_v11  ;;  %vm11332_vm12 = vcmask 130112  }
 0x7bb   :  { %vm11333_vm14 = vmmov %vm11332_vm12 }
 0x7bc   :  { %vm11334_vm13 = vmmov %vm11332_vm12 }
 0x7bd   :  { %vm11335_vm11 = vmmov %vm11332_vm12 }
 0x7c3   :  { %v10771_v37 = vpop.f32.mrf.mxu0 }
 0x7c5   :  { %v7071_v51 = vpop.f32.mrf.mxu0 }
 0x860   :  { %v10773_v42 = vpop.f32.mrf.mxu0 }
 0x862   :  { %v7076_v27 = vpop.f32.mrf.mxu0 }
 0x87a   :  { %v6129_v9 = vpop.f32.mrf.mxu0 }
 0x87b   :  { %v6130_v8 = vadd.f32 %v6129_v9, %v11327_v0 }
 0x87c   :  { %v6131_v13 = vpop.f32.mrf.mxu0 }
 0x87d   :  { %v7042_v49 = vmul.f32 -1.442695, %v6130_v8  ;;  %v6132_v34 = vadd.f32 %v6131_v13, %v11327_v0 }
 0x87f   :  { %7179 = vpow2.f32 %v7042_v49  ;;  %v7043_v57 = vmul.f32 -1.442695, %v6132_v34 }
 0x881   :  { %7181 = vpow2.f32 %v7043_v57 }
 0x88c   :  { %v7180_v15 = vpop.eup %7179 }
 0x88d   :  { %v6140_v35 = vadd.f32 1.0, %v7180_v15 }
 0x88e   :  { %v7182_v62 = vpop.eup %7181 }
 0x88f   :  { %7183 = vrcp.f32 %v6140_v35  ;;  %v6141_v28 = vadd.f32 1.0, %v7182_v62 }
 0x891   :  { %7185 = vrcp.f32 %v6141_v28 }
 0x89c   :  { %v7184_v20 = vpop.eup %7183 }
 0x89d   :  { %v10777_v32 = vmul.f32 %v7184_v20, %v6130_v8 }
 0x89e   :  { %v7186_v22 = vpop.eup %7185 }
 0x89f   :  { %6152 = vrot.lane.b32.xlu0 %v10777_v32, %s7232_s2  ;;  %6149 = vrot.lane.b32.xlu1 %v10777_v32, %s7233_s23  ;;  %v10791_v29 = vmul.f32 %v7186_v22, %v6132_v34 }
 0x8a3   :  { %6158 = vrot.lane.b32.xlu0 %v10777_v32, %s7234_s24  ;;  %6155 = vrot.lane.b32.xlu1 %v10777_v32, %s7235_s25 }
 0x8a7   :  { %6164 = vrot.lane.b32.xlu0 %v10777_v32, %s7236_s26  ;;  %6161 = vrot.lane.b32.xlu1 %v10777_v32, %s7237_s27 }
 0x8ab   :  { %6171 = vrot.lane.b32.xlu0 %v10791_v29, %s7233_s23  ;;  %6167 = vrot.lane.b32.xlu1 %v10777_v32, %s7238_s28 }
 0x8af   :  { %6177 = vrot.lane.b32.xlu0 %v10791_v29, %s7235_s25  ;;  %6174 = vrot.lane.b32.xlu1 %v10791_v29, %s7232_s2 }
 0x8b3   :  { %6183 = vrot.lane.b32.xlu0 %v10791_v29, %s7237_s27  ;;  %6180 = vrot.lane.b32.xlu1 %v10791_v29, %s7234_s24 }
 0x8b7   :  { %6189 = vrot.lane.b32.xlu0 %v10791_v29, %s7238_s28  ;;  %6186 = vrot.lane.b32.xlu1 %v10791_v29, %s7236_s26 }
 0x911   :  { %v6153_v52 = vpop.permute.xlu0 %6152  ;;  %v6150_v12 = vpop.permute.xlu1 %6149 }
 0x912   :  { %v6192_v40 = vcombine.low %v10777_v32, %v6153_v52 }
 0x914   :  { %v6199_v39 = vrot.slane %v6192_v40, %v11328_v61 }
 0x915   :  { %v6159_v18 = vpop.permute.xlu0 %6158  ;;  %v6156_v47 = vpop.permute.xlu1 %6155 }
 0x916   :  { %v6200_v46 = vcombine.low %v6150_v12, %v6156_v47 }
 0x918   :  { %v6207_v48 = vrot.slane %v6200_v46, %v11328_v61 }
 0x919   :  { %v6165_v55 = vpop.permute.xlu0 %6164  ;;  %v6162_v63 = vpop.permute.xlu1 %6161 }
 0x91a   :  { %v6208_v19 = vcombine.low %v6159_v18, %v6165_v55  ;;  %v6224_v25 = vcombine.low %v6199_v39, %v6207_v48  ;;  %v6225_v50 = vcombine.high %v6199_v39, %v6207_v48 }
 0x91c   :  { %v6215_v38 = vrot.slane %v6208_v19, %v11328_v61  ;;  %v6232_v5 = vrot.slane %v6224_v25, %v11329_v56  ;;  %v6239_v10 = vrot.slane %v6225_v50, %v11329_v56 }
 0x91d   :  { %v6172_v14 = vpop.permute.xlu0 %6171  ;;  %v6168_v31 = vpop.permute.xlu1 %6167 }
 0x91e   :  { %v6216_v2 = vcombine.low %v6162_v63, %v6168_v31 }
 0x920   :  { %v6223_v4 = vrot.slane %v6216_v2, %v11328_v61 }
 0x921   :  { %v6178_v43 = vpop.permute.xlu0 %6177  ;;  %v6175_v17 = vpop.permute.xlu1 %6174 }
 0x922   :  { %v6240_v30 = vcombine.low %v6215_v38, %v6223_v4  ;;  %v6241_v21 = vcombine.high %v6215_v38, %v6223_v4  ;;  %v6268_v16 = vcombine.low %v6172_v14, %v6178_v43  ;;  %v6260_v41 = vcombine.low %v10791_v29, %v6175_v17 }
 0x924   :  { %v6248_v60 = vrot.slane %v6240_v30, %v11329_v56  ;;  %v6255_v45 = vrot.slane %v6241_v21, %v11329_v56  ;;  %v6275_v54 = vrot.slane %v6268_v16, %v11328_v61  ;;  %v6267_v6 = vrot.slane %v6260_v41, %v11328_v61 }
 0x925   :  { %v6184_v1 = vpop.permute.xlu0 %6183  ;;  %v6181_v24 = vpop.permute.xlu1 %6180 }
 0x926   :  { %v6257_v53 = vcombine.high %v6232_v5, %v6248_v60  ;;  %v6256_v26 = vcombine.low %v6232_v5, %v6248_v60  ;;  %v6258_v44 = vcombine.low %v6239_v10, %v6255_v45  ;;  %v6292_v51 = vcombine.low %v6267_v6, %v6275_v54 }
 0x927   :  { %v6293_v27 = vcombine.high %v6267_v6, %v6275_v54  ;;  %v6259_v13 = vcombine.high %v6239_v10, %v6255_v45 }
 0x928   :  { %v6334_v33 = vsel %vm609_vm8, %v6257_v53, 0.0  ;;  %v6328_v23 = vsel %vm609_vm8, %v6256_v26, 0.0  ;;  %v6340_v8 = vsel %vm609_vm8, %v6258_v44, 0.0  ;;  %v6300_v57 = vrot.slane %v6292_v51, %v11329_v56  ;;  %v85_v51 = vld [vmem:[%s11055_s10] sm:$0xf] }
 0x929   :  { %v6190_v36 = vpop.permute.xlu0 %6189  ;;  %6335 = vadd.xlane.f32.xlu0 %v6334_v33  ;;  %6329 = vadd.xlane.f32.xlu1 %v6328_v23  ;;  %v6187_v59 = vpop.permute.xlu1 %6186  ;;  %v6346_v15 = vsel %vm609_vm8, %v6259_v13, 0.0  ;;  %v6307_v62 = vrot.slane %v6293_v27, %v11329_v56 }
 0x92a   :  { %v6284_v7 = vcombine.low %v6184_v1, %v6190_v36  ;;  %v6276_v11 = vcombine.low %v6181_v24, %v6187_v59 }
 0x92c   :  { %v6291_v9 = vrot.slane %v6284_v7, %v11328_v61  ;;  %v6283_v0 = vrot.slane %v6276_v11, %v11328_v61 }
 0x92d   :  { %6341 = vadd.xlane.f32.xlu0 %v6340_v8 }
 0x92e   :  { %v6308_v49 = vcombine.low %v6283_v0, %v6291_v9  ;;  %v6309_v34 = vcombine.high %v6283_v0, %v6291_v9 }
 0x930   :  { %v6316_v35 = vrot.slane %v6308_v49, %v11329_v56  ;;  %v6323_v28 = vrot.slane %v6309_v34, %v11329_v56 }
 0x931   :  { %6347 = vadd.xlane.f32.xlu0 %v6346_v15 }
 0x932   :  { %v6325_v20 = vcombine.high %v6300_v57, %v6316_v35  ;;  %v6324_v22 = vcombine.low %v6300_v57, %v6316_v35  ;;  %v6326_v52 = vcombine.low %v6307_v62, %v6323_v28  ;;  %v6327_v12 = vcombine.high %v6307_v62, %v6323_v28 }
 0x934   :  { %v6337_v18 = vsel %vm609_vm8, %v6325_v20, 0.0  ;;  %v6331_v47 = vsel %vm609_vm8, %v6324_v22, 0.0  ;;  %v6343_v46 = vsel %vm609_vm8, %v6326_v52, 0.0  ;;  %v6349_v55 = vsel %vm609_vm8, %v6327_v12, 0.0  ;;  %v11330_v20 = vld [vmem:[#allocation32_spill] sm:$0xff] }
 0x935   :  { %6338 = vadd.xlane.f32.xlu1 %v6337_v18  ;;  %v6416_v63 = vadd.f32 %v6337_v18, %v6334_v33  ;;  %6332 = vadd.xlane.f32.xlu0 %v6331_v47  ;;  %v6409_v40 = vadd.f32 %v6331_v47, %v6328_v23  ;;  %v6423_v48 = vadd.f32 %v6343_v46, %v6340_v8  ;;  %v11331_v18 = vld [vmem:[#allocation31_spill] sm:$0xff] }
 0x936   :  { %v6430_v19 = vadd.f32 %v6349_v55, %v6346_v15 }
 0x937   :  { %v6417_v14 = vrot.slane %v6416_v63, 4  ;;  %v6410_v31 = vrot.slane %v6409_v40, 4  ;;  %v6424_v39 = vrot.slane %v6423_v48, 4 }
 0x938   :  { %v6431_v2 = vrot.slane %v6430_v19, 4 }
 0x939   :  { %v6418_v25 = vadd.f32 %v6417_v14, %v6416_v63  ;;  %v6411_v38 = vadd.f32 %v6410_v31, %v6409_v40  ;;  %v6425_v4 = vadd.f32 %v6424_v39, %v6423_v48  ;;  %6344 = vadd.xlane.f32.xlu1 %v6343_v46 }
 0x93a   :  { %v6432_v43 = vadd.f32 %v6431_v2, %v6430_v19 }
 0x93b   :  { %v6419_v17 = vrot.slane %v6418_v25, 2  ;;  %v6412_v50 = vrot.slane %v6411_v38, 2  ;;  %v6426_v30 = vrot.slane %v6425_v4, 2 }
 0x93c   :  { %v6433_v21 = vrot.slane %v6432_v43, 2 }
 0x93d   :  { %v6420_v16 = vadd.f32 %v6419_v17, %v6418_v25  ;;  %v6413_v41 = vadd.f32 %v6412_v50, %v6411_v38  ;;  %v6427_v5 = vadd.f32 %v6426_v30, %v6425_v4  ;;  %6350 = vadd.xlane.f32.xlu1 %v6349_v55 }
 0x93e   :  { %v6434_v60 = vadd.f32 %v6433_v21, %v6432_v43  ;;  %v7205_v21 = vld [vmem:[%s11050_s5] sm:$0xff] }
 0x93f   :  { %v6421_v45 = vrot.slane %v6420_v16, 1  ;;  %v6414_v1 = vrot.slane %v6413_v41, 1  ;;  %v6428_v24 = vrot.slane %v6427_v5, 1 }
 0x940   :  { %v6435_v53 = vrot.slane %v6434_v60, 1 }
 0x941   :  { %v6422_v26 = vadd.f32 %v6421_v45, %v6420_v16  ;;  %v6415_v10 = vadd.f32 %v6414_v1, %v6413_v41  ;;  %v6429_v54 = vadd.f32 %v6428_v24, %v6427_v5  ;;  %v11336_v41 = vld [vmem:[#allocation29_spill] sm:$0xff] }
 0x942   :  { %v6436_v44 = vadd.f32 %v6435_v53, %v6434_v60 }
 0x943   :  { %v6438_v6 = vmul.f32 0.0625, %v6422_v26  ;;  %v6437_v33 = vmul.f32 0.0625, %v6415_v10  ;;  %v6439_v23 = vmul.f32 0.0625, %v6429_v54  ;;  %v11337_v10 = vld [vmem:[#allocation18_spill] sm:$0xff]  ;;  %v84_v54 = vld [vmem:[%s11053_s8] sm:$0xf] }
 0x944   :  { %v6440_v7 = vmul.f32 0.0625, %v6436_v44 }
 0x945   :  { %v6445_v36 = vsel %vm2947_vm2, %v6438_v6, %v6437_v33 }
 0x946   :  { %v6446_v59 = vsel %vm2949_vm3, %v6439_v23, %v6445_v36 }
 0x947   :  { %v6447_v11 = vsel %vm2951_vm4, %v6440_v7, %v6446_v59  ;;  %v11338_v7 = vld [vmem:[#allocation10_spill] sm:$0xff] }
 0x94b   :  { %6448 = vrot.lane.b32.xlu0 %v6447_v11, %s7238_s28  ;;  %v10881_v11 = vsub.s32 0, %v11338_v7 }
 0x94f   :  { %3175 = vperm.xlu0 %7111, %v85_v51  }
 0x9b2   :  { %v6336_v27 = vpop.xlane.xlu0 %6335  ;;  %v6330_v0 = vpop.xlane.xlu1 %6329 }
 0x9b3   :  { %v6354_v15 = vmul.f32 0.0625, %v6336_v27  ;;  %v6352_v35 = vmul.f32 0.0625, %v6330_v0 }
 0x9b5   :  { %v6380_v47 = vrot.slane %v6354_v15, %v11331_v18  ;;  %v6371_v46 = vrot.slane %v6352_v35, %v11331_v18 }
 0x9b6   :  { %v6342_v9 = vpop.xlane.xlu0 %6341 }
 0x9b7   :  { %v6356_v62 = vmul.f32 0.0625, %v6342_v9  ;;  %v3274_v9 = vsub.s32 1, %v11338_v7 }
 0x9b9   :  { %v6389_v40 = vrot.slane %v6356_v62, %v11331_v18 }
 0x9ba   :  { %v6348_v8 = vpop.xlane.xlu0 %6347 }
 0x9bb   :  { %v6358_v55 = vmul.f32 0.0625, %v6348_v8  ;;  %v3296_v8 = vsub.s32 3, %v11338_v7 }
 0x9bd   :  { %v6398_v2 = vrot.slane %v6358_v55, %v11331_v18 }
 0x9be   :  { %v6333_v13 = vpop.xlane.xlu0 %6332  ;;  %v6339_v49 = vpop.xlane.xlu1 %6338 }
 0x9bf   :  { %v6353_v34 = vmul.f32 0.0625, %v6333_v13  ;;  %v6355_v57 = vmul.f32 0.0625, %v6339_v49 }
 0x9c1   :  { %v6375_v22 = vrot.slane %v6353_v34, %v11330_v20  ;;  %v6384_v52 = vrot.slane %v6355_v57, %v11330_v20 }
 0x9c2   :  { %v6345_v28 = vpop.xlane.xlu1 %6344  ;;  %v6449_v50 = vpop.permute.xlu0 %6448 }
 0x9c3   :  { %v6357_v12 = vmul.f32 0.0625, %v6345_v28  ;;  %v6376_v19 = vsel %vm11332_vm12, %v6375_v22, %v6371_v46  ;;  %v6385_v14 = vsel %vm11333_vm14, %v6384_v52, %v6380_v47  ;;  %vm11343_vm14 = vcmask 785408  }
 0x9c4   :  { %v6404_v38 = vsel %vm2947_vm2, %v6385_v14, %v6376_v19  ;;  %vm11345_vm2 = vcmask 916480  }
 0x9c5   :  { %v6393_v63 = vrot.slane %v6357_v12, %v11330_v20  ;;  %vm11355_vm12 = vmmov %vm11345_vm2 }
 0x9c6   :  { %v6351_v48 = vpop.xlane.xlu1 %6350 }
 0x9c7   :  { %v6359_v31 = vmul.f32 0.0625, %v6351_v48  ;;  %v6394_v39 = vsel %vm11334_vm13, %v6393_v63, %v6389_v40  ;;  %v7245_v40 = vmov 1966171168  }
 0x9c8   :  { %v6405_v4 = vsel %vm2949_vm3, %v6394_v39, %v6404_v38  ;;  %v3307_v48 = vunpack.c.l.s4 %v7245_v40  ;;  %vm11347_vm3 = vmmov %vm11345_vm2 }
 0x9c9   :  { %v6402_v25 = vrot.slane %v6359_v31, %v11330_v20 }
 0x9ca   :  { %v10887_v20 = vpop.permute.xlu0 %3175  ;;  %v3308_v19 = vunpack.c.0.s8 %v3307_v48 }
 0x9cb   :  { %v6403_v43 = vsel %vm11335_vm11, %v6402_v25, %v6398_v2  ;;  %v3252_v52 = vadd.f32 %v10773_v42, %v10887_v20  ;;  %vm11341_vm11 = vcmask 654336  }
 0x9cc   :  { %v6406_v17 = vsel %vm2951_vm4, %v6403_v43, %v6405_v4  ;;  %v10893_v42 = vsub.s32 %v3308_v19, %v11338_v7  ;;  %vm11342_vm13 = vmmov %vm11341_vm11 }
 0x9cd   :  { %6408 = vst.msk [vmem:[#allocation4] sm:$0xf] %vm2954_vm15, %v6406_v17  ;;  %v7032_v18 = vmul.f32 -1.442695, %v3252_v52  ;;  %vm11344_vm15 = vmmov %vm11343_vm14 }
 0x9ce   :  { %6451 = vst.msk [vmem:[#allocation4] sm:$0xf] %vm2998_vm6, %v6449_v50 }
 0x9d5   :  { %v6452_v30 = vld [vmem:[#allocation4] sm:$0xf] }
 0x9d6   :  { %7078 = vmatpush3.msk.msra.mxu1 %vm98_vm0, %v6452_v30  ;;  %vm11339_vm0 = vcmask 523264  }
 0x9d7   :  { %7080 = vmatmul.mubr.msk.f32.vlgmr.msra.gmra.mxu1 %vm94_vm1, %v7205_v21  ;;  %7082 = vmatprep.subr.mxu1 %v11229_v3  ;;  %vm11340_vm1 = vmmov %vm11339_vm0 }
 0x9d8   :  { %7084 = vmatprep.mubr.msk.f32.mxu1 %vm7244_vm5, %v11229_v3  ;;  %vm11350_vm4 = vmmov %vm11339_vm0 }
 0x9d9   :  { %vm11352_vm6 = vmmov %vm11339_vm0 }
 0xa97   :  { %v6522_v16 = vpop.f32.mrf.mxu1 }
 0xa98   :  { %v6523_v5 = vadd.f32 %v6522_v16, %v11336_v41 }
 0xa99   :  { %v7081_v60 = vpop.f32.mrf.mxu1 }
 0xa9a   :  { %v6526_v45 = vadd.f32 3.0, %v6523_v5 }
 0xa9c   :  { %v6527_v1 = vmax.f32 %v6526_v45, 0.0 }
 0xa9e   :  { %v6528_v24 = vmin.f32 %v6527_v1, 6.0 }
 0xaa0   :  { %v6529_v53 = vmul.f32 0.16666667, %v6528_v24 }
 0xaa2   :  { %v6530_v26 = vmul.f32 %v6529_v53, %v6523_v5 }
 0xaa4   :  { %6608 = vrot.lane.b32.xlu1 %v6530_v26, %s7233_s23  ;;  %7083 = vmatpush3.msra.mxu1 %v6530_v26 }
 0xaa5   :  { %7085 = vmatmul.mubr.msk.f32.vlgmr.msra.gmra.mxu1 %vm3093_vm7, %v11337_v10  ;;  %7087 = vmatprep.subr.mxu1 %v11229_v3 }
 0xaa6   :  { %7089 = vmatprep.mubr.msk.f32.mxu1 %vm7244_vm5, %v11229_v3  ;;  %vm11351_vm5 = vmmov %vm11341_vm11 }
 0xaa8   :  { %3090 = vperm.xlu1 %7112, %v84_v54  }
 0xb16   :  { %v6609_v6 = vpop.permute.xlu1 %6608 }
 0xb17   :  { %7088 = vmatpush3.msra.mxu1 %v6609_v6 }
 0xb18   :  { %7090 = vmatmul.mubr.msk.f32.vlgmr.msra.gmra.mxu1 %vm3093_vm7, %v10712_v58  ;;  %v3285_v58 = vsub.s32 2, %v11338_v7  ;;  %vm11353_vm7 = vmmov %vm11351_vm5 }
 0xb23   :  { %v3091_v33 = vpop.permute.xlu1 %3090 }
 0xb24   :  { %v3164_v23 = vadd.f32 %v10771_v37, %v3091_v33 }
 0xb26   :  { %v7030_v44 = vmul.f32 -1.442695, %v3164_v23 }
 0xb28   :  { %7187 = vpow2.f32 %v7030_v44 }
 0xb35   :  { %v7188_v36 = vpop.eup %7187 }
 0xb36   :  { %v3170_v59 = vadd.f32 1.0, %v7188_v36 }
 0xb38   :  { %7189 = vrcp.f32 %v3170_v59 }
 0xb45   :  { %v7190_v51 = vpop.eup %7189 }
 0xb46   :  { %v3264_v27 = vrot.slane %v7190_v51, %v10881_v11  ;;  %v3275_v0 = vrot.slane %v7190_v51, %v3274_v9  ;;  %v3286_v37 = vrot.slane %v7190_v51, %v3285_v58  ;;  %v3297_v13 = vrot.slane %v7190_v51, %v3296_v8 }
 0xb48   :  { %3270 = vbcast.lane.b32.xlu0 %v3264_v27, 264  ;;  %3266 = vbcast.lane.b32.xlu1 %v3264_v27, 256 }
 0xb4c   :  { %3281 = vbcast.lane.b32.xlu0 %v3275_v0, 264  ;;  %3277 = vbcast.lane.b32.xlu1 %v3275_v0, 256 }
 0xb50   :  { %3292 = vbcast.lane.b32.xlu0 %v3286_v37, 264  ;;  %3288 = vbcast.lane.b32.xlu1 %v3286_v37, 256 }
 0xb54   :  { %3303 = vbcast.lane.b32.xlu0 %v3297_v13, 264  ;;  %3299 = vbcast.lane.b32.xlu1 %v3297_v13, 256 }
 0xb65   :  { %v6597_v49 = vpop.f32.mrf.mxu1 }
 0xb66   :  { %v6598_v34 = vadd.f32 %v6597_v49, %v3091_v33 }
 0xb67   :  { %v7086_v57 = vpop.f32.mrf.mxu1 }
 0xb68   :  { %v7047_v15 = vmul.f32 -1.442695, %v6598_v34 }
 0xb6a   :  { %7191 = vpow2.f32 %v7047_v15 }
 0xb77   :  { %v7192_v35 = vpop.eup %7191 }
 0xb78   :  { %v6604_v62 = vadd.f32 1.0, %v7192_v35 }
 0xb7a   :  { %7193 = vrcp.f32 %v6604_v62 }
 0xb7b   :  { %7195 = vpow2.f32 %v7032_v18 }
 0xb87   :  { %v7194_v28 = vpop.eup %7193 }
 0xb88   :  { %v6690_v22 = vrot.slane %v7194_v28, %v10881_v11  ;;  %v6701_v12 = vrot.slane %v7194_v28, %v3274_v9  ;;  %v6712_v47 = vrot.slane %v7194_v28, %v3285_v58  ;;  %v6723_v46 = vrot.slane %v7194_v28, %v3296_v8  ;;  %v7196_v55 = vpop.eup %7195 }
 0xb89   :  { %v3258_v63 = vadd.f32 1.0, %v7196_v55 }
 0xb8a   :  { %6696 = vbcast.lane.b32.xlu0 %v6690_v22, 264  ;;  %6692 = vbcast.lane.b32.xlu1 %v6690_v22, 256 }
 0xb8b   :  { %7197 = vrcp.f32 %v3258_v63 }
 0xb8e   :  { %6707 = vbcast.lane.b32.xlu0 %v6701_v12, 264  ;;  %6703 = vbcast.lane.b32.xlu1 %v6701_v12, 256 }
 0xb92   :  { %6718 = vbcast.lane.b32.xlu0 %v6712_v47, 264  ;;  %6714 = vbcast.lane.b32.xlu1 %v6712_v47, 256 }
 0xb96   :  { %6729 = vbcast.lane.b32.xlu0 %v6723_v46, 264  ;;  %6725 = vbcast.lane.b32.xlu1 %v6723_v46, 256 }
 0xb98   :  { %v7198_v14 = vpop.eup %7197 }
 0xb99   :  { %v3312_v31 = vrot.slane %v7198_v14, %v10893_v42 }
 0xb9b   :  { %v3320_v39 = vrot.slane %v3312_v31, %v10893_v42  ;;  %v3313_v38 = vcombine.high %v3312_v31, %v3312_v31 }
 0xb9d   :  { %v3327_v4 = vrot.slane %v3313_v38, %v10893_v42  ;;  %v3328_v50 = vcombine.high %v3320_v39, %v3320_v39  ;;  %v3333_v5 = vrot.slane %v3320_v39, %v10881_v11 }
 0xb9f   :  { %v3341_v30 = vrot.slane %v3328_v50, %v10881_v11  ;;  %v3329_v41 = vcombine.high %v3327_v4, %v3327_v4  ;;  %v3337_v45 = vrot.slane %v3327_v4, %v10881_v11 }
 0xba1   :  { %v3345_v53 = vrot.slane %v3329_v41, %v10881_v11 }
 0xbba   :  { %v3271_v2 = vpop.permute.xlu0 %3270  ;;  %v3267_v25 = vpop.permute.xlu1 %3266 }
 0xbbb   :  { %v3351_v24 = vmul.f32 %v3333_v5, %v3271_v2  ;;  %v3350_v54 = vmul.f32 %v3333_v5, %v3267_v25 }
 0xbbe   :  { %v3282_v43 = vpop.permute.xlu0 %3281  ;;  %v3278_v17 = vpop.permute.xlu1 %3277 }
 0xbbf   :  { %v3353_v6 = vmul.f32 %v3337_v45, %v3282_v43  ;;  %v3352_v33 = vmul.f32 %v3337_v45, %v3278_v17 }
 0xbc2   :  { %v3293_v21 = vpop.permute.xlu0 %3292  ;;  %v3289_v16 = vpop.permute.xlu1 %3288 }
 0xbc3   :  { %v3355_v60 = vmul.f32 %v3341_v30, %v3293_v21  ;;  %v3354_v1 = vmul.f32 %v3341_v30, %v3289_v16 }
 0xbc5   :  { %v3426_v23 = vcombine.low %v3351_v24, %v3355_v60  ;;  %v3358_v59 = vcombine.low %v3350_v54, %v3354_v1  ;;  %v3427_v22 = vcombine.high %v3351_v24, %v3355_v60  ;;  %v3359_v52 = vcombine.high %v3350_v54, %v3354_v1 }
 0xbc6   :  { %v3304_v26 = vpop.permute.xlu0 %3303  ;;  %v3300_v10 = vpop.permute.xlu1 %3299 }
 0xbc7   :  { %v3357_v44 = vmul.f32 %v3345_v53, %v3304_v26  ;;  %v3356_v36 = vmul.f32 %v3345_v53, %v3300_v10  ;;  %v3434_v27 = vrot.slane %v3426_v23, %v11328_v61  ;;  %v3366_v58 = vrot.slane %v3358_v59, %v11328_v61 }
 0xbc8   :  { %v3441_v55 = vrot.slane %v3427_v22, %v11328_v61  ;;  %v3373_v40 = vrot.slane %v3359_v52, %v11328_v61 }
 0xbc9   :  { %v3442_v7 = vcombine.low %v3353_v6, %v3357_v44  ;;  %v3374_v51 = vcombine.low %v3352_v33, %v3356_v36  ;;  %v3443_v34 = vcombine.high %v3353_v6, %v3357_v44  ;;  %v3375_v35 = vcombine.high %v3352_v33, %v3356_v36 }
 0xbcb   :  { %v3450_v9 = vrot.slane %v3442_v7, %v11328_v61  ;;  %v3382_v0 = vrot.slane %v3374_v51, %v11328_v61  ;;  %v3457_v12 = vrot.slane %v3443_v34, %v11328_v61  ;;  %v3389_v47 = vrot.slane %v3375_v35, %v11328_v61 }
 0xbcd   :  { %v3458_v37 = vcombine.low %v3434_v27, %v3450_v9  ;;  %v3390_v8 = vcombine.low %v3366_v58, %v3382_v0  ;;  %v3459_v57 = vcombine.high %v3434_v27, %v3450_v9  ;;  %v3391_v62 = vcombine.high %v3366_v58, %v3382_v0 }
 0xbce   :  { %v3474_v19 = vcombine.low %v3441_v55, %v3457_v12  ;;  %v3406_v39 = vcombine.low %v3373_v40, %v3389_v47  ;;  %v3407_v17 = vcombine.high %v3373_v40, %v3389_v47 }
 0xbcf   :  { %v10907_v13 = vrot.slane %v3458_v37, %v11329_v56  ;;  %v10910_v49 = vrot.slane %v3390_v8, %v11329_v56  ;;  %v3473_v18 = vrot.slane %v3459_v57, %v11329_v56  ;;  %v3405_v46 = vrot.slane %v3391_v62, %v11329_v56 }
 0xbd0   :  { %v3482_v38 = vrot.slane %v3474_v19, %v11329_v56  ;;  %v3414_v4 = vrot.slane %v3406_v39, %v11329_v56  ;;  %v3421_v21 = vrot.slane %v3407_v17, %v11329_v56 }
 0xbd1   :  { %v3490_v15 = vcombine.high %v10907_v13, %v11229_v3  ;;  %v3422_v28 = vcombine.high %v10910_v49, %v11229_v3  ;;  %v3491_v14 = vcombine.high %v3473_v18, %v11229_v3  ;;  %v3423_v25 = vcombine.high %v3405_v46, %v11229_v3 }
 0xbd2   :  { %v3492_v43 = vcombine.high %v3482_v38, %v11229_v3  ;;  %v3424_v50 = vcombine.high %v3414_v4, %v11229_v3  ;;  %v3425_v60 = vcombine.high %v3421_v21, %v11229_v3 }
 0xbd3   :  { %3523 = vrot.lane.b32.xlu0 %v3490_v15, %s7238_s28  ;;  %3495 = vrot.lane.b32.xlu1 %v3422_v28, %s7238_s28 }
 0xbd7   :  { %3527 = vrot.lane.b32.xlu0 %v3473_v18, %s7236_s26  ;;  %3499 = vrot.lane.b32.xlu1 %v3405_v46, %s7236_s26 }
 0xbd8   :  { %v6677_v63 = vpop.f32.mrf.mxu1 }
 0xbd9   :  { %v6678_v48 = vadd.f32 %v6677_v63, %v10887_v20  ;;  %v3475_v20 = vcombine.high %v3441_v55, %v3457_v12 }
 0xbda   :  { %v7091_v31 = vpop.f32.mrf.mxu1 }
 0xbdb   :  { %v7049_v2 = vmul.f32 -1.442695, %v6678_v48  ;;  %3531 = vrot.lane.b32.xlu0 %v3491_v14, %s7237_s27  ;;  %3503 = vrot.lane.b32.xlu1 %v3423_v25, %s7237_s27  ;;  %v3489_v30 = vrot.slane %v3475_v20, %v11329_v56 }
 0xbdd   :  { %7199 = vpow2.f32 %v7049_v2  ;;  %v3493_v41 = vcombine.high %v3489_v30, %v11229_v3 }
 0xbdf   :  { %3535 = vrot.lane.b32.xlu0 %v3482_v38, %s7234_s24  ;;  %3507 = vrot.lane.b32.xlu1 %v3414_v4, %s7234_s24 }
 0xbe3   :  { %3539 = vrot.lane.b32.xlu0 %v3492_v43, %s7235_s25  ;;  %3511 = vrot.lane.b32.xlu1 %v3424_v50, %s7235_s25 }
 0xbe7   :  { %3543 = vrot.lane.b32.xlu0 %v3489_v30, %s7232_s2  ;;  %3515 = vrot.lane.b32.xlu1 %v3421_v21, %s7232_s2 }
 0xbea   :  { %v7200_v16 = vpop.eup %7199 }
 0xbeb   :  { %v6684_v5 = vadd.f32 1.0, %v7200_v16  ;;  %3547 = vrot.lane.b32.xlu0 %v3493_v41, %s7233_s23  ;;  %3519 = vrot.lane.b32.xlu1 %v3425_v60, %s7233_s23 }
 0xbed   :  { %7201 = vrcp.f32 %v6684_v5 }
 0xbfa   :  { %v7202_v45 = vpop.eup %7201 }
 0xbfb   :  { %v6738_v1 = vrot.slane %v7202_v45, %v10893_v42 }
 0xbfc   :  { %v6697_v24 = vpop.permute.xlu0 %6696  ;;  %v6693_v53 = vpop.permute.xlu1 %6692 }
 0xbfd   :  { %v6746_v26 = vrot.slane %v6738_v1, %v10893_v42  ;;  %v6739_v10 = vcombine.high %v6738_v1, %v6738_v1 }
 0xbff   :  { %v6753_v6 = vrot.slane %v6739_v10, %v10893_v42  ;;  %v6754_v23 = vcombine.high %v6746_v26, %v6746_v26  ;;  %v6759_v44 = vrot.slane %v6746_v26, %v10881_v11 }
 0xc00   :  { %v6708_v54 = vpop.permute.xlu0 %6707  ;;  %v6704_v33 = vpop.permute.xlu1 %6703 }
 0xc01   :  { %v6767_v59 = vrot.slane %v6754_v23, %v10881_v11  ;;  %v6755_v51 = vcombine.high %v6753_v6, %v6753_v6  ;;  %v6763_v27 = vrot.slane %v6753_v6, %v10881_v11  ;;  %v6777_v58 = vmul.f32 %v6759_v44, %v6697_v24 }
 0xc02   :  { %v6776_v57 = vmul.f32 %v6759_v44, %v6693_v53 }
 0xc03   :  { %v6771_v8 = vrot.slane %v6755_v51, %v10881_v11  ;;  %v6779_v42 = vmul.f32 %v6763_v27, %v6708_v54  ;;  %v6778_v15 = vmul.f32 %v6763_v27, %v6704_v33 }
 0xc04   :  { %v6719_v36 = vpop.permute.xlu0 %6718  ;;  %v6715_v7 = vpop.permute.xlu1 %6714 }
 0xc05   :  { %v6781_v9 = vmul.f32 %v6767_v59, %v6719_v36  ;;  %v6780_v0 = vmul.f32 %v6767_v59, %v6715_v7 }
 0xc07   :  { %v6852_v35 = vcombine.low %v6777_v58, %v6781_v9  ;;  %v6853_v22 = vcombine.high %v6777_v58, %v6781_v9  ;;  %v6784_v52 = vcombine.low %v6776_v57, %v6780_v0  ;;  %v6785_v55 = vcombine.high %v6776_v57, %v6780_v0 }
 0xc08   :  { %v6730_v37 = vpop.permute.xlu0 %6729  ;;  %v6726_v34 = vpop.permute.xlu1 %6725 }
 0xc09   :  { %v6783_v62 = vmul.f32 %v6771_v8, %v6730_v37  ;;  %v6782_v28 = vmul.f32 %v6771_v8, %v6726_v34  ;;  %v6860_v63 = vrot.slane %v6852_v35, %v11328_v61  ;;  %v6792_v19 = vrot.slane %v6784_v52, %v11328_v61 }
 0xc0a   :  { %v6867_v31 = vrot.slane %v6853_v22, %v11328_v61  ;;  %v6799_v2 = vrot.slane %v6785_v55, %v11328_v61 }
 0xc0b   :  { %v6868_v12 = vcombine.low %v6779_v42, %v6783_v62  ;;  %v6869_v18 = vcombine.high %v6779_v42, %v6783_v62  ;;  %v6800_v47 = vcombine.low %v6778_v15, %v6782_v28  ;;  %v6801_v46 = vcombine.high %v6778_v15, %v6782_v28 }
 0xc0d   :  { %v6876_v40 = vrot.slane %v6868_v12, %v11328_v61  ;;  %v6883_v11 = vrot.slane %v6869_v18, %v11328_v61  ;;  %v6808_v48 = vrot.slane %v6800_v47, %v11328_v61  ;;  %v6815_v14 = vrot.slane %v6801_v46, %v11328_v61  ;;  %v11346_v47 = vld [vmem:[#allocation27_spill] sm:$0xff] }
 0xc0f   :  { %v6885_v39 = vcombine.high %v6860_v63, %v6876_v40  ;;  %v6817_v25 = vcombine.high %v6792_v19, %v6808_v48  ;;  %v6900_v38 = vcombine.low %v6867_v31, %v6883_v11  ;;  %v6832_v20 = vcombine.low %v6799_v2, %v6815_v14 }
 0xc10   :  { %v6884_v17 = vcombine.low %v6860_v63, %v6876_v40  ;;  %v6901_v50 = vcombine.high %v6867_v31, %v6883_v11  ;;  %v6816_v21 = vcombine.low %v6792_v19, %v6808_v48  ;;  %v6833_v16 = vcombine.high %v6799_v2, %v6815_v14  ;;  %v11348_v63 = vld [vmem:[#allocation20_spill] sm:$0xff] }
 0xc11   :  { %v6899_v4 = vrot.slane %v6885_v39, %v11329_v56  ;;  %v6831_v43 = vrot.slane %v6817_v25, %v11329_v56  ;;  %v6908_v30 = vrot.slane %v6900_v38, %v11329_v56  ;;  %v6840_v41 = vrot.slane %v6832_v20, %v11329_v56  ;;  %v11349_v11 = vld [vmem:[#allocation8_spill] sm:$0xff] }
 0xc12   :  { %v10971_v61 = vrot.slane %v6884_v17, %v11329_v56  ;;  %v6915_v5 = vrot.slane %v6901_v50, %v11329_v56  ;;  %v10975_v60 = vrot.slane %v6816_v21, %v11329_v56  ;;  %v6847_v45 = vrot.slane %v6833_v16, %v11329_v56  ;;  %v7206_v19 = vld [vmem:[%s11045_s0] sm:$0xff] }
 0xc13   :  { %6953 = vrot.lane.b32.xlu0 %v6899_v4, %s7236_s26  ;;  %6925 = vrot.lane.b32.xlu1 %v6831_v43, %s7236_s26  ;;  %v6917_v53 = vcombine.high %v6899_v4, %v11229_v3  ;;  %v6849_v26 = vcombine.high %v6831_v43, %v11229_v3  ;;  %v6918_v56 = vcombine.high %v6908_v30, %v11229_v3 }
 0xc14   :  { %v6916_v1 = vcombine.high %v10971_v61, %v11229_v3  ;;  %v6848_v24 = vcombine.high %v10975_v60, %v11229_v3  ;;  %v6850_v10 = vcombine.high %v6840_v41, %v11229_v3  ;;  %v6919_v54 = vcombine.high %v6915_v5, %v11229_v3 }
 0xc15   :  { %v6851_v6 = vcombine.high %v6847_v45, %v11229_v3 }
 0xc17   :  { %6961 = vrot.lane.b32.xlu0 %v6908_v30, %s7234_s24  ;;  %6933 = vrot.lane.b32.xlu1 %v6840_v41, %s7234_s24 }
 0xc1b   :  { %6969 = vrot.lane.b32.xlu0 %v6915_v5, %s7232_s2  ;;  %6941 = vrot.lane.b32.xlu1 %v6847_v45, %s7232_s2 }
 0xc1f   :  { %6949 = vrot.lane.b32.xlu0 %v6916_v1, %s7238_s28  ;;  %6921 = vrot.lane.b32.xlu1 %v6848_v24, %s7238_s28 }
 0xc23   :  { %6957 = vrot.lane.b32.xlu0 %v6917_v53, %s7237_s27  ;;  %6929 = vrot.lane.b32.xlu1 %v6849_v26, %s7237_s27 }
 0xc27   :  { %6965 = vrot.lane.b32.xlu0 %v6918_v56, %s7235_s25  ;;  %6937 = vrot.lane.b32.xlu1 %v6850_v10, %s7235_s25 }
 0xc2b   :  { %6973 = vrot.lane.b32.xlu0 %v6919_v54, %s7233_s23  ;;  %6945 = vrot.lane.b32.xlu1 %v6851_v6, %s7233_s23  ;;  %s7246_s23 = smov [#allocation5]  }
 0xc2c   :  { %s7006_s24 = sshll.u32 %s7246_s23, 4  ;;  %s7007_s24 = int_to_ptr.vmem [resolvable:$true] %s7006_s24 }
 0xc2d   :  { %s7208_s27 = scalar_lea.vmem %s7007_s24, 256  ;;  %p7213_p1 = scmp.lt.s32.totalorder %s7007_s24, %s7007_s24 }
 0xc2e   :  { %p7209_p0 = scmp.ne.s32.totalorder %s7007_s24, %s7208_s27  ;;  %p7214_p2 = scmp.lt.s32.totalorder %s7208_s27, %s7208_s27 }
 0xc30   :  { %p7215_p3 = por %p7214_p2, %p7213_p1 }
 0xc32   :  { %p7216_p4 = pnand %p7215_p3, %p7209_p0 }
 0xc45   :  { %v3524_v33 = vpop.permute.xlu0 %3523  ;;  %v3496_v23 = vpop.permute.xlu1 %3495 }
 0xc46   :  { %v3557_v58 = vsel %vm609_vm8, %v10907_v13, %v3524_v33  ;;  %v3550_v3 = vsel %vm609_vm8, %v10910_v49, %v3496_v23 }
 0xc49   :  { %v3528_v44 = vpop.permute.xlu0 %3527  ;;  %v3500_v36 = vpop.permute.xlu1 %3499 }
 0xc4a   :  { %v3558_v37 = vsel %vm611_vm9, %v3557_v58, %v3528_v44  ;;  %v3551_v34 = vsel %vm611_vm9, %v3550_v3, %v3500_v36 }
 0xc4d   :  { %v3532_v59 = vpop.permute.xlu0 %3531  ;;  %v3504_v7 = vpop.permute.xlu1 %3503 }
 0xc4e   :  { %v3559_v57 = vsel %vm613_vm10, %v3558_v37, %v3532_v59  ;;  %v3552_v15 = vsel %vm613_vm10, %v3551_v34, %v3504_v7  ;;  %v11358_v7 = vld [vmem:[#allocation23_spill] sm:$0xff] }
 0xc51   :  { %v3536_v51 = vpop.permute.xlu0 %3535  ;;  %v3508_v27 = vpop.permute.xlu1 %3507 }
 0xc52   :  { %v3560_v35 = vsel %vm11339_vm0, %v3559_v57, %v3536_v51  ;;  %v3553_v62 = vsel %vm11340_vm1, %v3552_v15, %v3508_v27  ;;  %v7207_v27 = vld [vmem:[%s11045_s0 + $0x8] sm:$0xff] }
 0xc55   :  { %v3540_v9 = vpop.permute.xlu0 %3539  ;;  %v3512_v0 = vpop.permute.xlu1 %3511 }
 0xc56   :  { %v3561_v28 = vsel %vm11341_vm11, %v3560_v35, %v3540_v9  ;;  %v3554_v13 = vsel %vm11342_vm13, %v3553_v62, %v3512_v0 }
 0xc59   :  { %v3544_v8 = vpop.permute.xlu0 %3543  ;;  %v3516_v42 = vpop.permute.xlu1 %3515 }
 0xc5a   :  { %v3562_v49 = vsel %vm11343_vm14, %v3561_v28, %v3544_v8  ;;  %v3555_v52 = vsel %vm11344_vm15, %v3554_v13, %v3516_v42 }
 0xc5d   :  { %v3548_v22 = vpop.permute.xlu0 %3547  ;;  %v3520_v18 = vpop.permute.xlu1 %3519 }
 0xc5e   :  { %v3563_v12 = vsel %vm11345_vm2, %v3562_v49, %v3548_v22  ;;  %v3556_v55 = vsel %vm11347_vm3, %v3555_v52, %v3520_v18 }
 0xc5f   :  { %v3565_v46 = vmul.f32 %v3563_v12, %v11346_v47  ;;  %v3564_v40 = vmul.f32 %v3556_v55, %v11348_v63 }
 0xc61   :  { %v3568_v48 = vadd.f32 %v3565_v46, %v11349_v11  ;;  %v3567_v14 = vadd.f32 %v7206_v19, %v3564_v40 }
 0xc63   :  { %v3571_v31 = vcombine.low %v3567_v14, %v3568_v48 }
 0xc65   :  { %3573 = vst [vmem:[#allocation5] sm:$0xff] %v3571_v31 }
 0xc85   :  { %v6954_v39 = vpop.permute.xlu0 %6953  ;;  %v6926_v2 = vpop.permute.xlu1 %6925 }
 0xc89   :  { %v6962_v25 = vpop.permute.xlu0 %6961  ;;  %v6934_v38 = vpop.permute.xlu1 %6933 }
 0xc8d   :  { %v6970_v4 = vpop.permute.xlu0 %6969  ;;  %v6942_v20 = vpop.permute.xlu1 %6941 }
 0xc91   :  { %v6950_v43 = vpop.permute.xlu0 %6949  ;;  %v6922_v50 = vpop.permute.xlu1 %6921 }
 0xc92   :  { %v6983_v17 = vsel %vm609_vm8, %v10971_v61, %v6950_v43  ;;  %v6976_v30 = vsel %vm609_vm8, %v10975_v60, %v6922_v50  ;;  %vm11354_vm8 = vmmov %vm11343_vm14 }
 0xc93   :  { %v6984_v21 = vsel %vm611_vm9, %v6983_v17, %v6954_v39  ;;  %v6977_v5 = vsel %vm611_vm9, %v6976_v30, %v6926_v2  ;;  %vm11356_vm0 = vmmov %vm11354_vm8 }
 0xc94   :  { %vm11357_vm9 = vmmov %vm11345_vm2 }
 0xc95   :  { %v6958_v16 = vpop.permute.xlu0 %6957  ;;  %v6930_v45 = vpop.permute.xlu1 %6929 }
 0xc96   :  { %v6985_v41 = vsel %vm613_vm10, %v6984_v21, %v6958_v16  ;;  %v6978_v1 = vsel %vm613_vm10, %v6977_v5, %v6930_v45 }
 0xc97   :  { %v6986_v24 = vsel %vm11350_vm4, %v6985_v41, %v6962_v25  ;;  %v6979_v61 = vsel %vm11352_vm6, %v6978_v1, %v6934_v38 }
 0xc99   :  { %v6966_v53 = vpop.permute.xlu0 %6965  ;;  %v6938_v56 = vpop.permute.xlu1 %6937 }
 0xc9a   :  { %v6987_v26 = vsel %vm11351_vm5, %v6986_v24, %v6966_v53  ;;  %v6980_v60 = vsel %vm11353_vm7, %v6979_v61, %v6938_v56 }
 0xc9b   :  { %v6988_v10 = vsel %vm11354_vm8, %v6987_v26, %v6970_v4  ;;  %v6981_v33 = vsel %vm11356_vm0, %v6980_v60, %v6942_v20 }
 0xc9d   :  { %v6974_v54 = vpop.permute.xlu0 %6973  ;;  %v6946_v23 = vpop.permute.xlu1 %6945 }
 0xc9e   :  { %v6989_v6 = vsel %vm11355_vm12, %v6988_v10, %v6974_v54  ;;  %v6982_v36 = vsel %vm11357_vm9, %v6981_v33, %v6946_v23 }
 0xc9f   :  { %v6991_v44 = vmul.f32 %v6989_v6, %v10791_v29  ;;  %v6990_v59 = vmul.f32 %v6982_v36, %v10777_v32 }
 0xca1   :  { %v6994_v51 = vadd.f32 %v6991_v44, %v11358_v7  ;;  %v6993_v9 = vadd.f32 %v7207_v27, %v6990_v59 }
 0xca3   :  { %v6997_v0 = vcombine.low %v6993_v9, %v6994_v51 }
 0xca5   :  { %7000 = vst [vmem:[#allocation5 + $0x8] sm:$0xff] %v6997_v0 }
 0xca6   :  { %7219 = shalt.err (!%p7216_p4)
}
 0xca7   :  { %s7247_s28 = smov 128   ;;  %s7248_s16 = smov 8  }
 0xca8   :  { %7012 = dma.vmem_to_hbm [thread:$0]  %s7007_s24, 256, %s11056_s11, [#allocation6], %s7247_s28, %s7247_s28, %s7248_s16  }
 0xca9   :  { %7228 = dma.done.wait [#allocation6], 256  }
 0xcaa   :  { %7229 = vsyncadd [#allocation6], 4294967040 }
 0xcab   :  { %7016 = vsyncpa [#allocation6], 1 }

</bundles_post_ra>
